<compile_context>
chip_gen: v7x
topology: tpu7x:2x2x1
jax: 0.10.0
libtpu: 0.0.40
codegen_flags: <defaults>
</compile_context>

<pallas_src>
import functools

import jax
import jax.numpy as jnp
from jax.experimental import pallas as pl
from jax.experimental.pallas import tpu as pltpu

# vecs packs row indices (each row is a length-D vector):
#  0: slot_mu            1: exp(slot_sigma)   (pre-exponentiated)
#  2: norm_inputs.gamma  3: norm_inputs.beta
#  4: b_q
#  5: norm_slots.gamma   6: norm_slots.beta
#  7: norm_mlp.gamma     8: norm_mlp.beta
#  9: b_mlp1            10: b_mlp2


def _layernorm(z, gamma, beta, eps=1e-5):
    mean = jnp.mean(z, axis=-1, keepdims=True)
    var = jnp.mean((z - mean) ** 2, axis=-1, keepdims=True)
    return (z - mean) * jax.lax.rsqrt(var + eps) * gamma + beta


def slot_attention_kernel(x_ref, noise_ref, w_kv_ref, w_q_ref, w_g_ref,
                          w_m1_ref, w_m2_ref, vecs_ref, b_kv_ref, b_g_ref,
                          out_ref, *, iters, n_inputs, n_slots):
    D = x_ref.shape[-1]
    N, S = n_inputs, n_slots
    TB = x_ref.shape[0] // N            # batch elements folded into this step

    # ---- slot init:  mu + exp(sigma) * noise   (rows = TB*S) ----
    mu = vecs_ref[0:1]                                  # (1, D)
    exp_sigma = vecs_ref[1:2]                           # (1, D), already exp'd
    slots = mu + exp_sigma * noise_ref[...]             # (TB*S, D)

    # ---- input LayerNorm + fused K/V projection (rows = TB*N) ----
    xn = _layernorm(x_ref[...], vecs_ref[2:3], vecs_ref[3:4])
    kv = (jnp.dot(xn, w_kv_ref[...], preferred_element_type=jnp.float32)
          + b_kv_ref[...])                              # (TB*N, 2D)
    k = kv[:, :D].reshape(TB, N, D)
    v = kv[:, D:].reshape(TB, N, D)

    # ---- loop-invariant rows, hoisted out of the unrolled iteration loop ----
    b_q = vecs_ref[4:5]
    ns_g, ns_b = vecs_ref[5:6], vecs_ref[6:7]
    nm_g, nm_b = vecs_ref[7:8], vecs_ref[8:9]
    b_m1, b_m2 = vecs_ref[9:10], vecs_ref[10:11]
    b_g = b_g_ref[...]                                  # (1, 4D)

    for _ in range(iters):   # iters is small (3): unrolled on purpose
        # Q projection on the fused TB*S rows.
        sn = _layernorm(slots, ns_g, ns_b)
        q = (jnp.dot(sn, w_q_ref[...], preferred_element_type=jnp.float32)
             + b_q).reshape(TB, S, D)

        # attn_logits = einsum('bsd,bnd->bsn'); contraction on D, batch on TB.
        logits = jax.lax.dot_general(
            q, k, dimension_numbers=(((2,), (2,)), ((0,), (0,))),
            preferred_element_type=jnp.float32)         # (TB, S, N)
        logits = logits - jnp.max(logits, axis=-1, keepdims=True)
        e = jnp.exp(logits)
        attn = e / jnp.sum(e, axis=-1, keepdims=True)   # exact div for parity

        # updates = einsum('bnd,bsn->bsd')  == batched attn @ v
        updates = jax.lax.dot_general(
            attn, v, dimension_numbers=(((2,), (1,)), ((0,), (0,))),
            preferred_element_type=jnp.float32).reshape(TB * S, D)

        # ---- GRUCell: ONE fused matmul  [updates|slots] @ (2D,4D) ----
        #   g[:, :2D]   = r/z pre-activations (input+hidden already summed)
        #   g[:, 2D:3D] = gi_n = updates @ W_in^T + b_in
        #   g[:, 3D:4D] = gh_n = slots   @ W_hn^T + b_hn
        cat = jnp.concatenate([updates, slots], axis=1)          # (TB*S, 2D)
        g = (jnp.dot(cat, w_g_ref[...], preferred_element_type=jnp.float32)
             + b_g)                                              # (TB*S, 4D)
        rz = jax.nn.sigmoid(g[:, :2 * D])                        # one wide EUP
        r = rz[:, :D]
        zg = rz[:, D:]
        n = jnp.tanh(g[:, 2 * D:3 * D] + r * g[:, 3 * D:])
        slots = (1.0 - zg) * n + zg * slots

        # ---- residual MLP ----
        sm = _layernorm(slots, nm_g, nm_b)
        h = jnp.maximum(
            jnp.dot(sm, w_m1_ref[...], preferred_element_type=jnp.float32) + b_m1,
            0.0)
        slots = slots + (jnp.dot(h, w_m2_ref[...],
                                 preferred_element_type=jnp.float32) + b_m2)

    out_ref[...] = slots.astype(out_ref.dtype)          # (TB*S, D)


def _num_tensorcores():
    """2 for dual-TensorCore chips (v4 / v5p megacore / v7x), else 1."""
    try:
        kind = jax.devices()[0].device_kind.lower()
    except Exception:
        return 1
    if ("v4" in kind) or ("v5p" in kind) or ("v7" in kind):
        return 2
    return 1                      # v2/v3 single-die, v5e, v6e


def _pick_tb(B, N, num_cores, target_rows=1024):
    """Largest divisor tb of B with tb*N <= target_rows.  On single-TC chips
    tb = B (grid length 1); on dual-TC chips the grid length is kept a
    multiple of num_cores so every TensorCore gets work."""
    best = 1
    for tb in range(1, B + 1):
        if B % tb != 0:
            continue
        if tb * N > target_rows:
            continue
        grid = B // tb
        if num_cores > 1 and B >= num_cores and grid % num_cores != 0:
            continue
        best = max(best, tb)
    return best


def slot_attention_pallas(x, noise, params, *, iters, tb=None):
    B, N, D = x.shape
    S = noise.shape[1]
    if tb is None:
        tb = _pick_tb(B, N, _num_tensorcores())
    assert B % tb == 0, f"tb={tb} must divide B={B}"
    grid_b = B // tb

    # Pre-flatten: contiguous 2D blocks, no in-kernel boundary reshapes.
    x_flat = x.reshape(B * N, D)
    noise_flat = noise.reshape(B * S, D)

    w_kv, w_q, w_g = params["w_kv"], params["w_q"], params["w_g"]
    w_m1, w_m2 = params["w_m1"], params["w_m2"]
    vecs, b_kv, b_g = params["vecs"], params["b_kv"], params["b_g"]

    def full(arr):
        return pl.BlockSpec(arr.shape, lambda b, _nd=arr.ndim: (0,) * _nd)

    kernel = functools.partial(slot_attention_kernel, iters=iters,
                               n_inputs=N, n_slots=S)
    out_flat = pl.pallas_call(
        kernel,
        out_shape=jax.ShapeDtypeStruct((B * S, D), jnp.float32),
        grid_spec=pltpu.PrefetchScalarGridSpec(
            num_scalar_prefetch=0,
            grid=(grid_b,),
            in_specs=[
                pl.BlockSpec((tb * N, D), lambda b: (b, 0)),   # x (flattened)
                pl.BlockSpec((tb * S, D), lambda b: (b, 0)),   # noise
                full(w_kv), full(w_q), full(w_g),
                full(w_m1), full(w_m2), full(vecs),
                full(b_kv), full(b_g),
            ],
            out_specs=pl.BlockSpec((tb * S, D), lambda b: (b, 0)),
        ),
        compiler_params=pltpu.CompilerParams(
            dimension_semantics=("parallel",)),   # footprint <1 MiB: no vmem_limit override
    )(x_flat, noise_flat, w_kv, w_q, w_g, w_m1, w_m2, vecs, b_kv, b_g)
    return out_flat.reshape(B, S, D)


# ---------------- parameter packing (PyTorch layout -> fused kernel layout) ---
def pack_params(p, D):
    ones = jnp.ones((D,), jnp.float32)
    zeros = jnp.zeros((D,), jnp.float32)
    vecs = jnp.stack([
        p["slot_mu"], jnp.exp(p["slot_sigma"]),   # sigma pre-exponentiated
        ones, zeros,              # norm_inputs gamma/beta (default LN init)
        p["bq"],
        ones, zeros,              # norm_slots gamma/beta
        ones, zeros,              # norm_mlp gamma/beta
        p["b1"], p["b2"],
    ], axis=0)                                               # (11, D)

    # Fused GRU weight (2D, 4D): rows = [updates ; slots],
    # cols = [ r/z pre-act (summed) | gi_n | gh_n ].
    W_gi = p["W_ih"].T                                       # (D, 3D) cols r|z|n
    W_gh = p["W_hh"].T                                       # (D, 3D) cols r|z|n
    Z = jnp.zeros((D, D), jnp.float32)
    w_g = jnp.concatenate([
        jnp.concatenate([W_gi[:, :2 * D], W_gi[:, 2 * D:], Z], axis=1),
        jnp.concatenate([W_gh[:, :2 * D], Z, W_gh[:, 2 * D:]], axis=1),
    ], axis=0)                                               # (2D, 4D)
    b_g = jnp.concatenate([
        p["b_ih"][:2 * D] + p["b_hh"][:2 * D],               # r/z biases summed
        p["b_ih"][2 * D:],                                   # b_in
        p["b_hh"][2 * D:],                                   # b_hn
    ])[None, :]                                              # (1, 4D)

    return dict(
        w_kv=jnp.concatenate([p["Wk"].T, p["Wv"].T], axis=1),  # (D, 2D)
        w_q=p["Wq"].T,                                         # (D, D)
        w_g=w_g,
        w_m1=p["W1"].T, w_m2=p["W2"].T,
        vecs=vecs,
        b_kv=jnp.concatenate([p["bk"], p["bv"]])[None, :],     # (1, 2D)
        b_g=b_g,
    )


# ------------------- pure-JAX reference (mirrors the PyTorch forward) --------
def slot_attention_ref(x, noise, p, *, iters):
    B, N, D = x.shape

    def ln(z, g, b, eps=1e-5):
        m = jnp.mean(z, -1, keepdims=True)
        va = jnp.mean((z - m) ** 2, -1, keepdims=True)
        return (z - m) / jnp.sqrt(va + eps) * g + b

    ones, zeros = jnp.ones((D,)), jnp.zeros((D,))
    slots = p["slot_mu"] + jnp.exp(p["slot_sigma"]) * noise
    xn = ln(x, ones, zeros)
    k = xn @ p["Wk"].T + p["bk"]
    v = xn @ p["Wv"].T + p["bv"]
    W_ir, W_iz, W_in = jnp.split(p["W_ih"], 3, axis=0)
    W_hr, W_hz, W_hn = jnp.split(p["W_hh"], 3, axis=0)
    b_ir, b_iz, b_in = jnp.split(p["b_ih"], 3)
    b_hr, b_hz, b_hn = jnp.split(p["b_hh"], 3)
    for _ in range(iters):
        sn = ln(slots, ones, zeros)
        q = sn @ p["Wq"].T + p["bq"]
        attn = jax.nn.softmax(jnp.einsum('bsd,bnd->bsn', q, k), axis=-1)
        upd = jnp.einsum('bnd,bsn->bsd', v, attn)
        r = jax.nn.sigmoid(upd @ W_ir.T + b_ir + slots @ W_hr.T + b_hr)
        zg = jax.nn.sigmoid(upd @ W_iz.T + b_iz + slots @ W_hz.T + b_hz)
        n = jnp.tanh(upd @ W_in.T + b_in + r * (slots @ W_hn.T + b_hn))
        slots = (1.0 - zg) * n + zg * slots
        sm = ln(slots, ones, zeros)
        slots = slots + jnp.maximum(sm @ p["W1"].T + p["b1"], 0.0) @ p["W2"].T + p["b2"]
    return slots


if __name__ == "__main__":
    # Small shapes consistent with the module's forward: x (B, N, D).
    B, N, D = 8, 16, 32
    NUM_SLOTS, ITERS = 8, 3

    key = jax.random.PRNGKey(0)
    ks = jax.random.split(key, 20)

    x = jax.random.normal(ks[0], (B, N, D), jnp.float32)
    # randn_like(mu) noise is supplied explicitly (deterministic) so the kernel
    # matches the module's stochastic slot init semantics exactly.
    noise = jax.random.normal(ks[1], (B, NUM_SLOTS, D), jnp.float32)

    def w(k, shape, scale=0.1):
        return jax.random.normal(k, shape, jnp.float32) * scale

    # PyTorch-layout parameters (Linear weight is (out, in); GRU weight_ih /
    # weight_hh are (3D, D) with gate order r, z, n).
    raw = dict(
        slot_mu=jax.random.normal(ks[2], (D,), jnp.float32),
        slot_sigma=jax.random.normal(ks[3], (D,), jnp.float32),
        Wk=w(ks[4], (D, D)), bk=w(ks[5], (D,)),
        Wv=w(ks[6], (D, D)), bv=w(ks[7], (D,)),
        Wq=w(ks[8], (D, D)), bq=w(ks[9], (D,)),
        W_ih=w(ks[10], (3 * D, D)), b_ih=w(ks[11], (3 * D,)),
        W_hh=w(ks[12], (3 * D, D)), b_hh=w(ks[13], (3 * D,)),
        W1=w(ks[14], (D, D)), b1=w(ks[15], (D,)),
        W2=w(ks[16], (D, D)), b2=w(ks[17], (D,)),
    )
    params = pack_params(raw, D)

    out = slot_attention_pallas(x, noise, params, iters=ITERS)
    out = jax.block_until_ready(out)

    ref = slot_attention_ref(x, noise, raw, iters=ITERS)
    assert out.shape == (B, NUM_SLOTS, D)
    max_diff = jnp.max(jnp.abs(out - ref))
    assert jnp.allclose(out, ref, atol=1e-3, rtol=1e-3), \
        f"max abs diff {max_diff}"
    print("KERNEL_OK")
</pallas_src>

<mosaic_0001>
module attributes {stable_mosaic.version = 11 : i64} {
  func.func @slot_attention_kernel(%arg0: i32, %arg1: memref<128x32xf32, #tpu.memory_space<vmem>>, %arg2: memref<64x32xf32, #tpu.memory_space<vmem>>, %arg3: memref<32x64xf32, #tpu.memory_space<vmem>>, %arg4: memref<32x32xf32, #tpu.memory_space<vmem>>, %arg5: memref<64x128xf32, #tpu.memory_space<vmem>>, %arg6: memref<32x32xf32, #tpu.memory_space<vmem>>, %arg7: memref<32x32xf32, #tpu.memory_space<vmem>>, %arg8: memref<11x32xf32, #tpu.memory_space<vmem>>, %arg9: memref<1x64xf32, #tpu.memory_space<vmem>>, %arg10: memref<1x128xf32, #tpu.memory_space<vmem>>, %arg11: memref<64x32xf32, #tpu.memory_space<vmem>>) attributes {dimension_semantics = [#tpu.dimension_semantics<parallel>], iteration_bounds = array<i64: 1>, scalar_prefetch = 0 : i64, scratch_operands = 0 : i64, tpu.core_type = #tpu.core_type<tc>, window_params = [{transform_indices = @transform_0, window_bounds = array<i64: 128, 32>}, {transform_indices = @transform_1, window_bounds = array<i64: 64, 32>}, {pipeline_mode = #tpu.pipeline_mode<synchronous>, transform_indices = @transform_2, window_bounds = array<i64: 32, 64>}, {pipeline_mode = #tpu.pipeline_mode<synchronous>, transform_indices = @transform_3, window_bounds = array<i64: 32, 32>}, {pipeline_mode = #tpu.pipeline_mode<synchronous>, transform_indices = @transform_4, window_bounds = array<i64: 64, 128>}, {pipeline_mode = #tpu.pipeline_mode<synchronous>, transform_indices = @transform_5, window_bounds = array<i64: 32, 32>}, {pipeline_mode = #tpu.pipeline_mode<synchronous>, transform_indices = @transform_6, window_bounds = array<i64: 32, 32>}, {pipeline_mode = #tpu.pipeline_mode<synchronous>, transform_indices = @transform_7, window_bounds = array<i64: 11, 32>}, {pipeline_mode = #tpu.pipeline_mode<synchronous>, transform_indices = @transform_8, window_bounds = array<i64: 1, 64>}, {pipeline_mode = #tpu.pipeline_mode<synchronous>, transform_indices = @transform_9, window_bounds = array<i64: 1, 128>}, {transform_indices = @transform_10, window_bounds = array<i64: 64, 32>}]} {
    %c0 = arith.constant 0 : index
    %c0_0 = arith.constant 0 : index
    %0 = vector.load %arg8[%c0, %c0_0] : memref<11x32xf32, #tpu.memory_space<vmem>>, vector<1x32xf32>
    %c1 = arith.constant 1 : index
    %c0_1 = arith.constant 0 : index
    %1 = vector.load %arg8[%c1, %c0_1] : memref<11x32xf32, #tpu.memory_space<vmem>>, vector<1x32xf32>
    %c0_2 = arith.constant 0 : index
    %c0_3 = arith.constant 0 : index
    %2 = vector.load %arg2[%c0_2, %c0_3] : memref<64x32xf32, #tpu.memory_space<vmem>>, vector<64x32xf32>
    %3 = vector.broadcast %1 : vector<1x32xf32> to vector<64x32xf32>
    %4 = arith.mulf %3, %2 : vector<64x32xf32>
    %5 = vector.broadcast %0 : vector<1x32xf32> to vector<64x32xf32>
    %6 = arith.addf %5, %4 : vector<64x32xf32>
    %c0_4 = arith.constant 0 : index
    %c0_5 = arith.constant 0 : index
    %7 = vector.load %arg1[%c0_4, %c0_5] : memref<128x32xf32, #tpu.memory_space<vmem>>, vector<128x32xf32>
    %c2 = arith.constant 2 : index
    %c0_6 = arith.constant 0 : index
    %8 = vector.load %arg8[%c2, %c0_6] : memref<11x32xf32, #tpu.memory_space<vmem>>, vector<1x32xf32>
    %c3 = arith.constant 3 : index
    %c0_7 = arith.constant 0 : index
    %9 = vector.load %arg8[%c3, %c0_7] : memref<11x32xf32, #tpu.memory_space<vmem>>, vector<1x32xf32>
    %cst = arith.constant dense<0.000000e+00> : vector<128xf32>
    %10 = vector.multi_reduction <add>, %7, %cst [1] : vector<128x32xf32> to vector<128xf32>
    %11 = vector.shape_cast %10 : vector<128xf32> to vector<128x1xf32>
    %cst_8 = arith.constant 3.200000e+01 : f32
    %12 = vector.broadcast %cst_8 : f32 to vector<128x1xf32>
    %13 = arith.divf %11, %12 : vector<128x1xf32>
    %14 = vector.broadcast %13 : vector<128x1xf32> to vector<128x32xf32>
    %15 = arith.subf %7, %14 : vector<128x32xf32>
    %16 = arith.mulf %15, %15 : vector<128x32xf32>
    %cst_9 = arith.constant dense<0.000000e+00> : vector<128xf32>
    %17 = vector.multi_reduction <add>, %16, %cst_9 [1] : vector<128x32xf32> to vector<128xf32>
    %18 = vector.shape_cast %17 : vector<128xf32> to vector<128x1xf32>
    %cst_10 = arith.constant 3.200000e+01 : f32
    %19 = vector.broadcast %cst_10 : f32 to vector<128x1xf32>
    %20 = arith.divf %18, %19 : vector<128x1xf32>
    %21 = vector.broadcast %13 : vector<128x1xf32> to vector<128x32xf32>
    %22 = arith.subf %7, %21 : vector<128x32xf32>
    %cst_11 = arith.constant 9.99999974E-6 : f32
    %23 = vector.broadcast %cst_11 : f32 to vector<128x1xf32>
    %24 = arith.addf %20, %23 : vector<128x1xf32>
    %25 = math.rsqrt %24 : vector<128x1xf32>
    %26 = vector.broadcast %25 : vector<128x1xf32> to vector<128x32xf32>
    %27 = arith.mulf %22, %26 : vector<128x32xf32>
    %28 = vector.broadcast %8 : vector<1x32xf32> to vector<128x32xf32>
    %29 = arith.mulf %27, %28 : vector<128x32xf32>
    %30 = vector.broadcast %9 : vector<1x32xf32> to vector<128x32xf32>
    %31 = arith.addf %29, %30 : vector<128x32xf32>
    %c0_12 = arith.constant 0 : index
    %c0_13 = arith.constant 0 : index
    %32 = vector.load %arg3[%c0_12, %c0_13] : memref<32x64xf32, #tpu.memory_space<vmem>>, vector<32x64xf32>
    %cst_14 = arith.constant dense<0.000000e+00> : vector<128x64xf32>
    %33 = tpu.matmul %31, %32, %cst_14 {dimension_numbers = #tpu.dot_dimension_numbers<[1], [0], [0], [1], [0, 0, 1, 1], [], []>} : vector<128x32xf32>, vector<32x64xf32>, vector<128x64xf32> -> vector<128x64xf32>
    %c0_15 = arith.constant 0 : index
    %c0_16 = arith.constant 0 : index
    %34 = vector.load %arg9[%c0_15, %c0_16] : memref<1x64xf32, #tpu.memory_space<vmem>>, vector<1x64xf32>
    %35 = vector.broadcast %34 : vector<1x64xf32> to vector<128x64xf32>
    %36 = arith.addf %33, %35 : vector<128x64xf32>
    %37 = vector.extract_strided_slice %36 {offsets = [0, 0], sizes = [128, 32], strides = [1, 1]} : vector<128x64xf32> to vector<128x32xf32>
    %38 = vector.shape_cast %37 : vector<128x32xf32> to vector<8x16x32xf32>
    %39 = vector.extract_strided_slice %36 {offsets = [0, 32], sizes = [128, 32], strides = [1, 1]} : vector<128x64xf32> to vector<128x32xf32>
    %40 = vector.shape_cast %39 : vector<128x32xf32> to vector<8x16x32xf32>
    %c4 = arith.constant 4 : index
    %c0_17 = arith.constant 0 : index
    %41 = vector.load %arg8[%c4, %c0_17] : memref<11x32xf32, #tpu.memory_space<vmem>>, vector<1x32xf32>
    %c5 = arith.constant 5 : index
    %c0_18 = arith.constant 0 : index
    %42 = vector.load %arg8[%c5, %c0_18] : memref<11x32xf32, #tpu.memory_space<vmem>>, vector<1x32xf32>
    %c6 = arith.constant 6 : index
    %c0_19 = arith.constant 0 : index
    %43 = vector.load %arg8[%c6, %c0_19] : memref<11x32xf32, #tpu.memory_space<vmem>>, vector<1x32xf32>
    %c7 = arith.constant 7 : index
    %c0_20 = arith.constant 0 : index
    %44 = vector.load %arg8[%c7, %c0_20] : memref<11x32xf32, #tpu.memory_space<vmem>>, vector<1x32xf32>
    %c8 = arith.constant 8 : index
    %c0_21 = arith.constant 0 : index
    %45 = vector.load %arg8[%c8, %c0_21] : memref<11x32xf32, #tpu.memory_space<vmem>>, vector<1x32xf32>
    %c9 = arith.constant 9 : index
    %c0_22 = arith.constant 0 : index
    %46 = vector.load %arg8[%c9, %c0_22] : memref<11x32xf32, #tpu.memory_space<vmem>>, vector<1x32xf32>
    %c10 = arith.constant 10 : index
    %c0_23 = arith.constant 0 : index
    %47 = vector.load %arg8[%c10, %c0_23] : memref<11x32xf32, #tpu.memory_space<vmem>>, vector<1x32xf32>
    %c0_24 = arith.constant 0 : index
    %c0_25 = arith.constant 0 : index
    %48 = vector.load %arg10[%c0_24, %c0_25] : memref<1x128xf32, #tpu.memory_space<vmem>>, vector<1x128xf32>
    %cst_26 = arith.constant dense<0.000000e+00> : vector<64xf32>
    %49 = vector.multi_reduction <add>, %6, %cst_26 [1] : vector<64x32xf32> to vector<64xf32>
    %50 = vector.shape_cast %49 : vector<64xf32> to vector<64x1xf32>
    %cst_27 = arith.constant 3.200000e+01 : f32
    %51 = vector.broadcast %cst_27 : f32 to vector<64x1xf32>
    %52 = arith.divf %50, %51 : vector<64x1xf32>
    %53 = vector.broadcast %52 : vector<64x1xf32> to vector<64x32xf32>
    %54 = arith.subf %6, %53 : vector<64x32xf32>
    %55 = arith.mulf %54, %54 : vector<64x32xf32>
    %cst_28 = arith.constant dense<0.000000e+00> : vector<64xf32>
    %56 = vector.multi_reduction <add>, %55, %cst_28 [1] : vector<64x32xf32> to vector<64xf32>
    %57 = vector.shape_cast %56 : vector<64xf32> to vector<64x1xf32>
    %cst_29 = arith.constant 3.200000e+01 : f32
    %58 = vector.broadcast %cst_29 : f32 to vector<64x1xf32>
    %59 = arith.divf %57, %58 : vector<64x1xf32>
    %60 = vector.broadcast %52 : vector<64x1xf32> to vector<64x32xf32>
    %61 = arith.subf %6, %60 : vector<64x32xf32>
    %cst_30 = arith.constant 9.99999974E-6 : f32
    %62 = vector.broadcast %cst_30 : f32 to vector<64x1xf32>
    %63 = arith.addf %59, %62 : vector<64x1xf32>
    %64 = math.rsqrt %63 : vector<64x1xf32>
    %65 = vector.broadcast %64 : vector<64x1xf32> to vector<64x32xf32>
    %66 = arith.mulf %61, %65 : vector<64x32xf32>
    %67 = vector.broadcast %42 : vector<1x32xf32> to vector<64x32xf32>
    %68 = arith.mulf %66, %67 : vector<64x32xf32>
    %69 = vector.broadcast %43 : vector<1x32xf32> to vector<64x32xf32>
    %70 = arith.addf %68, %69 : vector<64x32xf32>
    %c0_31 = arith.constant 0 : index
    %c0_32 = arith.constant 0 : index
    %71 = vector.load %arg4[%c0_31, %c0_32] : memref<32x32xf32, #tpu.memory_space<vmem>>, vector<32x32xf32>
    %cst_33 = arith.constant dense<0.000000e+00> : vector<64x32xf32>
    %72 = tpu.matmul %70, %71, %cst_33 {dimension_numbers = #tpu.dot_dimension_numbers<[1], [0], [0], [1], [0, 0, 1, 1], [], []>} : vector<64x32xf32>, vector<32x32xf32>, vector<64x32xf32> -> vector<64x32xf32>
    %73 = vector.broadcast %41 : vector<1x32xf32> to vector<64x32xf32>
    %74 = arith.addf %72, %73 : vector<64x32xf32>
    %75 = vector.shape_cast %74 : vector<64x32xf32> to vector<8x8x32xf32>
    %cst_34 = arith.constant dense<0.000000e+00> : vector<8x8x16xf32>
    %76 = tpu.matmul %75, %38, %cst_34 {dimension_numbers = #tpu.dot_dimension_numbers<[2], [2], [1], [1], [0, 0, 0, 1, 1, 1], [0], [0]>} : vector<8x8x32xf32>, vector<8x16x32xf32>, vector<8x8x16xf32> -> vector<8x8x16xf32>
    %cst_35 = arith.constant dense<0xFF800000> : vector<8x8xf32>
    %77 = vector.multi_reduction <maximumf>, %76, %cst_35 [2] : vector<8x8x16xf32> to vector<8x8xf32>
    %78 = vector.shape_cast %77 : vector<8x8xf32> to vector<8x8x1xf32>
    %79 = vector.broadcast %78 : vector<8x8x1xf32> to vector<8x8x16xf32>
    %80 = arith.subf %76, %79 : vector<8x8x16xf32>
    %81 = math.exp %80 : vector<8x8x16xf32>
    %cst_36 = arith.constant dense<0.000000e+00> : vector<8x8xf32>
    %82 = vector.multi_reduction <add>, %81, %cst_36 [2] : vector<8x8x16xf32> to vector<8x8xf32>
    %83 = vector.shape_cast %82 : vector<8x8xf32> to vector<8x8x1xf32>
    %84 = vector.broadcast %83 : vector<8x8x1xf32> to vector<8x8x16xf32>
    %85 = arith.divf %81, %84 : vector<8x8x16xf32>
    %cst_37 = arith.constant dense<0.000000e+00> : vector<8x8x32xf32>
    %86 = tpu.matmul %85, %40, %cst_37 {dimension_numbers = #tpu.dot_dimension_numbers<[2], [1], [1], [2], [0, 0, 0, 1, 1, 2], [0], [0]>} : vector<8x8x16xf32>, vector<8x16x32xf32>, vector<8x8x32xf32> -> vector<8x8x32xf32>
    %87 = vector.shape_cast %86 : vector<8x8x32xf32> to vector<64x32xf32>
    %88 = tpu.concatenate %87, %6 in 1 : vector<64x32xf32>, vector<64x32xf32> -> vector<64x64xf32>
    %c0_38 = arith.constant 0 : index
    %c0_39 = arith.constant 0 : index
    %89 = vector.load %arg5[%c0_38, %c0_39] : memref<64x128xf32, #tpu.memory_space<vmem>>, vector<64x128xf32>
    %cst_40 = arith.constant dense<0.000000e+00> : vector<64x128xf32>
    %90 = tpu.matmul %88, %89, %cst_40 {dimension_numbers = #tpu.dot_dimension_numbers<[1], [0], [0], [1], [0, 0, 1, 1], [], []>} : vector<64x64xf32>, vector<64x128xf32>, vector<64x128xf32> -> vector<64x128xf32>
    %91 = vector.broadcast %48 : vector<1x128xf32> to vector<64x128xf32>
    %92 = arith.addf %90, %91 : vector<64x128xf32>
    %93 = vector.extract_strided_slice %92 {offsets = [0, 0], sizes = [64, 64], strides = [1, 1]} : vector<64x128xf32> to vector<64x64xf32>
    %94 = arith.negf %93 : vector<64x64xf32>
    %95 = math.exp %94 : vector<64x64xf32>
    %cst_41 = arith.constant 1.000000e+00 : f32
    %96 = vector.broadcast %cst_41 : f32 to vector<64x64xf32>
    %97 = arith.addf %96, %95 : vector<64x64xf32>
    %98 = arith.divf %96, %97 : vector<64x64xf32>
    %99 = vector.extract_strided_slice %98 {offsets = [0, 0], sizes = [64, 32], strides = [1, 1]} : vector<64x64xf32> to vector<64x32xf32>
    %100 = vector.extract_strided_slice %98 {offsets = [0, 32], sizes = [64, 32], strides = [1, 1]} : vector<64x64xf32> to vector<64x32xf32>
    %101 = vector.extract_strided_slice %92 {offsets = [0, 64], sizes = [64, 32], strides = [1, 1]} : vector<64x128xf32> to vector<64x32xf32>
    %102 = vector.extract_strided_slice %92 {offsets = [0, 96], sizes = [64, 32], strides = [1, 1]} : vector<64x128xf32> to vector<64x32xf32>
    %103 = arith.mulf %99, %102 : vector<64x32xf32>
    %104 = arith.addf %101, %103 : vector<64x32xf32>
    %105 = math.tanh %104 : vector<64x32xf32>
    %cst_42 = arith.constant 1.000000e+00 : f32
    %106 = vector.broadcast %cst_42 : f32 to vector<64x32xf32>
    %107 = arith.subf %106, %100 : vector<64x32xf32>
    %108 = arith.mulf %107, %105 : vector<64x32xf32>
    %109 = arith.mulf %100, %6 : vector<64x32xf32>
    %110 = arith.addf %108, %109 : vector<64x32xf32>
    %cst_43 = arith.constant dense<0.000000e+00> : vector<64xf32>
    %111 = vector.multi_reduction <add>, %110, %cst_43 [1] : vector<64x32xf32> to vector<64xf32>
    %112 = vector.shape_cast %111 : vector<64xf32> to vector<64x1xf32>
    %cst_44 = arith.constant 3.200000e+01 : f32
    %113 = vector.broadcast %cst_44 : f32 to vector<64x1xf32>
    %114 = arith.divf %112, %113 : vector<64x1xf32>
    %115 = vector.broadcast %114 : vector<64x1xf32> to vector<64x32xf32>
    %116 = arith.subf %110, %115 : vector<64x32xf32>
    %117 = arith.mulf %116, %116 : vector<64x32xf32>
    %cst_45 = arith.constant dense<0.000000e+00> : vector<64xf32>
    %118 = vector.multi_reduction <add>, %117, %cst_45 [1] : vector<64x32xf32> to vector<64xf32>
    %119 = vector.shape_cast %118 : vector<64xf32> to vector<64x1xf32>
    %cst_46 = arith.constant 3.200000e+01 : f32
    %120 = vector.broadcast %cst_46 : f32 to vector<64x1xf32>
    %121 = arith.divf %119, %120 : vector<64x1xf32>
    %122 = vector.broadcast %114 : vector<64x1xf32> to vector<64x32xf32>
    %123 = arith.subf %110, %122 : vector<64x32xf32>
    %cst_47 = arith.constant 9.99999974E-6 : f32
    %124 = vector.broadcast %cst_47 : f32 to vector<64x1xf32>
    %125 = arith.addf %121, %124 : vector<64x1xf32>
    %126 = math.rsqrt %125 : vector<64x1xf32>
    %127 = vector.broadcast %126 : vector<64x1xf32> to vector<64x32xf32>
    %128 = arith.mulf %123, %127 : vector<64x32xf32>
    %129 = vector.broadcast %44 : vector<1x32xf32> to vector<64x32xf32>
    %130 = arith.mulf %128, %129 : vector<64x32xf32>
    %131 = vector.broadcast %45 : vector<1x32xf32> to vector<64x32xf32>
    %132 = arith.addf %130, %131 : vector<64x32xf32>
    %c0_48 = arith.constant 0 : index
    %c0_49 = arith.constant 0 : index
    %133 = vector.load %arg6[%c0_48, %c0_49] : memref<32x32xf32, #tpu.memory_space<vmem>>, vector<32x32xf32>
    %cst_50 = arith.constant dense<0.000000e+00> : vector<64x32xf32>
    %134 = tpu.matmul %132, %133, %cst_50 {dimension_numbers = #tpu.dot_dimension_numbers<[1], [0], [0], [1], [0, 0, 1, 1], [], []>} : vector<64x32xf32>, vector<32x32xf32>, vector<64x32xf32> -> vector<64x32xf32>
    %135 = vector.broadcast %46 : vector<1x32xf32> to vector<64x32xf32>
    %136 = arith.addf %134, %135 : vector<64x32xf32>
    %cst_51 = arith.constant 0.000000e+00 : f32
    %137 = vector.broadcast %cst_51 : f32 to vector<64x32xf32>
    %138 = arith.maximumf %136, %137 : vector<64x32xf32>
    %c0_52 = arith.constant 0 : index
    %c0_53 = arith.constant 0 : index
    %139 = vector.load %arg7[%c0_52, %c0_53] : memref<32x32xf32, #tpu.memory_space<vmem>>, vector<32x32xf32>
    %cst_54 = arith.constant dense<0.000000e+00> : vector<64x32xf32>
    %140 = tpu.matmul %138, %139, %cst_54 {dimension_numbers = #tpu.dot_dimension_numbers<[1], [0], [0], [1], [0, 0, 1, 1], [], []>} : vector<64x32xf32>, vector<32x32xf32>, vector<64x32xf32> -> vector<64x32xf32>
    %141 = vector.broadcast %47 : vector<1x32xf32> to vector<64x32xf32>
    %142 = arith.addf %140, %141 : vector<64x32xf32>
    %143 = arith.addf %110, %142 : vector<64x32xf32>
    %cst_55 = arith.constant dense<0.000000e+00> : vector<64xf32>
    %144 = vector.multi_reduction <add>, %143, %cst_55 [1] : vector<64x32xf32> to vector<64xf32>
    %145 = vector.shape_cast %144 : vector<64xf32> to vector<64x1xf32>
    %cst_56 = arith.constant 3.200000e+01 : f32
    %146 = vector.broadcast %cst_56 : f32 to vector<64x1xf32>
    %147 = arith.divf %145, %146 : vector<64x1xf32>
    %148 = vector.broadcast %147 : vector<64x1xf32> to vector<64x32xf32>
    %149 = arith.subf %143, %148 : vector<64x32xf32>
    %150 = arith.mulf %149, %149 : vector<64x32xf32>
    %cst_57 = arith.constant dense<0.000000e+00> : vector<64xf32>
    %151 = vector.multi_reduction <add>, %150, %cst_57 [1] : vector<64x32xf32> to vector<64xf32>
    %152 = vector.shape_cast %151 : vector<64xf32> to vector<64x1xf32>
    %cst_58 = arith.constant 3.200000e+01 : f32
    %153 = vector.broadcast %cst_58 : f32 to vector<64x1xf32>
    %154 = arith.divf %152, %153 : vector<64x1xf32>
    %155 = vector.broadcast %147 : vector<64x1xf32> to vector<64x32xf32>
    %156 = arith.subf %143, %155 : vector<64x32xf32>
    %cst_59 = arith.constant 9.99999974E-6 : f32
    %157 = vector.broadcast %cst_59 : f32 to vector<64x1xf32>
    %158 = arith.addf %154, %157 : vector<64x1xf32>
    %159 = math.rsqrt %158 : vector<64x1xf32>
    %160 = vector.broadcast %159 : vector<64x1xf32> to vector<64x32xf32>
    %161 = arith.mulf %156, %160 : vector<64x32xf32>
    %162 = vector.broadcast %42 : vector<1x32xf32> to vector<64x32xf32>
    %163 = arith.mulf %161, %162 : vector<64x32xf32>
    %164 = vector.broadcast %43 : vector<1x32xf32> to vector<64x32xf32>
    %165 = arith.addf %163, %164 : vector<64x32xf32>
    %c0_60 = arith.constant 0 : index
    %c0_61 = arith.constant 0 : index
    %166 = vector.load %arg4[%c0_60, %c0_61] : memref<32x32xf32, #tpu.memory_space<vmem>>, vector<32x32xf32>
    %cst_62 = arith.constant dense<0.000000e+00> : vector<64x32xf32>
    %167 = tpu.matmul %165, %166, %cst_62 {dimension_numbers = #tpu.dot_dimension_numbers<[1], [0], [0], [1], [0, 0, 1, 1], [], []>} : vector<64x32xf32>, vector<32x32xf32>, vector<64x32xf32> -> vector<64x32xf32>
    %168 = vector.broadcast %41 : vector<1x32xf32> to vector<64x32xf32>
    %169 = arith.addf %167, %168 : vector<64x32xf32>
    %170 = vector.shape_cast %169 : vector<64x32xf32> to vector<8x8x32xf32>
    %cst_63 = arith.constant dense<0.000000e+00> : vector<8x8x16xf32>
    %171 = tpu.matmul %170, %38, %cst_63 {dimension_numbers = #tpu.dot_dimension_numbers<[2], [2], [1], [1], [0, 0, 0, 1, 1, 1], [0], [0]>} : vector<8x8x32xf32>, vector<8x16x32xf32>, vector<8x8x16xf32> -> vector<8x8x16xf32>
    %cst_64 = arith.constant dense<0xFF800000> : vector<8x8xf32>
    %172 = vector.multi_reduction <maximumf>, %171, %cst_64 [2] : vector<8x8x16xf32> to vector<8x8xf32>
    %173 = vector.shape_cast %172 : vector<8x8xf32> to vector<8x8x1xf32>
    %174 = vector.broadcast %173 : vector<8x8x1xf32> to vector<8x8x16xf32>
    %175 = arith.subf %171, %174 : vector<8x8x16xf32>
    %176 = math.exp %175 : vector<8x8x16xf32>
    %cst_65 = arith.constant dense<0.000000e+00> : vector<8x8xf32>
    %177 = vector.multi_reduction <add>, %176, %cst_65 [2] : vector<8x8x16xf32> to vector<8x8xf32>
    %178 = vector.shape_cast %177 : vector<8x8xf32> to vector<8x8x1xf32>
    %179 = vector.broadcast %178 : vector<8x8x1xf32> to vector<8x8x16xf32>
    %180 = arith.divf %176, %179 : vector<8x8x16xf32>
    %cst_66 = arith.constant dense<0.000000e+00> : vector<8x8x32xf32>
    %181 = tpu.matmul %180, %40, %cst_66 {dimension_numbers = #tpu.dot_dimension_numbers<[2], [1], [1], [2], [0, 0, 0, 1, 1, 2], [0], [0]>} : vector<8x8x16xf32>, vector<8x16x32xf32>, vector<8x8x32xf32> -> vector<8x8x32xf32>
    %182 = vector.shape_cast %181 : vector<8x8x32xf32> to vector<64x32xf32>
    %183 = tpu.concatenate %182, %143 in 1 : vector<64x32xf32>, vector<64x32xf32> -> vector<64x64xf32>
    %c0_67 = arith.constant 0 : index
    %c0_68 = arith.constant 0 : index
    %184 = vector.load %arg5[%c0_67, %c0_68] : memref<64x128xf32, #tpu.memory_space<vmem>>, vector<64x128xf32>
    %cst_69 = arith.constant dense<0.000000e+00> : vector<64x128xf32>
    %185 = tpu.matmul %183, %184, %cst_69 {dimension_numbers = #tpu.dot_dimension_numbers<[1], [0], [0], [1], [0, 0, 1, 1], [], []>} : vector<64x64xf32>, vector<64x128xf32>, vector<64x128xf32> -> vector<64x128xf32>
    %186 = vector.broadcast %48 : vector<1x128xf32> to vector<64x128xf32>
    %187 = arith.addf %185, %186 : vector<64x128xf32>
    %188 = vector.extract_strided_slice %187 {offsets = [0, 0], sizes = [64, 64], strides = [1, 1]} : vector<64x128xf32> to vector<64x64xf32>
    %189 = arith.negf %188 : vector<64x64xf32>
    %190 = math.exp %189 : vector<64x64xf32>
    %cst_70 = arith.constant 1.000000e+00 : f32
    %191 = vector.broadcast %cst_70 : f32 to vector<64x64xf32>
    %192 = arith.addf %191, %190 : vector<64x64xf32>
    %193 = arith.divf %191, %192 : vector<64x64xf32>
    %194 = vector.extract_strided_slice %193 {offsets = [0, 0], sizes = [64, 32], strides = [1, 1]} : vector<64x64xf32> to vector<64x32xf32>
    %195 = vector.extract_strided_slice %193 {offsets = [0, 32], sizes = [64, 32], strides = [1, 1]} : vector<64x64xf32> to vector<64x32xf32>
    %196 = vector.extract_strided_slice %187 {offsets = [0, 64], sizes = [64, 32], strides = [1, 1]} : vector<64x128xf32> to vector<64x32xf32>
    %197 = vector.extract_strided_slice %187 {offsets = [0, 96], sizes = [64, 32], strides = [1, 1]} : vector<64x128xf32> to vector<64x32xf32>
    %198 = arith.mulf %194, %197 : vector<64x32xf32>
    %199 = arith.addf %196, %198 : vector<64x32xf32>
    %200 = math.tanh %199 : vector<64x32xf32>
    %cst_71 = arith.constant 1.000000e+00 : f32
    %201 = vector.broadcast %cst_71 : f32 to vector<64x32xf32>
    %202 = arith.subf %201, %195 : vector<64x32xf32>
    %203 = arith.mulf %202, %200 : vector<64x32xf32>
    %204 = arith.mulf %195, %143 : vector<64x32xf32>
    %205 = arith.addf %203, %204 : vector<64x32xf32>
    %cst_72 = arith.constant dense<0.000000e+00> : vector<64xf32>
    %206 = vector.multi_reduction <add>, %205, %cst_72 [1] : vector<64x32xf32> to vector<64xf32>
    %207 = vector.shape_cast %206 : vector<64xf32> to vector<64x1xf32>
    %cst_73 = arith.constant 3.200000e+01 : f32
    %208 = vector.broadcast %cst_73 : f32 to vector<64x1xf32>
    %209 = arith.divf %207, %208 : vector<64x1xf32>
    %210 = vector.broadcast %209 : vector<64x1xf32> to vector<64x32xf32>
    %211 = arith.subf %205, %210 : vector<64x32xf32>
    %212 = arith.mulf %211, %211 : vector<64x32xf32>
    %cst_74 = arith.constant dense<0.000000e+00> : vector<64xf32>
    %213 = vector.multi_reduction <add>, %212, %cst_74 [1] : vector<64x32xf32> to vector<64xf32>
    %214 = vector.shape_cast %213 : vector<64xf32> to vector<64x1xf32>
    %cst_75 = arith.constant 3.200000e+01 : f32
    %215 = vector.broadcast %cst_75 : f32 to vector<64x1xf32>
    %216 = arith.divf %214, %215 : vector<64x1xf32>
    %217 = vector.broadcast %209 : vector<64x1xf32> to vector<64x32xf32>
    %218 = arith.subf %205, %217 : vector<64x32xf32>
    %cst_76 = arith.constant 9.99999974E-6 : f32
    %219 = vector.broadcast %cst_76 : f32 to vector<64x1xf32>
    %220 = arith.addf %216, %219 : vector<64x1xf32>
    %221 = math.rsqrt %220 : vector<64x1xf32>
    %222 = vector.broadcast %221 : vector<64x1xf32> to vector<64x32xf32>
    %223 = arith.mulf %218, %222 : vector<64x32xf32>
    %224 = vector.broadcast %44 : vector<1x32xf32> to vector<64x32xf32>
    %225 = arith.mulf %223, %224 : vector<64x32xf32>
    %226 = vector.broadcast %45 : vector<1x32xf32> to vector<64x32xf32>
    %227 = arith.addf %225, %226 : vector<64x32xf32>
    %c0_77 = arith.constant 0 : index
    %c0_78 = arith.constant 0 : index
    %228 = vector.load %arg6[%c0_77, %c0_78] : memref<32x32xf32, #tpu.memory_space<vmem>>, vector<32x32xf32>
    %cst_79 = arith.constant dense<0.000000e+00> : vector<64x32xf32>
    %229 = tpu.matmul %227, %228, %cst_79 {dimension_numbers = #tpu.dot_dimension_numbers<[1], [0], [0], [1], [0, 0, 1, 1], [], []>} : vector<64x32xf32>, vector<32x32xf32>, vector<64x32xf32> -> vector<64x32xf32>
    %230 = vector.broadcast %46 : vector<1x32xf32> to vector<64x32xf32>
    %231 = arith.addf %229, %230 : vector<64x32xf32>
    %cst_80 = arith.constant 0.000000e+00 : f32
    %232 = vector.broadcast %cst_80 : f32 to vector<64x32xf32>
    %233 = arith.maximumf %231, %232 : vector<64x32xf32>
    %c0_81 = arith.constant 0 : index
    %c0_82 = arith.constant 0 : index
    %234 = vector.load %arg7[%c0_81, %c0_82] : memref<32x32xf32, #tpu.memory_space<vmem>>, vector<32x32xf32>
    %cst_83 = arith.constant dense<0.000000e+00> : vector<64x32xf32>
    %235 = tpu.matmul %233, %234, %cst_83 {dimension_numbers = #tpu.dot_dimension_numbers<[1], [0], [0], [1], [0, 0, 1, 1], [], []>} : vector<64x32xf32>, vector<32x32xf32>, vector<64x32xf32> -> vector<64x32xf32>
    %236 = vector.broadcast %47 : vector<1x32xf32> to vector<64x32xf32>
    %237 = arith.addf %235, %236 : vector<64x32xf32>
    %238 = arith.addf %205, %237 : vector<64x32xf32>
    %cst_84 = arith.constant dense<0.000000e+00> : vector<64xf32>
    %239 = vector.multi_reduction <add>, %238, %cst_84 [1] : vector<64x32xf32> to vector<64xf32>
    %240 = vector.shape_cast %239 : vector<64xf32> to vector<64x1xf32>
    %cst_85 = arith.constant 3.200000e+01 : f32
    %241 = vector.broadcast %cst_85 : f32 to vector<64x1xf32>
    %242 = arith.divf %240, %241 : vector<64x1xf32>
    %243 = vector.broadcast %242 : vector<64x1xf32> to vector<64x32xf32>
    %244 = arith.subf %238, %243 : vector<64x32xf32>
    %245 = arith.mulf %244, %244 : vector<64x32xf32>
    %cst_86 = arith.constant dense<0.000000e+00> : vector<64xf32>
    %246 = vector.multi_reduction <add>, %245, %cst_86 [1] : vector<64x32xf32> to vector<64xf32>
    %247 = vector.shape_cast %246 : vector<64xf32> to vector<64x1xf32>
    %cst_87 = arith.constant 3.200000e+01 : f32
    %248 = vector.broadcast %cst_87 : f32 to vector<64x1xf32>
    %249 = arith.divf %247, %248 : vector<64x1xf32>
    %250 = vector.broadcast %242 : vector<64x1xf32> to vector<64x32xf32>
    %251 = arith.subf %238, %250 : vector<64x32xf32>
    %cst_88 = arith.constant 9.99999974E-6 : f32
    %252 = vector.broadcast %cst_88 : f32 to vector<64x1xf32>
    %253 = arith.addf %249, %252 : vector<64x1xf32>
    %254 = math.rsqrt %253 : vector<64x1xf32>
    %255 = vector.broadcast %254 : vector<64x1xf32> to vector<64x32xf32>
    %256 = arith.mulf %251, %255 : vector<64x32xf32>
    %257 = vector.broadcast %42 : vector<1x32xf32> to vector<64x32xf32>
    %258 = arith.mulf %256, %257 : vector<64x32xf32>
    %259 = vector.broadcast %43 : vector<1x32xf32> to vector<64x32xf32>
    %260 = arith.addf %258, %259 : vector<64x32xf32>
    %c0_89 = arith.constant 0 : index
    %c0_90 = arith.constant 0 : index
    %261 = vector.load %arg4[%c0_89, %c0_90] : memref<32x32xf32, #tpu.memory_space<vmem>>, vector<32x32xf32>
    %cst_91 = arith.constant dense<0.000000e+00> : vector<64x32xf32>
    %262 = tpu.matmul %260, %261, %cst_91 {dimension_numbers = #tpu.dot_dimension_numbers<[1], [0], [0], [1], [0, 0, 1, 1], [], []>} : vector<64x32xf32>, vector<32x32xf32>, vector<64x32xf32> -> vector<64x32xf32>
    %263 = vector.broadcast %41 : vector<1x32xf32> to vector<64x32xf32>
    %264 = arith.addf %262, %263 : vector<64x32xf32>
    %265 = vector.shape_cast %264 : vector<64x32xf32> to vector<8x8x32xf32>
    %cst_92 = arith.constant dense<0.000000e+00> : vector<8x8x16xf32>
    %266 = tpu.matmul %265, %38, %cst_92 {dimension_numbers = #tpu.dot_dimension_numbers<[2], [2], [1], [1], [0, 0, 0, 1, 1, 1], [0], [0]>} : vector<8x8x32xf32>, vector<8x16x32xf32>, vector<8x8x16xf32> -> vector<8x8x16xf32>
    %cst_93 = arith.constant dense<0xFF800000> : vector<8x8xf32>
    %267 = vector.multi_reduction <maximumf>, %266, %cst_93 [2] : vector<8x8x16xf32> to vector<8x8xf32>
    %268 = vector.shape_cast %267 : vector<8x8xf32> to vector<8x8x1xf32>
    %269 = vector.broadcast %268 : vector<8x8x1xf32> to vector<8x8x16xf32>
    %270 = arith.subf %266, %269 : vector<8x8x16xf32>
    %271 = math.exp %270 : vector<8x8x16xf32>
    %cst_94 = arith.constant dense<0.000000e+00> : vector<8x8xf32>
    %272 = vector.multi_reduction <add>, %271, %cst_94 [2] : vector<8x8x16xf32> to vector<8x8xf32>
    %273 = vector.shape_cast %272 : vector<8x8xf32> to vector<8x8x1xf32>
    %274 = vector.broadcast %273 : vector<8x8x1xf32> to vector<8x8x16xf32>
    %275 = arith.divf %271, %274 : vector<8x8x16xf32>
    %cst_95 = arith.constant dense<0.000000e+00> : vector<8x8x32xf32>
    %276 = tpu.matmul %275, %40, %cst_95 {dimension_numbers = #tpu.dot_dimension_numbers<[2], [1], [1], [2], [0, 0, 0, 1, 1, 2], [0], [0]>} : vector<8x8x16xf32>, vector<8x16x32xf32>, vector<8x8x32xf32> -> vector<8x8x32xf32>
    %277 = vector.shape_cast %276 : vector<8x8x32xf32> to vector<64x32xf32>
    %278 = tpu.concatenate %277, %238 in 1 : vector<64x32xf32>, vector<64x32xf32> -> vector<64x64xf32>
    %c0_96 = arith.constant 0 : index
    %c0_97 = arith.constant 0 : index
    %279 = vector.load %arg5[%c0_96, %c0_97] : memref<64x128xf32, #tpu.memory_space<vmem>>, vector<64x128xf32>
    %cst_98 = arith.constant dense<0.000000e+00> : vector<64x128xf32>
    %280 = tpu.matmul %278, %279, %cst_98 {dimension_numbers = #tpu.dot_dimension_numbers<[1], [0], [0], [1], [0, 0, 1, 1], [], []>} : vector<64x64xf32>, vector<64x128xf32>, vector<64x128xf32> -> vector<64x128xf32>
    %281 = vector.broadcast %48 : vector<1x128xf32> to vector<64x128xf32>
    %282 = arith.addf %280, %281 : vector<64x128xf32>
    %283 = vector.extract_strided_slice %282 {offsets = [0, 0], sizes = [64, 64], strides = [1, 1]} : vector<64x128xf32> to vector<64x64xf32>
    %284 = arith.negf %283 : vector<64x64xf32>
    %285 = math.exp %284 : vector<64x64xf32>
    %cst_99 = arith.constant 1.000000e+00 : f32
    %286 = vector.broadcast %cst_99 : f32 to vector<64x64xf32>
    %287 = arith.addf %286, %285 : vector<64x64xf32>
    %288 = arith.divf %286, %287 : vector<64x64xf32>
    %289 = vector.extract_strided_slice %288 {offsets = [0, 0], sizes = [64, 32], strides = [1, 1]} : vector<64x64xf32> to vector<64x32xf32>
    %290 = vector.extract_strided_slice %288 {offsets = [0, 32], sizes = [64, 32], strides = [1, 1]} : vector<64x64xf32> to vector<64x32xf32>
    %291 = vector.extract_strided_slice %282 {offsets = [0, 64], sizes = [64, 32], strides = [1, 1]} : vector<64x128xf32> to vector<64x32xf32>
    %292 = vector.extract_strided_slice %282 {offsets = [0, 96], sizes = [64, 32], strides = [1, 1]} : vector<64x128xf32> to vector<64x32xf32>
    %293 = arith.mulf %289, %292 : vector<64x32xf32>
    %294 = arith.addf %291, %293 : vector<64x32xf32>
    %295 = math.tanh %294 : vector<64x32xf32>
    %cst_100 = arith.constant 1.000000e+00 : f32
    %296 = vector.broadcast %cst_100 : f32 to vector<64x32xf32>
    %297 = arith.subf %296, %290 : vector<64x32xf32>
    %298 = arith.mulf %297, %295 : vector<64x32xf32>
    %299 = arith.mulf %290, %238 : vector<64x32xf32>
    %300 = arith.addf %298, %299 : vector<64x32xf32>
    %cst_101 = arith.constant dense<0.000000e+00> : vector<64xf32>
    %301 = vector.multi_reduction <add>, %300, %cst_101 [1] : vector<64x32xf32> to vector<64xf32>
    %302 = vector.shape_cast %301 : vector<64xf32> to vector<64x1xf32>
    %cst_102 = arith.constant 3.200000e+01 : f32
    %303 = vector.broadcast %cst_102 : f32 to vector<64x1xf32>
    %304 = arith.divf %302, %303 : vector<64x1xf32>
    %305 = vector.broadcast %304 : vector<64x1xf32> to vector<64x32xf32>
    %306 = arith.subf %300, %305 : vector<64x32xf32>
    %307 = arith.mulf %306, %306 : vector<64x32xf32>
    %cst_103 = arith.constant dense<0.000000e+00> : vector<64xf32>
    %308 = vector.multi_reduction <add>, %307, %cst_103 [1] : vector<64x32xf32> to vector<64xf32>
    %309 = vector.shape_cast %308 : vector<64xf32> to vector<64x1xf32>
    %cst_104 = arith.constant 3.200000e+01 : f32
    %310 = vector.broadcast %cst_104 : f32 to vector<64x1xf32>
    %311 = arith.divf %309, %310 : vector<64x1xf32>
    %312 = vector.broadcast %304 : vector<64x1xf32> to vector<64x32xf32>
    %313 = arith.subf %300, %312 : vector<64x32xf32>
    %cst_105 = arith.constant 9.99999974E-6 : f32
    %314 = vector.broadcast %cst_105 : f32 to vector<64x1xf32>
    %315 = arith.addf %311, %314 : vector<64x1xf32>
    %316 = math.rsqrt %315 : vector<64x1xf32>
    %317 = vector.broadcast %316 : vector<64x1xf32> to vector<64x32xf32>
    %318 = arith.mulf %313, %317 : vector<64x32xf32>
    %319 = vector.broadcast %44 : vector<1x32xf32> to vector<64x32xf32>
    %320 = arith.mulf %318, %319 : vector<64x32xf32>
    %321 = vector.broadcast %45 : vector<1x32xf32> to vector<64x32xf32>
    %322 = arith.addf %320, %321 : vector<64x32xf32>
    %c0_106 = arith.constant 0 : index
    %c0_107 = arith.constant 0 : index
    %323 = vector.load %arg6[%c0_106, %c0_107] : memref<32x32xf32, #tpu.memory_space<vmem>>, vector<32x32xf32>
    %cst_108 = arith.constant dense<0.000000e+00> : vector<64x32xf32>
    %324 = tpu.matmul %322, %323, %cst_108 {dimension_numbers = #tpu.dot_dimension_numbers<[1], [0], [0], [1], [0, 0, 1, 1], [], []>} : vector<64x32xf32>, vector<32x32xf32>, vector<64x32xf32> -> vector<64x32xf32>
    %325 = vector.broadcast %46 : vector<1x32xf32> to vector<64x32xf32>
    %326 = arith.addf %324, %325 : vector<64x32xf32>
    %cst_109 = arith.constant 0.000000e+00 : f32
    %327 = vector.broadcast %cst_109 : f32 to vector<64x32xf32>
    %328 = arith.maximumf %326, %327 : vector<64x32xf32>
    %c0_110 = arith.constant 0 : index
    %c0_111 = arith.constant 0 : index
    %329 = vector.load %arg7[%c0_110, %c0_111] : memref<32x32xf32, #tpu.memory_space<vmem>>, vector<32x32xf32>
    %cst_112 = arith.constant dense<0.000000e+00> : vector<64x32xf32>
    %330 = tpu.matmul %328, %329, %cst_112 {dimension_numbers = #tpu.dot_dimension_numbers<[1], [0], [0], [1], [0, 0, 1, 1], [], []>} : vector<64x32xf32>, vector<32x32xf32>, vector<64x32xf32> -> vector<64x32xf32>
    %331 = vector.broadcast %47 : vector<1x32xf32> to vector<64x32xf32>
    %332 = arith.addf %330, %331 : vector<64x32xf32>
    %333 = arith.addf %300, %332 : vector<64x32xf32>
    %c0_113 = arith.constant 0 : index
    %c0_114 = arith.constant 0 : index
    %334 = vector.load %arg11[%c0_113, %c0_114] : memref<64x32xf32, #tpu.memory_space<vmem>>, vector<64x32xf32>
    tpu.vector_store %arg11[%c0_113, %c0_114], %333 {strides = array<i32>} : memref<64x32xf32, #tpu.memory_space<vmem>>, vector<64x32xf32>,
    return
  }
  func.func @transform_0(%arg0: i32) -> (i32, i32) {
    %c0_i32 = arith.constant 0 : i32
    %c0_i32_0 = arith.constant 0 : i32
    return %arg0, %c0_i32 : i32, i32
  }
  func.func @transform_1(%arg0: i32) -> (i32, i32) {
    %c0_i32 = arith.constant 0 : i32
    %c0_i32_0 = arith.constant 0 : i32
    return %arg0, %c0_i32 : i32, i32
  }
  func.func @transform_2(%arg0: i32) -> (i32, i32) {
    %c0_i32 = arith.constant 0 : i32
    %c0_i32_0 = arith.constant 0 : i32
    %c0_i32_1 = arith.constant 0 : i32
    return %c0_i32, %c0_i32_0 : i32, i32
  }
  func.func @transform_3(%arg0: i32) -> (i32, i32) {
    %c0_i32 = arith.constant 0 : i32
    %c0_i32_0 = arith.constant 0 : i32
    %c0_i32_1 = arith.constant 0 : i32
    return %c0_i32, %c0_i32_0 : i32, i32
  }
  func.func @transform_4(%arg0: i32) -> (i32, i32) {
    %c0_i32 = arith.constant 0 : i32
    %c0_i32_0 = arith.constant 0 : i32
    %c0_i32_1 = arith.constant 0 : i32
    return %c0_i32, %c0_i32_0 : i32, i32
  }
  func.func @transform_5(%arg0: i32) -> (i32, i32) {
    %c0_i32 = arith.constant 0 : i32
    %c0_i32_0 = arith.constant 0 : i32
    %c0_i32_1 = arith.constant 0 : i32
    return %c0_i32, %c0_i32_0 : i32, i32
  }
  func.func @transform_6(%arg0: i32) -> (i32, i32) {
    %c0_i32 = arith.constant 0 : i32
    %c0_i32_0 = arith.constant 0 : i32
    %c0_i32_1 = arith.constant 0 : i32
    return %c0_i32, %c0_i32_0 : i32, i32
  }
  func.func @transform_7(%arg0: i32) -> (i32, i32) {
    %c0_i32 = arith.constant 0 : i32
    %c0_i32_0 = arith.constant 0 : i32
    %c0_i32_1 = arith.constant 0 : i32
    return %c0_i32, %c0_i32_0 : i32, i32
  }
  func.func @transform_8(%arg0: i32) -> (i32, i32) {
    %c0_i32 = arith.constant 0 : i32
    %c0_i32_0 = arith.constant 0 : i32
    %c0_i32_1 = arith.constant 0 : i32
    return %c0_i32, %c0_i32_0 : i32, i32
  }
  func.func @transform_9(%arg0: i32) -> (i32, i32) {
    %c0_i32 = arith.constant 0 : i32
    %c0_i32_0 = arith.constant 0 : i32
    %c0_i32_1 = arith.constant 0 : i32
    return %c0_i32, %c0_i32_0 : i32, i32
  }
  func.func @transform_10(%arg0: i32) -> (i32, i32) {
    %c0_i32 = arith.constant 0 : i32
    %c0_i32_0 = arith.constant 0 : i32
    return %arg0, %c0_i32 : i32, i32
  }
}

</mosaic_0001>

<bundles_post_ra>
// kernel: tpu_custom_call.1
= control target key start
LH: loop header
LB: loop body
LE: loop exit
PB: predicated region body
PF: predicated region fallthrough
CT: control target
= control target key end

     0   :  { %vm87_vm0 = vcmask 261120   ;;  %vm9915_vm1 = vmmov 0   ;;  %vm1446_vm3 = vcmask 130048   ;;  %s9917_s26 = smov 96   ;;  %s9918_s27 = smov 32   ;;  %vm2221_vm4 = vcmask 523264   ;;  %s12406_s0 = inlined_call_operand.vmem [shape: f32[128,32], index: 0, kind: input, shape index: {}]   ;;  %s12407_s1 = inlined_call_operand.vmem [shape: f32[64,32], index: 1, kind: input, shape index: {}]   ;;  %s12408_s7 = inlined_call_operand.vmem [shape: f32[11,32], index: 7, kind: input, shape index: {}]   ;;  %s12409_s2 = inlined_call_operand.vmem [shape: f32[32,64], index: 2, kind: input, shape index: {}]   ;;  %s12410_s3 = inlined_call_operand.vmem [shape: f32[32,32], index: 3, kind: input, shape index: {}]   ;;  %s12411_s8 = inlined_call_operand.vmem [shape: f32[1,64], index: 8, kind: input, shape index: {}]   ;;  %s12412_s4 = inlined_call_operand.vmem [shape: f32[64,128], index: 4, kind: input, shape index: {}]   ;;  %s12413_s9 = inlined_call_operand.vmem [shape: f32[1,128], index: 9, kind: input, shape index: {}]   ;;  %s12414_s5 = inlined_call_operand.vmem [shape: f32[32,32], index: 5, kind: input, shape index: {}]   ;;  %s12415_s6 = inlined_call_operand.vmem [shape: f32[32,32], index: 6, kind: input, shape index: {}]   ;;  %s12416_s10 = inlined_call_operand.vmem [shape: f32[64,32], index: 10, kind: output, shape index: {}]  }
   0x1   :  { %v9978_v0 = vld [vmem:[%s12406_s0 + $0x10] sm:$0xff]  ;;  %v9983_v1 = vld [vmem:[%s12406_s0] sm:$0xff]  ;;  %v9988_v2 = vld [vmem:[%s12406_s0 + $0x18] sm:$0xff]  ;;  %s9919_s23 = smov 64  }
   0x2   :  { %v94_v3 = vsel %vm87_vm0, %v9978_v0, 0.0  ;;  %v88_v4 = vsel %vm87_vm0, %v9983_v1, 0.0  ;;  %v9997_v5 = vld [vmem:[%s12406_s0 + $0x8] sm:$0xff]  ;;  %v10002_v6 = vld [vmem:[%s12408_s7] ss:$0 sm:$0xff]  ;;  %v97_v9 = vsel %vm87_vm0, %v9988_v2, 0.0  ;;  %vm10480_vm2 = vmpackc.low %vm87_vm0, %vm87_vm0 }
   0x3   :  { %95 = vadd.xlane.f32.xlu1 %v94_v3  ;;  %89 = vadd.xlane.f32.xlu0 %v88_v4  ;;  %v10007_v7 = vld [vmem:[%s12408_s7 + $0x1] ss:$0 sm:$0xff]  ;;  %v38_v8 = vld [vmem:[%s12407_s1 + $0x8] sm:$0xff]  ;;  %v91_v10 = vsel %vm87_vm0, %v9997_v5, 0.0  ;;  %v10048_v22 = vld [vmem:[%s12406_s0 + $0x38] sm:$0xff] }
   0x4   :  { %v50_v11 = vmul.f32 %v10007_v7, %v38_v8  ;;  %v37_v12 = vld [vmem:[%s12407_s1] sm:$0xff]  ;;  %v10034_v18 = vld [vmem:[%s12406_s0 + $0x28] sm:$0xff]  ;;  %v10053_v23 = vld [vmem:[%s12406_s0 + $0x30] sm:$0xff]  ;;  %v109_v24 = vsel %vm87_vm0, %v10048_v22, 0.0 }
   0x5   :  { %v49_v13 = vmul.f32 %v10007_v7, %v37_v12  ;;  %v10039_v19 = vld [vmem:[%s12406_s0 + $0x20] sm:$0xff]  ;;  %v103_v20 = vsel %vm87_vm0, %v10034_v18, 0.0  ;;  %v106_v25 = vsel %vm87_vm0, %v10053_v23, 0.0  ;;  %v10062_v26 = vld [vmem:[%s12406_s0 + $0x48] sm:$0xff]  ;;  %v40_v28 = vld [vmem:[%s12407_s1 + $0x18] sm:$0xff] }
   0x6   :  { %v10022_v14 = vadd.f32 %v10002_v6, %v50_v11  ;;  %v100_v21 = vsel %vm87_vm0, %v10039_v19, 0.0  ;;  %v10067_v27 = vld [vmem:[%s12406_s0 + $0x40] sm:$0xff]  ;;  %v39_v29 = vld [vmem:[%s12407_s1 + $0x10] sm:$0xff]  ;;  %v115_v30 = vsel %vm87_vm0, %v10062_v26, 0.0  ;;  %v52_v32 = vmul.f32 %v10007_v7, %v40_v28  ;;  %v10084_v34 = vld [vmem:[%s12406_s0 + $0x58] sm:$0xff] }
   0x7   :  { %98 = vadd.xlane.f32.xlu1 %v97_v9  ;;  %92 = vadd.xlane.f32.xlu0 %v91_v10  ;;  %v10025_v15 = vadd.f32 %v10002_v6, %v49_v13  ;;  %v112_v31 = vsel %vm87_vm0, %v10067_v27, 0.0  ;;  %v51_v33 = vmul.f32 %v10007_v7, %v39_v29  ;;  %v10089_v35 = vld [vmem:[%s12406_s0 + $0x50] sm:$0xff]  ;;  %v121_v36 = vsel %vm87_vm0, %v10084_v34, 0.0  ;;  %v10108_v42 = vld [vmem:[%s12406_s0 + $0x68] sm:$0xff]  ;;  %v10113_v43 = vld [vmem:[%s12406_s0 + $0x60] sm:$0xff] }
   0x8   :  { %v552_v16 = vsel %vm87_vm0, %v10022_v14, 0.0  ;;  %v118_v37 = vsel %vm87_vm0, %v10089_v35, 0.0  ;;  %v10096_v38 = vadd.f32 %v10002_v6, %v52_v32  ;;  %v42_v44 = vld [vmem:[%s12407_s1 + $0x28] sm:$0xff]  ;;  %v41_v45 = vld [vmem:[%s12407_s1 + $0x20] sm:$0xff]  ;;  %v127_v46 = vsel %vm87_vm0, %v10108_v42, 0.0  ;;  %v10128_v48 = vld [vmem:[%s12406_s0 + $0x78] sm:$0xff] }
   0x9   :  { %v549_v17 = vsel %vm87_vm0, %v10025_v15, 0.0  ;;  %v10099_v39 = vadd.f32 %v10002_v6, %v51_v33  ;;  %v124_v47 = vsel %vm87_vm0, %v10113_v43, 0.0  ;;  %v10133_v49 = vld [vmem:[%s12406_s0 + $0x70] sm:$0xff]  ;;  %v54_v50 = vmul.f32 %v10007_v7, %v42_v44  ;;  %v44_v52 = vld [vmem:[%s12407_s1 + $0x38] sm:$0xff] }
   0xa   :  { %v558_v40 = vsel %vm87_vm0, %v10096_v38, 0.0  ;;  %v53_v51 = vmul.f32 %v10007_v7, %v41_v45  ;;  %v43_v53 = vld [vmem:[%s12407_s1 + $0x30] sm:$0xff]  ;;  %v133_v54 = vsel %vm87_vm0, %v10128_v48, 0.0  ;;  %v130_v55 = vsel %vm87_vm0, %v10133_v49, 0.0 }
   0xb   :  { %553 = vadd.xlane.f32.xlu1 %v552_v16  ;;  %550 = vadd.xlane.f32.xlu0 %v549_v17  ;;  %v555_v41 = vsel %vm87_vm0, %v10099_v39, 0.0  ;;  %v10148_v56 = vadd.f32 %v10002_v6, %v54_v50  ;;  %v56_v58 = vmul.f32 %v10007_v7, %v44_v52  ;;  %v55_v59 = vmul.f32 %v10007_v7, %v43_v53 }
   0xc   :  { %v10151_v57 = vadd.f32 %v10002_v6, %v53_v51 }
   0xd   :  { %v564_v60 = vsel %vm87_vm0, %v10148_v56, 0.0  ;;  %v10160_v62 = vadd.f32 %v10002_v6, %v56_v58  ;;  %v10163_v63 = vadd.f32 %v10002_v6, %v55_v59 }
   0xe   :  { %v561_v61 = vsel %vm87_vm0, %v10151_v57, 0.0 }
   0xf   :  { %104 = vadd.xlane.f32.xlu1 %v103_v20  ;;  %101 = vadd.xlane.f32.xlu0 %v100_v21  ;;  %v570_v3 = vsel %vm87_vm0, %v10160_v62, 0.0  ;;  %v567_v4 = vsel %vm87_vm0, %v10163_v63, 0.0 }
  0x13   :  { %110 = vadd.xlane.f32.xlu1 %v109_v24  ;;  %107 = vadd.xlane.f32.xlu0 %v106_v25 }
  0x17   :  { %116 = vadd.xlane.f32.xlu1 %v115_v30  ;;  %113 = vadd.xlane.f32.xlu0 %v112_v31 }
  0x1b   :  { %122 = vadd.xlane.f32.xlu1 %v121_v36  ;;  %119 = vadd.xlane.f32.xlu0 %v118_v37 }
  0x1f   :  { %559 = vadd.xlane.f32.xlu1 %v558_v40  ;;  %556 = vadd.xlane.f32.xlu0 %v555_v41 }
  0x23   :  { %128 = vadd.xlane.f32.xlu1 %v127_v46  ;;  %125 = vadd.xlane.f32.xlu0 %v124_v47 }
  0x27   :  { %134 = vadd.xlane.f32.xlu1 %v133_v54  ;;  %131 = vadd.xlane.f32.xlu0 %v130_v55 }
  0x2b   :  { %565 = vadd.xlane.f32.xlu1 %v564_v60  ;;  %562 = vadd.xlane.f32.xlu0 %v561_v61 }
  0x2f   :  { %571 = vadd.xlane.f32.xlu1 %v570_v3  ;;  %568 = vadd.xlane.f32.xlu0 %v567_v4 }
  0x90   :  { %v96_v7 = vpop.xlane.xlu1 %95  ;;  %v90_v8 = vpop.xlane.xlu0 %89 }
  0x91   :  { %v139_v9 = vmul.f32 0.03125, %v96_v7  ;;  %v137_v10 = vmul.f32 0.03125, %v90_v8 }
  0x93   :  { %v10170_v11 = vsub.f32 %v9978_v0, %v139_v9  ;;  %v10173_v6 = vsub.f32 %v9983_v1, %v137_v10 }
  0x94   :  { %v99_v12 = vpop.xlane.xlu1 %98  ;;  %v93_v13 = vpop.xlane.xlu0 %92 }
  0x95   :  { %v140_v16 = vmul.f32 0.03125, %v99_v12  ;;  %v138_v17 = vmul.f32 0.03125, %v93_v13  ;;  %v169_v20 = vmul.f32 %v10173_v6, %v10173_v6  ;;  %v171_v0 = vmul.f32 %v10170_v11, %v10170_v11 }
  0x97   :  { %v10178_v21 = vsub.f32 %v9988_v2, %v140_v16  ;;  %v10181_v24 = vsub.f32 %v9997_v5, %v138_v17  ;;  %v185_v25 = vsel %vm87_vm0, %v169_v20, 0.0  ;;  %v191_v32 = vsel %vm87_vm0, %v171_v0, 0.0 }
  0x98   :  { %v554_v1 = vpop.xlane.xlu1 %553  ;;  %186 = vadd.xlane.f32.xlu0 %v185_v25  ;;  %v551_v28 = vpop.xlane.xlu0 %550 }
  0x99   :  { %v170_v29 = vmul.f32 %v10181_v24, %v10181_v24  ;;  %v574_v30 = vmul.f32 0.03125, %v554_v1  ;;  %v573_v31 = vmul.f32 0.03125, %v551_v28  ;;  %v172_v5 = vmul.f32 %v10178_v21, %v10178_v21 }
  0x9b   :  { %v188_v2 = vsel %vm87_vm0, %v170_v29, 0.0  ;;  %v10193_v41 = vsub.f32 %v10022_v14, %v574_v30  ;;  %v10196_v44 = vsub.f32 %v10025_v15, %v573_v31  ;;  %v194_v47 = vsel %vm87_vm0, %v172_v5, 0.0 }
  0x9c   :  { %v105_v33 = vpop.xlane.xlu1 %104  ;;  %192 = vadd.xlane.f32.xlu0 %v191_v32  ;;  %189 = vadd.xlane.f32.xlu1 %v188_v2  ;;  %v102_v36 = vpop.xlane.xlu0 %101 }
  0x9d   :  { %v142_v37 = vmul.f32 0.03125, %v105_v33  ;;  %v141_v40 = vmul.f32 0.03125, %v102_v36 }
  0x9f   :  { %v10199_v45 = vsub.f32 %v10034_v18, %v142_v37  ;;  %v10202_v46 = vsub.f32 %v10039_v19, %v141_v40  ;;  %v590_v18 = vmul.f32 %v10193_v41, %v10193_v41  ;;  %v589_v19 = vmul.f32 %v10196_v44, %v10196_v44 }
  0xa0   :  { %v111_v50 = vpop.xlane.xlu1 %110  ;;  %195 = vadd.xlane.f32.xlu1 %v194_v47  ;;  %v108_v51 = vpop.xlane.xlu0 %107 }
  0xa1   :  { %v144_v52 = vmul.f32 0.03125, %v111_v50  ;;  %v143_v53 = vmul.f32 0.03125, %v108_v51  ;;  %v174_v54 = vmul.f32 %v10199_v45, %v10199_v45  ;;  %v173_v55 = vmul.f32 %v10202_v46, %v10202_v46 }
  0xa2   :  { %v600_v12 = vsel %vm87_vm0, %v590_v18, 0.0  ;;  %v597_v13 = vsel %vm87_vm0, %v589_v19, 0.0 }
  0xa3   :  { %v10214_v58 = vsub.f32 %v10048_v22, %v144_v52  ;;  %v10217_v59 = vsub.f32 %v10053_v23, %v143_v53  ;;  %v200_v60 = vsel %vm87_vm0, %v174_v54, 0.0  ;;  %v197_v61 = vsel %vm87_vm0, %v173_v55, 0.0 }
  0xa4   :  { %v117_v3 = vpop.xlane.xlu1 %116  ;;  %201 = vadd.xlane.f32.xlu1 %v200_v60  ;;  %198 = vadd.xlane.f32.xlu0 %v197_v61  ;;  %v114_v4 = vpop.xlane.xlu0 %113 }
  0xa5   :  { %v146_v7 = vmul.f32 0.03125, %v117_v3  ;;  %v145_v8 = vmul.f32 0.03125, %v114_v4  ;;  %v176_v9 = vmul.f32 %v10214_v58, %v10214_v58  ;;  %v175_v22 = vmul.f32 %v10217_v59, %v10217_v59  ;;  %v338_v4 = vld [vmem:[%s12409_s2 + $0x8] sm:$0xff] }
  0xa7   :  { %v10226_v10 = vsub.f32 %v10062_v26, %v146_v7  ;;  %v10229_v23 = vsub.f32 %v10067_v27, %v145_v8  ;;  %v206_v0 = vsel %vm87_vm0, %v176_v9, 0.0  ;;  %v203_v1 = vsel %vm87_vm0, %v175_v22, 0.0 }
  0xa8   :  { %v123_v16 = vpop.xlane.xlu1 %122  ;;  %601 = vadd.xlane.f32.xlu1 %v600_v12  ;;  %598 = vadd.xlane.f32.xlu0 %v597_v13  ;;  %v120_v17 = vpop.xlane.xlu0 %119 }
  0xa9   :  { %v148_v20 = vmul.f32 0.03125, %v123_v16  ;;  %v147_v25 = vmul.f32 0.03125, %v120_v17  ;;  %v178_v28 = vmul.f32 %v10226_v10, %v10226_v10  ;;  %v177_v29 = vmul.f32 %v10229_v23, %v10229_v23 }
  0xab   :  { %v10236_v26 = vsub.f32 %v10084_v34, %v148_v20  ;;  %v10239_v27 = vsub.f32 %v10089_v35, %v147_v25  ;;  %v212_v5 = vsel %vm87_vm0, %v178_v28, 0.0  ;;  %v209_v34 = vsel %vm87_vm0, %v177_v29, 0.0  ;;  %v339_v28 = vld [vmem:[%s12409_s2 + $0x10] sm:$0xff] }
  0xac   :  { %v560_v30 = vpop.xlane.xlu1 %559  ;;  %207 = vadd.xlane.f32.xlu1 %v206_v0  ;;  %204 = vadd.xlane.f32.xlu0 %v203_v1  ;;  %v557_v31 = vpop.xlane.xlu0 %556 }
  0xad   :  { %v576_v32 = vmul.f32 0.03125, %v560_v30  ;;  %v575_v2 = vmul.f32 0.03125, %v557_v31  ;;  %v180_v35 = vmul.f32 %v10236_v26, %v10236_v26  ;;  %v179_v33 = vmul.f32 %v10239_v27, %v10239_v27 }
  0xaf   :  { %v10252_v50 = vsub.f32 %v10096_v38, %v576_v32  ;;  %v10255_v51 = vsub.f32 %v10099_v39, %v575_v2  ;;  %v218_v54 = vsel %vm87_vm0, %v180_v35, 0.0  ;;  %v215_v55 = vsel %vm87_vm0, %v179_v33, 0.0 }
  0xb0   :  { %v129_v36 = vpop.xlane.xlu1 %128  ;;  %213 = vadd.xlane.f32.xlu1 %v212_v5  ;;  %210 = vadd.xlane.f32.xlu0 %v209_v34  ;;  %v126_v37 = vpop.xlane.xlu0 %125 }
  0xb1   :  { %v150_v40 = vmul.f32 0.03125, %v129_v36  ;;  %v149_v47 = vmul.f32 0.03125, %v126_v37  ;;  %v592_v7 = vmul.f32 %v10252_v50, %v10252_v50  ;;  %v591_v8 = vmul.f32 %v10255_v51, %v10255_v51 }
  0xb3   :  { %v10258_v52 = vsub.f32 %v10108_v42, %v150_v40  ;;  %v10261_v53 = vsub.f32 %v10113_v43, %v149_v47  ;;  %v337_v43 = vld [vmem:[%s12409_s2] sm:$0xff]  ;;  %v606_v31 = vsel %vm87_vm0, %v592_v7, 0.0  ;;  %v603_v32 = vsel %vm87_vm0, %v591_v8, 0.0  ;;  %v679_v8 = vld [vmem:[%s12410_s3 + $0x10] sm:$0xff] }
  0xb4   :  { %219 = vadd.xlane.f32.xlu1 %v218_v54  ;;  %216 = vadd.xlane.f32.xlu0 %v215_v55  ;;  %v135_v18 = vpop.xlane.xlu1 %134  ;;  %v132_v19 = vpop.xlane.xlu0 %131  ;;  %v9194_v9 = vpack.c.bf16 %v338_v4, %v337_v43 }
  0xb5   :  { %v152_v60 = vmul.f32 0.03125, %v135_v18  ;;  %v182_v61 = vmul.f32 %v10258_v52, %v10258_v52  ;;  %v181_v3 = vmul.f32 %v10261_v53, %v10261_v53  ;;  %v151_v42 = vmul.f32 0.03125, %v132_v19 }
  0xb6   :  { %9195 = vmatprep.subr.bf16.mxu0 %v9194_v9 }
  0xb7   :  { %v10280_v22 = vsub.f32 %v10128_v48, %v152_v60  ;;  %v224_v12 = vsel %vm87_vm0, %v182_v61, 0.0  ;;  %v221_v13 = vsel %vm87_vm0, %v181_v3, 0.0  ;;  %v10285_v16 = vsub.f32 %v10133_v49, %v151_v42  ;;  %v340_v49 = vld [vmem:[%s12409_s2 + $0x18] sm:$0xff]  ;;  %9197 = vmatpush3.bf16.msra.mxu0 %v9194_v9  ;;  %v677_v3 = vld [vmem:[%s12410_s3] sm:$0xff]  ;;  %v678_v42 = vld [vmem:[%s12410_s3 + $0x8] sm:$0xff] }
  0xb8   :  { %225 = vadd.xlane.f32.xlu1 %v224_v12  ;;  %222 = vadd.xlane.f32.xlu0 %v221_v13  ;;  %v566_v17 = vpop.xlane.xlu1 %565  ;;  %v563_v20 = vpop.xlane.xlu0 %562  ;;  %v9198_v29 = vpack.c.bf16 %v340_v49, %v339_v28  ;;  %v10329_v43 = vpack.c.bf16 %v678_v42, %v677_v3  ;;  %v680_v9 = vld [vmem:[%s12410_s3 + $0x18] sm:$0xff]  ;;  %v10354_v42 = vld [vmem:[%s12408_s7 + $0x3] ss:$0 sm:$0xff] }
  0xb9   :  { %v578_v25 = vmul.f32 0.03125, %v566_v17  ;;  %v577_v0 = vmul.f32 0.03125, %v563_v20  ;;  %v184_v1 = vmul.f32 %v10280_v22, %v10280_v22  ;;  %v183_v48 = vmul.f32 %v10285_v16, %v10285_v16 }
  0xba   :  { %9199 = vmatprep.subr.bf16.mxu0 %v9198_v29  ;;  %9203 = vmatprep.subr.bf16.mxu1 %v10329_v43  ;;  %v10341_v12 = vpack.c.bf16 %v680_v9, %v679_v8 }
  0xbb   :  { %v10298_v30 = vsub.f32 %v10148_v56, %v578_v25  ;;  %v10303_v2 = vsub.f32 %v10151_v57, %v577_v0  ;;  %v230_v34 = vsel %vm87_vm0, %v184_v1, 0.0  ;;  %v227_v35 = vsel %vm87_vm0, %v183_v48, 0.0  ;;  %9201 = vmatpush3.bf16.msra.mxu0 %v9198_v29  ;;  %9205 = vmatpush3.bf16.msra.mxu1 %v10329_v43 }
  0xbc   :  { %607 = vadd.xlane.f32.xlu1 %v606_v31  ;;  %604 = vadd.xlane.f32.xlu0 %v603_v32  ;;  %v572_v5 = vpop.xlane.xlu1 %571  ;;  %v569_v33 = vpop.xlane.xlu0 %568 }
  0xbd   :  { %v580_v36 = vmul.f32 0.03125, %v572_v5  ;;  %v579_v37 = vmul.f32 0.03125, %v569_v33  ;;  %v594_v40 = vmul.f32 %v10298_v30, %v10298_v30  ;;  %v593_v47 = vmul.f32 %v10303_v2, %v10303_v2  ;;  %9207 = vmatprep.subr.bf16.mxu1 %v10341_v12 }
  0xbf   :  { %v10312_v54 = vsub.f32 %v10160_v62, %v580_v36  ;;  %v10315_v55 = vsub.f32 %v10163_v63, %v579_v37  ;;  %v612_v18 = vsel %vm87_vm0, %v594_v40, 0.0  ;;  %v609_v19 = vsel %vm87_vm0, %v593_v47, 0.0  ;;  %9209 = vmatpush3.bf16.msra.mxu1 %v10341_v12  ;;  %v10348_v47 = vld [vmem:[%s12408_s7 + $0x2] ss:$0 sm:$0xff] }
  0xc0   :  { %231 = vadd.xlane.f32.xlu1 %v230_v34  ;;  %228 = vadd.xlane.f32.xlu0 %v227_v35 }
  0xc1   :  { %v596_v60 = vmul.f32 %v10312_v54, %v10312_v54  ;;  %v595_v61 = vmul.f32 %v10315_v55, %v10315_v55 }
  0xc3   :  { %v618_v4 = vsel %vm87_vm0, %v596_v60, 0.0  ;;  %v615_v7 = vsel %vm87_vm0, %v595_v61, 0.0 }
  0xc4   :  { %613 = vadd.xlane.f32.xlu1 %v612_v18  ;;  %610 = vadd.xlane.f32.xlu0 %v609_v19 }
  0xc8   :  { %619 = vadd.xlane.f32.xlu1 %v618_v4  ;;  %616 = vadd.xlane.f32.xlu0 %v615_v7 }
 0x125   :  { %v187_v13 = vpop.xlane.xlu0 %186 }
 0x126   :  { %v233_v17 = vmul.f32 0.03125, %v187_v13 }
 0x128   :  { %v249_v20 = vadd.f32 1e-05, %v233_v17 }
 0x129   :  { %v190_v25 = vpop.xlane.xlu1 %189  ;;  %v193_v0 = vpop.xlane.xlu0 %192 }
 0x12a   :  { %9536 = vrsqrt.f32 %v249_v20  ;;  %v234_v1 = vmul.f32 0.03125, %v190_v25  ;;  %v235_v48 = vmul.f32 0.03125, %v193_v0 }
 0x12c   :  { %v250_v28 = vadd.f32 1e-05, %v234_v1  ;;  %v251_v49 = vadd.f32 1e-05, %v235_v48 }
 0x12d   :  { %v196_v29 = vpop.xlane.xlu1 %195 }
 0x12e   :  { %9538 = vrsqrt.f32 %v250_v28  ;;  %v236_v31 = vmul.f32 0.03125, %v196_v29 }
 0x12f   :  { %9540 = vrsqrt.f32 %v251_v49 }
 0x130   :  { %v252_v32 = vadd.f32 1e-05, %v236_v31 }
 0x131   :  { %v202_v5 = vpop.xlane.xlu1 %201  ;;  %v199_v34 = vpop.xlane.xlu0 %198 }
 0x132   :  { %9542 = vrsqrt.f32 %v252_v32  ;;  %v238_v35 = vmul.f32 0.03125, %v202_v5  ;;  %v237_v33 = vmul.f32 0.03125, %v199_v34 }
 0x134   :  { %v9537_v36 = vpop.eup %9536  ;;  %v254_v37 = vadd.f32 1e-05, %v238_v35  ;;  %v253_v40 = vadd.f32 1e-05, %v237_v33 }
 0x135   :  { %v602_v18 = vpop.xlane.xlu1 %601  ;;  %v599_v19 = vpop.xlane.xlu0 %598  ;;  %v281_v60 = vmul.f32 %v9537_v36, %v10173_v6 }
 0x136   :  { %9544 = vrsqrt.f32 %v254_v37  ;;  %v622_v61 = vmul.f32 0.03125, %v602_v18  ;;  %v621_v3 = vmul.f32 0.03125, %v599_v19 }
 0x137   :  { %9546 = vrsqrt.f32 %v253_v40  ;;  %v301_v4 = vmul.f32 %v10348_v47, %v281_v60 }
 0x138   :  { %v9539_v7 = vpop.eup %9538  ;;  %v630_v8 = vadd.f32 1e-05, %v622_v61  ;;  %v629_v9 = vadd.f32 1e-05, %v621_v3 }
 0x139   :  { %v9541_v13 = vpop.eup %9540  ;;  %v208_v17 = vpop.xlane.xlu1 %207  ;;  %v321_v25 = vadd.f32 %v10354_v42, %v301_v4  ;;  %v282_v6 = vmul.f32 %v9539_v7, %v10181_v24 }
 0x13a   :  { %v205_v20 = vpop.xlane.xlu0 %204  ;;  %9548 = vrsqrt.f32 %v630_v8  ;;  %v240_v0 = vmul.f32 0.03125, %v208_v17  ;;  %v283_v48 = vmul.f32 %v9541_v13, %v10170_v11 }
 0x13b   :  { %v239_v1 = vmul.f32 0.03125, %v205_v20  ;;  %9550 = vrsqrt.f32 %v629_v9  ;;  %8570 = vmatprep.mubr.msk.f32.mxu0 %vm87_vm0, %v321_v25  ;;  %v302_v28 = vmul.f32 %v10348_v47, %v282_v6 }
 0x13c   :  { %v9543_v49 = vpop.eup %9542  ;;  %v256_v29 = vadd.f32 1e-05, %v240_v0  ;;  %v303_v32 = vmul.f32 %v10348_v47, %v283_v48  ;;  %v10378_v0 = vld [vmem:[%s12408_s7 + $0x5] ss:$0 sm:$0xff] }
 0x13d   :  { %v255_v31 = vadd.f32 1e-05, %v239_v1  ;;  %v214_v5 = vpop.xlane.xlu1 %213  ;;  %v322_v35 = vadd.f32 %v10354_v42, %v302_v28  ;;  %v284_v24 = vmul.f32 %v9543_v49, %v10178_v21 }
 0x13e   :  { %v211_v34 = vpop.xlane.xlu0 %210  ;;  %9552 = vrsqrt.f32 %v256_v29  ;;  %v242_v33 = vmul.f32 0.03125, %v214_v5  ;;  %v323_v11 = vadd.f32 %v10354_v42, %v303_v32  ;;  %v10386_v32 = vld [vmem:[%s12408_s7 + $0x6] ss:$0 sm:$0xff] }
 0x13f   :  { %v241_v36 = vmul.f32 0.03125, %v211_v34  ;;  %9554 = vrsqrt.f32 %v255_v31  ;;  %8571 = vmatmul.mubr.msk.f32.vlgmr.msra.gmra.mrb[0].mxu0 %vm87_vm0, %v322_v35  ;;  %v304_v37 = vmul.f32 %v10348_v47, %v284_v24 }
 0x140   :  { %v9545_v40 = vpop.eup %9544  ;;  %v258_v18 = vadd.f32 1e-05, %v242_v33  ;;  %8573 = vmatprep.mubr.msk.f32.mxu0 %vm87_vm0, %v323_v11 }
 0x141   :  { %v257_v19 = vadd.f32 1e-05, %v241_v36  ;;  %v9547_v60 = vpop.eup %9546  ;;  %v220_v61 = vpop.xlane.xlu1 %219  ;;  %v324_v21 = vadd.f32 %v10354_v42, %v304_v37  ;;  %v286_v4 = vmul.f32 %v9545_v40, %v10199_v45 }
 0x142   :  { %v217_v3 = vpop.xlane.xlu0 %216  ;;  %9556 = vrsqrt.f32 %v258_v18  ;;  %v244_v7 = vmul.f32 0.03125, %v220_v61  ;;  %v285_v9 = vmul.f32 %v9547_v60, %v10202_v46 }
 0x143   :  { %v243_v8 = vmul.f32 0.03125, %v217_v3  ;;  %9558 = vrsqrt.f32 %v257_v19  ;;  %8574 = vmatmul.mubr.msk.f32.gmra.mrb[2].mxu0 %vm87_vm0, %v324_v21  ;;  %v306_v13 = vmul.f32 %v10348_v47, %v286_v4 }
 0x144   :  { %v9549_v17 = vpop.eup %9548  ;;  %v260_v20 = vadd.f32 1e-05, %v244_v7  ;;  %v305_v6 = vmul.f32 %v10348_v47, %v285_v9 }
 0x145   :  { %v259_v25 = vadd.f32 1e-05, %v243_v8  ;;  %v9551_v45 = vpop.eup %9550  ;;  %v226_v1 = vpop.xlane.xlu1 %225  ;;  %v326_v46 = vadd.f32 %v10354_v42, %v306_v13  ;;  %v646_v28 = vmul.f32 %v9549_v17, %v10193_v41 }
 0x146   :  { %v223_v48 = vpop.xlane.xlu0 %222  ;;  %9560 = vrsqrt.f32 %v260_v20  ;;  %v246_v49 = vmul.f32 0.03125, %v226_v1  ;;  %v325_v31 = vadd.f32 %v10354_v42, %v305_v6  ;;  %v645_v5 = vmul.f32 %v9551_v45, %v10196_v44 }
 0x147   :  { %v245_v29 = vmul.f32 0.03125, %v223_v48  ;;  %9562 = vrsqrt.f32 %v259_v25  ;;  %v658_v34 = vmul.f32 %v10378_v0, %v646_v28 }
 0x148   :  { %v9553_v35 = vpop.eup %9552  ;;  %v262_v24 = vadd.f32 1e-05, %v246_v49  ;;  %8576 = vmatprep.mubr.msk.f32.mxu0 %vm87_vm0, %v325_v31  ;;  %v657_v37 = vmul.f32 %v10378_v0, %v645_v5 }
 0x149   :  { %v261_v33 = vadd.f32 1e-05, %v245_v29  ;;  %v9555_v41 = vpop.eup %9554  ;;  %8577 = vmatmul.mubr.msk.f32.gmra.mrb[4].mxu0 %vm87_vm0, %v326_v46  ;;  %v608_v36 = vpop.xlane.xlu1 %607  ;;  %v670_v40 = vadd.f32 %v10386_v32, %v658_v34  ;;  %v288_v18 = vmul.f32 %v9553_v35, %v10214_v58 }
 0x14a   :  { %v605_v11 = vpop.xlane.xlu0 %604  ;;  %9564 = vrsqrt.f32 %v262_v24  ;;  %v624_v44 = vmul.f32 0.03125, %v608_v36  ;;  %v287_v60 = vmul.f32 %v9555_v41, %v10217_v59  ;;  %v669_v61 = vadd.f32 %v10386_v32, %v657_v37 }
 0x14b   :  { %v623_v19 = vmul.f32 0.03125, %v605_v11  ;;  %9566 = vrsqrt.f32 %v261_v33  ;;  %v308_v3 = vmul.f32 %v10348_v47, %v288_v18 }
 0x14c   :  { %v9557_v21 = vpop.eup %9556  ;;  %v632_v4 = vadd.f32 1e-05, %v624_v44  ;;  %v307_v8 = vmul.f32 %v10348_v47, %v287_v60  ;;  %8602 = vmatprep.mubr.msk.f32.mxu1 %vm87_vm0, %v669_v61 }
 0x14d   :  { %v631_v7 = vadd.f32 1e-05, %v623_v19  ;;  %v9559_v9 = vpop.eup %9558  ;;  %v232_v13 = vpop.xlane.xlu1 %231  ;;  %v328_v17 = vadd.f32 %v10354_v42, %v308_v3  ;;  %v290_v20 = vmul.f32 %v9557_v21, %v10226_v10  ;;  %8603 = vmatmul.mubr.msk.f32.vlgmr.msra.gmra.mrb[0].mxu1 %vm87_vm0, %v670_v40 }
 0x14e   :  { %v229_v58 = vpop.xlane.xlu0 %228  ;;  %9568 = vrsqrt.f32 %v632_v4  ;;  %v248_v59 = vmul.f32 0.03125, %v232_v13  ;;  %v327_v6 = vadd.f32 %v10354_v42, %v307_v8  ;;  %v289_v45 = vmul.f32 %v9559_v9, %v10229_v23 }
 0x14f   :  { %v247_v25 = vmul.f32 0.03125, %v229_v58  ;;  %9570 = vrsqrt.f32 %v631_v7  ;;  %v310_v1 = vmul.f32 %v10348_v47, %v290_v20 }
 0x150   :  { %v9561_v48 = vpop.eup %9560  ;;  %v264_v46 = vadd.f32 1e-05, %v248_v59  ;;  %8579 = vmatprep.mubr.msk.f32.mxu0 %vm87_vm0, %v327_v6  ;;  %v309_v31 = vmul.f32 %v10348_v47, %v289_v45 }
 0x151   :  { %v263_v28 = vadd.f32 1e-05, %v247_v25  ;;  %v9563_v49 = vpop.eup %9562  ;;  %8580 = vmatmul.mubr.msk.f32.gmra.mrb[6].mxu0 %vm87_vm0, %v328_v17  ;;  %v614_v10 = vpop.xlane.xlu1 %613  ;;  %v330_v5 = vadd.f32 %v10354_v42, %v310_v1  ;;  %v292_v34 = vmul.f32 %v9561_v48, %v10236_v26 }
 0x152   :  { %v611_v29 = vpop.xlane.xlu0 %610  ;;  %9572 = vrsqrt.f32 %v264_v46  ;;  %v626_v23 = vmul.f32 0.03125, %v614_v10  ;;  %v291_v24 = vmul.f32 %v9563_v49, %v10239_v27  ;;  %v329_v33 = vadd.f32 %v10354_v42, %v309_v31 }
 0x153   :  { %v625_v35 = vmul.f32 0.03125, %v611_v29  ;;  %9574 = vrsqrt.f32 %v263_v28  ;;  %v312_v41 = vmul.f32 %v10348_v47, %v292_v34 }
 0x154   :  { %v9565_v36 = vpop.eup %9564  ;;  %v634_v11 = vadd.f32 1e-05, %v626_v23  ;;  %v311_v40 = vmul.f32 %v10348_v47, %v291_v24  ;;  %8582 = vmatprep.mubr.msk.f32.mxu0 %vm87_vm0, %v329_v33 }
 0x155   :  { %v633_v37 = vadd.f32 1e-05, %v625_v35  ;;  %v9567_v18 = vpop.eup %9566  ;;  %v620_v44 = vpop.xlane.xlu1 %619  ;;  %v332_v19 = vadd.f32 %v10354_v42, %v312_v41  ;;  %v294_v60 = vmul.f32 %v9565_v36, %v10258_v52  ;;  %8583 = vmatmul.mubr.msk.f32.gmra.mrb[8].mxu0 %vm87_vm0, %v330_v5 }
 0x156   :  { %v617_v26 = vpop.xlane.xlu0 %616  ;;  %9576 = vrsqrt.f32 %v634_v11  ;;  %v628_v27 = vmul.f32 0.03125, %v620_v44  ;;  %v331_v3 = vadd.f32 %v10354_v42, %v311_v40  ;;  %v293_v21 = vmul.f32 %v9567_v18, %v10261_v53 }
 0x157   :  { %v627_v61 = vmul.f32 0.03125, %v617_v26  ;;  %9578 = vrsqrt.f32 %v633_v37  ;;  %v314_v4 = vmul.f32 %v10348_v47, %v294_v60 }
 0x158   :  { %v9569_v7 = vpop.eup %9568  ;;  %v636_v8 = vadd.f32 1e-05, %v628_v27  ;;  %8585 = vmatprep.mubr.msk.f32.mxu0 %vm87_vm0, %v331_v3  ;;  %v313_v52 = vmul.f32 %v10348_v47, %v293_v21 }
 0x159   :  { %v635_v9 = vadd.f32 1e-05, %v627_v61  ;;  %v9571_v13 = vpop.eup %9570  ;;  %v648_v58 = vmul.f32 %v9569_v7, %v10252_v50  ;;  %8586 = vmatmul.mubr.msk.f32.gmra.mrb[10].mxu0 %vm87_vm0, %v332_v19  ;;  %v334_v17 = vadd.f32 %v10354_v42, %v314_v4 }
 0x15a   :  { %9580 = vrsqrt.f32 %v636_v8  ;;  %v647_v20 = vmul.f32 %v9571_v13, %v10255_v51  ;;  %v333_v53 = vadd.f32 %v10354_v42, %v313_v52  ;;  %v10515_v13 = vld [vmem:[%s12408_s7 + $0x4] ss:$0 sm:$0xff] }
 0x15b   :  { %9582 = vrsqrt.f32 %v635_v9  ;;  %v660_v59 = vmul.f32 %v10378_v0, %v648_v58 }
 0x15c   :  { %v9573_v25 = vpop.eup %9572  ;;  %v659_v6 = vmul.f32 %v10378_v0, %v647_v20  ;;  %8588 = vmatprep.mubr.msk.f32.mxu0 %vm87_vm0, %v333_v53 }
 0x15d   :  { %v9575_v45 = vpop.eup %9574  ;;  %v672_v50 = vadd.f32 %v10386_v32, %v660_v59  ;;  %v296_v1 = vmul.f32 %v9573_v25, %v10280_v22  ;;  %8589 = vmatmul.mubr.msk.f32.gmra.mrb[12].mxu0 %vm87_vm0, %v334_v17 }
 0x15e   :  { %v671_v48 = vadd.f32 %v10386_v32, %v659_v6  ;;  %v295_v51 = vmul.f32 %v9575_v45, %v10285_v16 }
 0x15f   :  { %v316_v46 = vmul.f32 %v10348_v47, %v296_v1 }
 0x160   :  { %v9577_v28 = vpop.eup %9576  ;;  %8605 = vmatprep.mubr.msk.f32.mxu1 %vm87_vm0, %v671_v48  ;;  %v315_v49 = vmul.f32 %v10348_v47, %v295_v51 }
 0x161   :  { %v9579_v10 = vpop.eup %9578  ;;  %8606 = vmatmul.mubr.msk.f32.gmra.mrb[2].mxu1 %vm87_vm0, %v672_v50  ;;  %v336_v29 = vadd.f32 %v10354_v42, %v316_v46  ;;  %v650_v22 = vmul.f32 %v9577_v28, %v10298_v30 }
 0x162   :  { %v335_v31 = vadd.f32 %v10354_v42, %v315_v49  ;;  %v649_v5 = vmul.f32 %v9579_v10, %v10303_v2 }
 0x163   :  { %v662_v16 = vmul.f32 %v10378_v0, %v650_v22 }
 0x164   :  { %v9581_v34 = vpop.eup %9580  ;;  %8591 = vmatprep.mubr.msk.f32.mxu0 %vm87_vm0, %v335_v31  ;;  %v661_v23 = vmul.f32 %v10378_v0, %v649_v5 }
 0x165   :  { %v9583_v35 = vpop.eup %9582  ;;  %8592 = vmatmul.mubr.msk.f32.gmra.mrb[14].mxu0 %vm87_vm0, %v336_v29  ;;  %v674_v47 = vadd.f32 %v10386_v32, %v662_v16  ;;  %v652_v24 = vmul.f32 %v9581_v34, %v10312_v54  ;;  %v12419_v54 = vmov 0.0|0.0  }
 0x166   :  { %v673_v30 = vadd.f32 %v10386_v32, %v661_v23  ;;  %v651_v42 = vmul.f32 %v9583_v35, %v10315_v55  ;;  %9210 = vmatprep.subr.bf16.mxu1 %v12419_v54  ;;  %9218 = vmatprep.subr.bf16.mxu0 %v12419_v54  ;;  %v12417_v55 = vmov 0.0  }
 0x167   :  { %v664_v2 = vmul.f32 %v10378_v0, %v652_v24  ;;  %8632 = vmatprep.mubr.msk.f32.mxu0 %vm9915_vm1, %v12417_v55 }
 0x168   :  { %8608 = vmatprep.mubr.msk.f32.mxu1 %vm87_vm0, %v673_v30  ;;  %v663_v33 = vmul.f32 %v10378_v0, %v651_v42  ;;  %v10470_v0 = vld [vmem:[%s12411_s8] ss:$0 sm:$0xff] }
 0x169   :  { %8609 = vmatmul.mubr.msk.f32.gmra.mrb[4].mxu1 %vm87_vm0, %v674_v47  ;;  %v676_v41 = vadd.f32 %v10386_v32, %v664_v2 }
 0x16a   :  { %v675_v36 = vadd.f32 %v10386_v32, %v663_v33 }
 0x16c   :  { %8611 = vmatprep.mubr.msk.f32.mxu1 %vm87_vm0, %v675_v36 }
 0x16d   :  { %8612 = vmatmul.mubr.msk.f32.gmra.mrb[6].mxu1 %vm87_vm0, %v676_v41 }
 0x16e   :  { %8618 = vmatprep.mubr.msk.f32.mxu1 %vm9915_vm1, %v12417_v55 }
 0x212   :  { %v8572_v32 = vpop.f32.mrb[0].mxu0 }
 0x213   :  { %v10473_v11 = vadd.f32 %v8572_v32, %v10470_v0  ;;  %v462_v37 = vpop.f32.mrb[1].mxu0 }
 0x214   :  { %v10476_v40 = vadd.f32 %v10470_v0, %v462_v37 }
 0x216   :  { %v9496_v44 = vpack.i.bf16 %v10473_v11, %v10476_v40  ;;  %v10488_v26 = vpack.c.bf16 %v10473_v11, %v10476_v40  ;;  %v8575_v19 = vpop.f32.mrb[2].mxu0 }
 0x217   :  { %v10491_v60 = vadd.f32 %v8575_v19, %v10470_v0  ;;  %v472_v27 = vpop.f32.mrb[3].mxu0 }
 0x218   :  { %v10494_v61 = vadd.f32 %v10470_v0, %v472_v27  ;;  %9213 = vmatpush3.bf16.xpose.msk.msra.mxu1 %vm10480_vm2, %v10488_v26 }
 0x219   :  { %9214 = vmatprep.subr.bf16.mxu1 %v12419_v54 }
 0x21a   :  { %v9501_v3 = vpack.i.bf16 %v10491_v60, %v10494_v61  ;;  %v10504_v21 = vpack.c.bf16 %v10491_v60, %v10494_v61 }
 0x21c   :  { %v8578_v4 = vpop.f32.mrb[4].mxu0 }
 0x21d   :  { %v10507_v7 = vadd.f32 %v8578_v4, %v10470_v0  ;;  %v482_v8 = vpop.f32.mrb[5].mxu0 }
 0x21e   :  { %v10510_v9 = vadd.f32 %v10470_v0, %v482_v8 }
 0x220   :  { %v9506_v52 = vpack.i.bf16 %v10507_v7, %v10510_v9  ;;  %v10521_v58 = vpack.c.bf16 %v10507_v7, %v10510_v9  ;;  %v8604_v17 = vpop.f32.mrb[0].mxu1 }
 0x221   :  { %v775_v20 = vpop.f32.mrb[1].mxu1  ;;  %v781_v28 = vadd.f32 %v8604_v17, %v10515_v13 }
 0x222   :  { %9221 = vmatpush3.bf16.xpose.msk.msra.mxu0 %vm10480_vm2, %v10521_v58  ;;  %v776_v53 = vadd.f32 %v10515_v13, %v775_v20 }
 0x223   :  { %9226 = vmatprep.subr.bf16.mxu0 %v12419_v54 }
 0x224   :  { %v8581_v59 = vpop.f32.mrb[6].mxu0  ;;  %8619 = vmatmul.mubr.msk.f32.vlgmr.msra.gmra.mrb[8].mxu1 %vm87_vm0, %v776_v53 }
 0x225   :  { %v10529_v25 = vadd.f32 %v8581_v59, %v10470_v0  ;;  %v492_v6 = vpop.f32.mrb[7].mxu0  ;;  %9217 = vmatpush3.bf16.xpose.msk.msra.mxu1 %vm10480_vm2, %v10504_v21  ;;  %8625 = vmatprep.mubr.msk.f32.mxu1 %vm9915_vm1, %v12417_v55 }
 0x226   :  { %v10536_v45 = vadd.f32 %v10470_v0, %v492_v6  ;;  %9222 = vmatprep.subr.bf16.mxu1 %v12419_v54 }
 0x228   :  { %v9511_v50 = vpack.i.bf16 %v10529_v25, %v10536_v45  ;;  %v10545_v1 = vpack.c.bf16 %v10529_v25, %v10536_v45  ;;  %v8584_v48 = vpop.f32.mrb[8].mxu0 }
 0x229   :  { %v10548_v51 = vadd.f32 %v8584_v48, %v10470_v0  ;;  %v502_v46 = vpop.f32.mrb[9].mxu0 }
 0x22a   :  { %v10552_v49 = vadd.f32 %v10470_v0, %v502_v46 }
 0x22c   :  { %v9516_v10 = vpack.i.bf16 %v10548_v51, %v10552_v49  ;;  %v10558_v29 = vpack.c.bf16 %v10548_v51, %v10552_v49  ;;  %8626 = vmatmul.mubr.msk.f32.vlgmr.msra.gmra.mrb[10].mxu1 %vm87_vm0, %v781_v28  ;;  %v8587_v22 = vpop.f32.mrb[10].mxu0 }
 0x22d   :  { %v10562_v31 = vadd.f32 %v8587_v22, %v10470_v0  ;;  %9225 = vmatpush3.bf16.xpose.msk.msra.mxu1 %vm10480_vm2, %v10545_v1  ;;  %v512_v5 = vpop.f32.mrb[11].mxu0  ;;  %8639 = vmatprep.mubr.msk.f32.mxu1 %vm9915_vm1, %v12417_v55 }
 0x22e   :  { %v10570_v16 = vadd.f32 %v10470_v0, %v512_v5  ;;  %9230 = vmatprep.subr.bf16.mxu1 %v12419_v54 }
 0x230   :  { %v9521_v34 = vpack.i.bf16 %v10562_v31, %v10570_v16  ;;  %v10577_v23 = vpack.c.bf16 %v10562_v31, %v10570_v16  ;;  %v8590_v35 = vpop.f32.mrb[12].mxu0 }
 0x231   :  { %v10580_v47 = vadd.f32 %v8590_v35, %v10470_v0  ;;  %v522_v24 = vpop.f32.mrb[13].mxu0 }
 0x232   :  { %v10583_v30 = vadd.f32 %v10470_v0, %v522_v24 }
 0x234   :  { %v8607_v42 = vpop.f32.mrb[2].mxu1  ;;  %v9526_v2 = vpack.i.bf16 %v10580_v47, %v10583_v30  ;;  %v10589_v33 = vpack.c.bf16 %v10580_v47, %v10583_v30 }
 0x235   :  { %v791_v41 = vadd.f32 %v8607_v42, %v10515_v13  ;;  %v785_v36 = vpop.f32.mrb[3].mxu1 }
 0x236   :  { %v786_v32 = vadd.f32 %v10515_v13, %v785_v36 }
 0x237   :  { %8640 = vmatmul.mubr.msk.f32.vlgmr.msra.gmra.mrb[12].mxu1 %vm87_vm0, %v791_v41 }
 0x238   :  { %9233 = vmatpush3.bf16.xpose.msk.msra.mxu1 %vm10480_vm2, %v10577_v23  ;;  %v8593_v37 = vpop.f32.mrb[14].mxu0  ;;  %8633 = vmatmul.mubr.msk.f32.vlgmr.msra.gmra.mrb[16].mxu0 %vm87_vm0, %v786_v32 }
 0x239   :  { %v10599_v19 = vadd.f32 %v8593_v37, %v10470_v0  ;;  %9229 = vmatpush3.bf16.xpose.msk.msra.mxu0 %vm10480_vm2, %v10558_v29  ;;  %v532_v27 = vpop.f32.mrb[15].mxu0  ;;  %8653 = vmatprep.mubr.msk.f32.mxu1 %vm9915_vm1, %v12417_v55 }
 0x23a   :  { %v10607_v4 = vadd.f32 %v10470_v0, %v532_v27  ;;  %9238 = vmatprep.subr.bf16.mxu1 %v12419_v54  ;;  %8646 = vmatprep.mubr.msk.f32.mxu0 %vm9915_vm1, %v12417_v55 }
 0x23b   :  { %9234 = vmatprep.subr.bf16.mxu0 %v12419_v54 }
 0x23c   :  { %v9531_v8 = vpack.i.bf16 %v10599_v19, %v10607_v4  ;;  %v10617_v17 = vpack.c.bf16 %v10599_v19, %v10607_v4  ;;  %v8610_v20 = vpop.f32.mrb[4].mxu1 }
 0x23d   :  { %v801_v53 = vadd.f32 %v8610_v20, %v10515_v13  ;;  %v795_v59 = vpop.f32.mrb[5].mxu1 }
 0x23e   :  { %v796_v0 = vadd.f32 %v10515_v13, %v795_v59 }
 0x23f   :  { %8654 = vmatmul.mubr.msk.f32.vlgmr.msra.gmra.mrb[14].mxu1 %vm87_vm0, %v801_v53 }
 0x240   :  { %9241 = vmatpush3.bf16.xpose.msk.msra.mxu1 %vm10480_vm2, %v10617_v17  ;;  %v8613_v6 = vpop.f32.mrb[6].mxu1  ;;  %8647 = vmatmul.mubr.msk.f32.vlgmr.msra.gmra.mrb[18].mxu0 %vm87_vm0, %v796_v0 }
 0x241   :  { %9237 = vmatpush3.bf16.xpose.msk.msra.mxu0 %vm10480_vm2, %v10589_v33  ;;  %v805_v48 = vpop.f32.mrb[7].mxu1  ;;  %8667 = vmatprep.mubr.msk.f32.mxu1 %vm9915_vm1, %v12417_v55  ;;  %v811_v46 = vadd.f32 %v8613_v6, %v10515_v13 }
 0x242   :  { %8660 = vmatprep.mubr.msk.f32.mxu0 %vm9915_vm1, %v12417_v55  ;;  %9242 = vmatprep.subr.bf16.mxu0 %v12419_v54  ;;  %v806_v28 = vadd.f32 %v10515_v13, %v805_v48 }
 0x243   :  { %9251 = vmatprep.subr.bf16.mxu1 %v12419_v54 }
 0x247   :  { %8668 = vmatmul.mubr.msk.f32.vlgmr.msra.gmra.mrb[16].mxu1 %vm87_vm0, %v811_v46 }
 0x248   :  { %8661 = vmatmul.mubr.msk.f32.vlgmr.msra.gmra.mrb[20].mxu0 %vm87_vm0, %v806_v28  ;;  %8695 = vmatprep.mubr.msk.f32.mxu1 %vm9915_vm1, %v12417_v55 }
 0x249   :  { %8674 = vmatprep.mubr.msk.f32.mxu0 %vm9915_vm1, %v12417_v55 }
 0x2f7   :  { %v889_v22 = vpop.f32.mrb[8].mxu1 }
 0x2f8   :  { %v8620_v5 = vpop.f32.mrb[9].mxu1  ;;  %v1447_v35 = vsel %vm1446_vm3, %v889_v22, -inf }
 0x2f9   :  { %1448 = vmax.xlane.f32.xlu0 %v1447_v35 }
 0x2ff   :  { %v968_v24 = vpop.f32.mrb[10].mxu1 }
 0x300   :  { %v8627_v42 = vpop.f32.mrb[11].mxu1  ;;  %v1450_v13 = vsel %vm1446_vm3, %v968_v24, -inf }
 0x301   :  { %1451 = vmax.xlane.f32.xlu1 %v1450_v13 }
 0x30a   :  { %v1126_v41 = vpop.f32.mrb[12].mxu1 }
 0x30b   :  { %v1047_v36 = vpop.f32.mrb[16].mxu0  ;;  %v8641_v32 = vpop.f32.mrb[13].mxu1  ;;  %v1456_v37 = vsel %vm1446_vm3, %v1126_v41, -inf }
 0x30c   :  { %v8634_v27 = vpop.f32.mrb[17].mxu0  ;;  %1457 = vmax.xlane.f32.xlu1 %v1456_v37  ;;  %v1453_v20 = vsel %vm1446_vm3, %v1047_v36, -inf }
 0x30d   :  { %1454 = vmax.xlane.f32.xlu0 %v1453_v20 }
 0x312   :  { %v1284_v53 = vpop.f32.mrb[14].mxu1 }
 0x313   :  { %v1205_v59 = vpop.f32.mrb[18].mxu0  ;;  %v8655_v0 = vpop.f32.mrb[15].mxu1  ;;  %v1462_v6 = vsel %vm1446_vm3, %v1284_v53, -inf }
 0x314   :  { %v8648_v48 = vpop.f32.mrb[19].mxu0  ;;  %1463 = vmax.xlane.f32.xlu1 %v1462_v6  ;;  %v1459_v46 = vsel %vm1446_vm3, %v1205_v59, -inf }
 0x315   :  { %1460 = vmax.xlane.f32.xlu0 %v1459_v46 }
 0x31a   :  { %v1442_v28 = vpop.f32.mrb[16].mxu1 }
 0x31b   :  { %v1363_v5 = vpop.f32.mrb[20].mxu0  ;;  %v8669_v35 = vpop.f32.mrb[17].mxu1  ;;  %v1468_v42 = vsel %vm1446_vm3, %v1442_v28, -inf }
 0x31c   :  { %1469 = vmax.xlane.f32.xlu1 %v1468_v42  ;;  %v8662_v13 = vpop.f32.mrb[21].mxu0  ;;  %v1465_v32 = vsel %vm1446_vm3, %v1363_v5, -inf }
 0x31d   :  { %1466 = vmax.xlane.f32.xlu0 %v1465_v32 }
 0x32d   :  { %9497 = vrot.lane.b32.xlu1 %v9496_v44, %s9917_s26 }
 0x331   :  { %9507 = vrot.lane.b32.xlu1 %v9506_v52, %s9917_s26 }
 0x333   :  { %9502 = vrot.lane.b32.xlu0 %v9501_v3, %s9917_s26 }
 0x386   :  { %v1449_v37 = vpop.xlane.xlu0 %1448 }
 0x387   :  { %v1471_v27 = vsub.f32 %v889_v22, %v1449_v37 }
 0x389   :  { %v1479_v20 = vmul.f32 1.442695, %v1471_v27 }
 0x38b   :  { %9584 = vpow2.f32 %v1479_v20 }
 0x38e   :  { %v1452_v0 = vpop.xlane.xlu1 %1451 }
 0x38f   :  { %v1472_v6 = vsub.f32 %v968_v24, %v1452_v0 }
 0x391   :  { %v1481_v48 = vmul.f32 1.442695, %v1472_v6 }
 0x393   :  { %9586 = vpow2.f32 %v1481_v48 }
 0x395   :  { %v10663_v11 = vpop.eup %9584 }
 0x396   :  { %v1495_v40 = vsel %vm1446_vm3, %v10663_v11, 0.0 }
 0x397   :  { %1496 = vadd.xlane.f32.xlu0 %v1495_v40 }
 0x399   :  { %v1458_v44 = vpop.xlane.xlu1 %1457 }
 0x39a   :  { %v1474_v7 = vsub.f32 %v1126_v41, %v1458_v44  ;;  %v1455_v9 = vpop.xlane.xlu0 %1454 }
 0x39b   :  { %v1473_v52 = vsub.f32 %v1047_v36, %v1455_v9 }
 0x39c   :  { %v1485_v60 = vmul.f32 1.442695, %v1474_v7 }
 0x39d   :  { %v1483_v61 = vmul.f32 1.442695, %v1473_v52  ;;  %v10667_v3 = vpop.eup %9586 }
 0x39e   :  { %9588 = vpow2.f32 %v1485_v60  ;;  %v1498_v22 = vsel %vm1446_vm3, %v10667_v3, 0.0 }
 0x39f   :  { %9590 = vpow2.f32 %v1483_v61  ;;  %1499 = vadd.xlane.f32.xlu1 %v1498_v22 }
 0x3a1   :  { %v1464_v24 = vpop.xlane.xlu1 %1463 }
 0x3a2   :  { %v1476_v46 = vsub.f32 %v1284_v53, %v1464_v24  ;;  %v1461_v35 = vpop.xlane.xlu0 %1460 }
 0x3a3   :  { %v1475_v42 = vsub.f32 %v1205_v59, %v1461_v35 }
 0x3a4   :  { %v1489_v13 = vmul.f32 1.442695, %v1476_v46 }
 0x3a5   :  { %v1487_v32 = vmul.f32 1.442695, %v1475_v42 }
 0x3a7   :  { %9592 = vpow2.f32 %v1487_v32 }
 0x3a8   :  { %v10671_v41 = vpop.eup %9588  ;;  %9594 = vpow2.f32 %v1489_v13 }
 0x3a9   :  { %v10673_v36 = vpop.eup %9590  ;;  %v1470_v37 = vpop.xlane.xlu1 %1469  ;;  %v1504_v27 = vsel %vm1446_vm3, %v10671_v41, 0.0 }
 0x3aa   :  { %v1478_v20 = vsub.f32 %v1442_v28, %v1470_v37  ;;  %v1467_v0 = vpop.xlane.xlu0 %1466  ;;  %1505 = vadd.xlane.f32.xlu1 %v1504_v27  ;;  %v1501_v53 = vsel %vm1446_vm3, %v10673_v36, 0.0 }
 0x3ab   :  { %v1477_v6 = vsub.f32 %v1363_v5, %v1467_v0  ;;  %1502 = vadd.xlane.f32.xlu0 %v1501_v53 }
 0x3ac   :  { %v1493_v59 = vmul.f32 1.442695, %v1478_v20 }
 0x3ad   :  { %v1491_v48 = vmul.f32 1.442695, %v1477_v6  ;;  %v9498_v40 = vpop.permute.xlu1 %9497 }
 0x3ae   :  { %9596 = vpow2.f32 %v1493_v59  ;;  %v9500_v44 = vunpack.i.h.bf16 %v9498_v40  ;;  %v9499_v7 = vunpack.i.l.bf16 %v9498_v40 }
 0x3af   :  { %9598 = vpow2.f32 %v1491_v48 }
 0x3b0   :  { %v10679_v9 = vpack.c.bf16 %v9500_v44, %v9499_v7  ;;  %v2207_v44 = vld [vmem:[%s12412_s4] sm:$0xff]  ;;  %v2208_v7 = vld [vmem:[%s12412_s4 + $0x8] sm:$0xff] }
 0x3b1   :  { %v10681_v52 = vpop.eup %9592  ;;  %v9508_v25 = vpop.permute.xlu1 %9507 }
 0x3b2   :  { %12428 = vst [vmem:[#allocation2_spill] sm:$0xff] %v10679_v9  ;;  %9244 = vmatpush3.bf16.msra.mxu0 %v10679_v9  ;;  %v1507_v28 = vsel %vm1446_vm3, %v10681_v52, 0.0  ;;  %v10686_v60 = vpop.eup %9594 }
 0x3b3   :  { %1508 = vadd.xlane.f32.xlu0 %v1507_v28  ;;  %9245 = vmatprep.subr.bf16.mxu0 %v12419_v54  ;;  %v1510_v5 = vsel %vm1446_vm3, %v10686_v60, 0.0 }
 0x3b7   :  { %1511 = vadd.xlane.f32.xlu0 %v1510_v5 }
 0x3b8   :  { %v10691_v61 = vpop.eup %9596 }
 0x3b9   :  { %v10693_v22 = vpop.eup %9598  ;;  %v1516_v46 = vsel %vm1446_vm3, %v10691_v61, 0.0  ;;  %v12433_v18 = vld [vmem:[#allocation2_spill] sm:$0xff] }
 0x3ba   :  { %v1513_v24 = vsel %vm1446_vm3, %v10693_v22, 0.0 }
 0x3bb   :  { %1514 = vadd.xlane.f32.xlu1 %v1513_v24  ;;  %1517 = vadd.xlane.f32.xlu0 %v1516_v46  ;;  %v10782_v46 = vpack.c.bf16 %v2208_v7, %v2207_v44 }
 0x3cc   :  { %9517 = vrot.lane.b32.xlu1 %v9516_v10, %s9917_s26 }
 0x3d0   :  { %9522 = vrot.lane.b32.xlu1 %v9521_v34, %s9917_s26 }
 0x3d1   :  { %9512 = vrot.lane.b32.xlu0 %v9511_v50, %s9917_s26 }
 0x3d4   :  { %9527 = vrot.lane.b32.xlu1 %v9526_v2, %s9917_s26 }
 0x3d5   :  { %2175 = vrot.lane.b32.xlu0 %v10025_v15, %s9918_s27  ;;  %v9503_v15 = vpop.permute.xlu0 %9502 }
 0x3d6   :  { %v9505_v45 = vunpack.i.h.bf16 %v9503_v15  ;;  %v9504_v50 = vunpack.i.l.bf16 %v9503_v15 }
 0x3d8   :  { %9532 = vrot.lane.b32.xlu1 %v9531_v8, %s9917_s26  ;;  %v10736_v51 = vpack.c.bf16 %v9505_v45, %v9504_v50 }
 0x3d9   :  { %2179 = vrot.lane.b32.xlu0 %v10099_v39, %s9918_s27 }
 0x3dc   :  { %2177 = vrot.lane.b32.xlu1 %v10022_v14, %s9918_s27 }
 0x3dd   :  { %2183 = vrot.lane.b32.xlu0 %v10151_v57, %s9918_s27 }
 0x3e0   :  { %2181 = vrot.lane.b32.xlu1 %v10096_v38, %s9918_s27 }
 0x3e1   :  { %2187 = vrot.lane.b32.xlu0 %v10163_v63, %s9918_s27 }
 0x3e4   :  { %2185 = vrot.lane.b32.xlu1 %v10148_v56, %s9918_s27  ;;  %v9510_v56 = vunpack.i.h.bf16 %v9508_v25 }
 0x3e8   :  { %2189 = vrot.lane.b32.xlu1 %v10160_v62, %s9918_s27  ;;  %v9509_v62 = vunpack.i.l.bf16 %v9508_v25  ;;  %v2210_v25 = vld [vmem:[%s12412_s4 + $0x18] sm:$0xff] }
 0x3ea   :  { %v10744_v31 = vpack.c.bf16 %v9510_v56, %v9509_v62 }
 0x424   :  { %v1497_v14 = vpop.xlane.xlu0 %1496 }
 0x425   :  { %9600 = vrcp.f32 %v1497_v14  ;;  %v2209_v14 = vld [vmem:[%s12412_s4 + $0x10] sm:$0xff] }
 0x42c   :  { %v1500_v39 = vpop.xlane.xlu1 %1499 }
 0x42d   :  { %9602 = vrcp.f32 %v1500_v39 }
 0x42f   :  { %v9601_v38 = vpop.eup %9600 }
 0x430   :  { %v1520_v57 = vmul.f32 %v9601_v38, %v10663_v11  ;;  %v10798_v38 = vpack.c.bf16 %v2210_v25, %v2209_v14 }
 0x432   :  { %8675 = vmatmul.mubr.msk.f32.vlgmr.msra.gmra.mrb[22].mxu0 %vm1446_vm3, %v1520_v57 }
 0x433   :  { %9247 = vmatpush3.bf16.msra.mxu0 %v10736_v51  ;;  %8681 = vmatprep.mubr.msk.f32.mxu0 %vm9915_vm1, %v12417_v55 }
 0x434   :  { %9248 = vmatprep.subr.bf16.mxu0 %v12419_v54 }
 0x437   :  { %v9603_v63 = vpop.eup %9602  ;;  %v1506_v34 = vpop.xlane.xlu1 %1505 }
 0x438   :  { %v1503_v49 = vpop.xlane.xlu0 %1502  ;;  %v1522_v10 = vmul.f32 %v9603_v63, %v10667_v3  ;;  %v2212_v63 = vld [vmem:[%s12412_s4 + $0x28] sm:$0xff] }
 0x439   :  { %9604 = vrcp.f32 %v1503_v49 }
 0x43a   :  { %8682 = vmatmul.mubr.msk.f32.vlgmr.msra.gmra.mrb[24].mxu0 %vm1446_vm3, %v1522_v10  ;;  %9606 = vrcp.f32 %v1506_v34  ;;  %v2214_v10 = vld [vmem:[%s12412_s4 + $0x38] sm:$0xff] }
 0x43b   :  { %9250 = vmatpush3.bf16.msra.mxu0 %v10744_v31  ;;  %8688 = vmatprep.mubr.msk.f32.mxu0 %vm9915_vm1, %v12417_v55 }
 0x43c   :  { %9254 = vmatprep.subr.bf16.mxu0 %v12419_v54 }
 0x440   :  { %v1509_v16 = vpop.xlane.xlu0 %1508 }
 0x441   :  { %9608 = vrcp.f32 %v1509_v16 }
 0x443   :  { %v9605_v47 = vpop.eup %9604 }
 0x444   :  { %v1512_v30 = vpop.xlane.xlu0 %1511  ;;  %v1524_v2 = vmul.f32 %v9605_v47, %v10673_v36  ;;  %v9607_v32 = vpop.eup %9606 }
 0x445   :  { %9610 = vrcp.f32 %v1512_v30  ;;  %v1526_v59 = vmul.f32 %v9607_v32, %v10671_v41 }
 0x446   :  { %8689 = vmatmul.mubr.msk.f32.vlgmr.msra.gmra.mrb[26].mxu0 %vm1446_vm3, %v1524_v2 }
 0x447   :  { %8702 = vmatprep.mubr.msk.f32.mxu0 %vm9915_vm1, %v12417_v55 }
 0x448   :  { %v1515_v19 = vpop.xlane.xlu1 %1514  ;;  %v1518_v4 = vpop.xlane.xlu0 %1517 }
 0x449   :  { %9612 = vrcp.f32 %v1515_v19 }
 0x44a   :  { %9614 = vrcp.f32 %v1518_v4 }
 0x44b   :  { %v9609_v37 = vpop.eup %9608 }
 0x44c   :  { %v9518_v8 = vpop.permute.xlu1 %9517  ;;  %v9513_v11 = vpop.permute.xlu0 %9512  ;;  %v1528_v6 = vmul.f32 %v9609_v37, %v10681_v52 }
 0x44d   :  { %v9520_v3 = vunpack.i.h.bf16 %v9518_v8  ;;  %v9519_v35 = vunpack.i.l.bf16 %v9518_v8  ;;  %v9515_v42 = vunpack.i.h.bf16 %v9513_v11  ;;  %v9514_v13 = vunpack.i.l.bf16 %v9513_v11 }
 0x44f   :  { %v10755_v27 = vpack.c.bf16 %v9520_v3, %v9519_v35  ;;  %v10757_v36 = vpack.c.bf16 %v9515_v42, %v9514_v13  ;;  %v9611_v48 = vpop.eup %9610 }
 0x450   :  { %v9523_v20 = vpop.permute.xlu1 %9522  ;;  %v1530_v24 = vmul.f32 %v9611_v48, %v10686_v60  ;;  %v10830_v34 = vpop.permute.xlu0 %2175 }
 0x451   :  { %v9525_v0 = vunpack.i.h.bf16 %v9523_v20  ;;  %v9524_v53 = vunpack.i.l.bf16 %v9523_v20  ;;  %9256 = vmatpush3.bf16.msra.mxu0 %v10755_v27  ;;  %9253 = vmatpush3.bf16.msra.mxu1 %v10757_v36 }
 0x452   :  { %9257 = vmatprep.subr.bf16.mxu1 %v12419_v54  ;;  %9260 = vmatprep.subr.bf16.mxu0 %v12419_v54 }
 0x453   :  { %v10765_v40 = vpack.c.bf16 %v9525_v0, %v9524_v53  ;;  %v9613_v5 = vpop.eup %9612 }
 0x454   :  { %v9528_v28 = vpop.permute.xlu1 %9527  ;;  %8703 = vmatmul.mubr.msk.f32.vlgmr.msra.gmra.mrb[28].mxu0 %vm1446_vm3, %v1528_v6  ;;  %8696 = vmatmul.mubr.msk.f32.vlgmr.msra.gmra.mrb[18].mxu1 %vm1446_vm3, %v1526_v59  ;;  %v1532_v50 = vmul.f32 %v9613_v5, %v10693_v22  ;;  %v9615_v57 = vpop.eup %9614  ;;  %v2211_v22 = vld [vmem:[%s12412_s4 + $0x20] sm:$0xff] }
 0x455   :  { %v9530_v41 = vunpack.i.h.bf16 %v9528_v28  ;;  %v9529_v52 = vunpack.i.l.bf16 %v9528_v28  ;;  %9259 = vmatpush3.bf16.msra.mxu1 %v10765_v40  ;;  %8709 = vmatprep.mubr.msk.f32.mxu1 %vm9915_vm1, %v12417_v55  ;;  %v1534_v62 = vmul.f32 %v9615_v57, %v10691_v61  ;;  %v10815_v49 = vpack.c.bf16 %v2212_v63, %v2211_v22  ;;  %v2213_v61 = vld [vmem:[%s12412_s4 + $0x30] sm:$0xff]  ;;  %v10844_v3 = vpop.permute.xlu0 %2179 }
 0x456   :  { %8716 = vmatprep.mubr.msk.f32.mxu0 %vm9915_vm1, %v12417_v55  ;;  %9263 = vmatprep.subr.bf16.mxu1 %v12419_v54  ;;  %v10824_v16 = vpack.c.bf16 %v2214_v10, %v2213_v61 }
 0x457   :  { %v10784_v15 = vpack.c.bf16 %v9530_v41, %v9529_v52  ;;  %12429 = vst [vmem:[#allocation3_spill] sm:$0xff] %v10815_v49 }
 0x458   :  { %v9533_v39 = vpop.permute.xlu1 %9532  ;;  %8710 = vmatmul.mubr.msk.f32.vlgmr.msra.gmra.mrb[20].mxu1 %vm1446_vm3, %v1530_v24  ;;  %12430 = vst [vmem:[#allocation4_spill] sm:$0xff] %v10824_v16 }
 0x459   :  { %v9535_v60 = vunpack.i.h.bf16 %v9533_v39  ;;  %v9534_v45 = vunpack.i.l.bf16 %v9533_v39  ;;  %9262 = vmatpush3.bf16.msra.mxu0 %v10784_v15  ;;  %8723 = vmatprep.mubr.msk.f32.mxu1 %vm9915_vm1, %v12417_v55  ;;  %v10851_v37 = vpop.permute.xlu0 %2183 }
 0x45a   :  { %9267 = vmatprep.subr.bf16.mxu0 %v10782_v46 }
 0x45b   :  { %v10800_v56 = vpack.c.bf16 %v9535_v60, %v9534_v45 }
 0x45c   :  { %8717 = vmatmul.mubr.msk.f32.vlgmr.msra.gmra.mrb[30].mxu0 %vm1446_vm3, %v1532_v50  ;;  %v10835_v19 = vpop.permute.xlu1 %2177  ;;  %v8061_v50 = vld [vmem:[%s12413_s9] ss:$0 sm:$0xff] }
 0x45d   :  { %9265 = vmatpush3.bf16.msra.mxu1 %v10800_v56  ;;  %9269 = vmatpush3.bf16.msra.mxu0 %v10782_v46  ;;  %v10864_v52 = vpop.permute.xlu0 %2187 }
 0x45e   :  { %9271 = vmatprep.subr.bf16.mxu0 %v10798_v38 }
 0x460   :  { %8724 = vmatmul.mubr.msk.f32.vlgmr.msra.gmra.mrb[22].mxu1 %vm1446_vm3, %v1534_v62  ;;  %v10849_v32 = vpop.permute.xlu1 %2181 }
 0x461   :  { %9273 = vmatpush3.bf16.msra.mxu0 %v10798_v38 }
 0x462   :  { %9275 = vmatprep.subr.bf16.mxu0 %v10815_v49 }
 0x464   :  { %v10858_v44 = vpop.permute.xlu1 %2185 }
 0x465   :  { %9277 = vmatpush3.bf16.msra.mxu0 %v10815_v49 }
 0x466   :  { %9279 = vmatprep.subr.bf16.mxu0 %v10824_v16 }
 0x468   :  { %v10869_v25 = vpop.permute.xlu1 %2189 }
 0x469   :  { %9281 = vmatpush3.bf16.msra.mxu0 %v10824_v16 }
 0x46a   :  { %9299 = vmatprep.subr.bf16.mxu0 %v10329_v43 }
 0x505   :  { %v1610_v47 = vpop.f32.mrb[22].mxu0 }
 0x506   :  { %v2199_v30 = vsel %vm87_vm0, %v1610_v47, %v10830_v34  ;;  %v8676_v2 = vpop.f32.mrb[23].mxu0 }
 0x507   :  { %8742 = vmatprep.mubr.msk.f32.mxu0 %vm2221_vm4, %v2199_v30 }
 0x50d   :  { %v1689_v4 = vpop.f32.mrb[24].mxu0 }
 0x50e   :  { %v2200_v8 = vsel %vm87_vm0, %v1689_v4, %v10835_v19  ;;  %v8683_v11 = vpop.f32.mrb[25].mxu0 }
 0x50f   :  { %8743 = vmatmul.mubr.msk.f32.vlgmr.msra.gmra.mrb[32].mxu0 %vm2221_vm4, %v2200_v8 }
 0x510   :  { %9301 = vmatpush3.bf16.msra.mxu0 %v10329_v43 }
 0x511   :  { %9303 = vmatprep.subr.bf16.mxu0 %v10341_v12 }
 0x514   :  { %9305 = vmatpush3.bf16.msra.mxu0 %v10341_v12 }
 0x515   :  { %9310 = vmatprep.subr.bf16.mxu0 %v12419_v54 }
 0x519   :  { %v1768_v35 = vpop.f32.mrb[26].mxu0 }
 0x51a   :  { %v2201_v42 = vsel %vm87_vm0, %v1768_v35, %v10844_v3  ;;  %v8690_v13 = vpop.f32.mrb[27].mxu0 }
 0x51b   :  { %8745 = vmatprep.mubr.msk.f32.mxu0 %vm2221_vm4, %v2201_v42 }
 0x527   :  { %v1926_v20 = vpop.f32.mrb[28].mxu0  ;;  %v1847_v0 = vpop.f32.mrb[18].mxu1 }
 0x528   :  { %v2202_v53 = vsel %vm87_vm0, %v1847_v0, %v10849_v32  ;;  %v8704_v6 = vpop.f32.mrb[29].mxu0  ;;  %v8697_v59 = vpop.f32.mrb[19].mxu1  ;;  %v2203_v48 = vsel %vm87_vm0, %v1926_v20, %v10851_v37 }
 0x529   :  { %8746 = vmatmul.mubr.msk.f32.gmra.mrb[34].mxu0 %vm2221_vm4, %v2202_v53 }
 0x52a   :  { %8748 = vmatprep.mubr.msk.f32.mxu0 %vm2221_vm4, %v2203_v48 }
 0x52b   :  { %v2005_v7 = vpop.f32.mrb[20].mxu1 }
 0x52c   :  { %v2204_v28 = vsel %vm87_vm0, %v2005_v7, %v10858_v44  ;;  %v8711_v41 = vpop.f32.mrb[21].mxu1 }
 0x52d   :  { %8749 = vmatmul.mubr.msk.f32.gmra.mrb[36].mxu0 %vm2221_vm4, %v2204_v28 }
 0x52f   :  { %v2084_v5 = vpop.f32.mrb[30].mxu0 }
 0x530   :  { %v2205_v24 = vsel %vm87_vm0, %v2084_v5, %v10864_v52  ;;  %v8718_v14 = vpop.f32.mrb[31].mxu0 }
 0x531   :  { %8751 = vmatprep.mubr.msk.f32.mxu0 %vm2221_vm4, %v2205_v24 }
 0x533   :  { %v2163_v39 = vpop.f32.mrb[22].mxu1 }
 0x534   :  { %v2206_v60 = vsel %vm87_vm0, %v2163_v39, %v10869_v25  ;;  %v8725_v45 = vpop.f32.mrb[23].mxu1 }
 0x535   :  { %8752 = vmatmul.mubr.msk.f32.gmra.mrb[38].mxu0 %vm2221_vm4, %v2206_v60 }
 0x5e2   :  { %v8744_v57 = vpop.f32.mrb[32].mxu0 }
 0x5e3   :  { %v10877_v62 = vadd.f32 %v8744_v57, %v8061_v50  ;;  %v2312_v22 = vpop.f32.mrb[33].mxu0 }
 0x5e4   :  { %v10879_v63 = vadd.f32 %v8061_v50, %v2312_v22 }
 0x5e5   :  { %2409 = vrot.lane.b32.xlu1 %v10877_v62, %s9918_s27  ;;  %v8071_v0 = vmul.f32 -1.442695, %v10877_v62 }
 0x5e6   :  { %2407 = vrot.lane.b32.xlu0 %v10879_v63, %s9918_s27  ;;  %v8070_v53 = vmul.f32 -1.442695, %v10879_v63 }
 0x5e7   :  { %9616 = vpow2.f32 %v8071_v0 }
 0x5e8   :  { %9618 = vpow2.f32 %v8070_v53 }
 0x5f1   :  { %v9617_v6 = vpop.eup %9616 }
 0x5f2   :  { %v9619_v59 = vpop.eup %9618  ;;  %v2376_v48 = vadd.f32 1.0, %v9617_v6 }
 0x5f3   :  { %v2375_v7 = vadd.f32 1.0, %v9619_v59 }
 0x5f4   :  { %9620 = vrcp.f32 %v2376_v48 }
 0x5f5   :  { %9622 = vrcp.f32 %v2375_v7 }
 0x5fc   :  { %v8747_v61 = vpop.f32.mrb[34].mxu0 }
 0x5fd   :  { %v10885_v10 = vadd.f32 %v8747_v61, %v8061_v50  ;;  %v2322_v47 = vpop.f32.mrb[35].mxu0 }
 0x5fe   :  { %v10887_v30 = vadd.f32 %v8061_v50, %v2322_v47  ;;  %v10915_v14 = vpop.eup %9620 }
 0x5ff   :  { %2413 = vrot.lane.b32.xlu1 %v10885_v10, %s9918_s27  ;;  %v8073_v28 = vmul.f32 -1.442695, %v10885_v10  ;;  %v10917_v60 = vpop.eup %9622 }
 0x600   :  { %v8750_v2 = vpop.f32.mrb[36].mxu0  ;;  %2411 = vrot.lane.b32.xlu0 %v10887_v30, %s9918_s27  ;;  %v8072_v41 = vmul.f32 -1.442695, %v10887_v30 }
 0x601   :  { %v10893_v4 = vadd.f32 %v8750_v2, %v8061_v50  ;;  %v2332_v8 = vpop.f32.mrb[37].mxu0  ;;  %9624 = vpow2.f32 %v8073_v28 }
 0x602   :  { %v10895_v11 = vadd.f32 %v8061_v50, %v2332_v8  ;;  %9626 = vpow2.f32 %v8072_v41 }
 0x603   :  { %2417 = vrot.lane.b32.xlu1 %v10893_v4, %s9918_s27  ;;  %v8075_v5 = vmul.f32 -1.442695, %v10893_v4 }
 0x604   :  { %2415 = vrot.lane.b32.xlu0 %v10895_v11, %s9918_s27  ;;  %v8074_v24 = vmul.f32 -1.442695, %v10895_v11 }
 0x605   :  { %9628 = vpow2.f32 %v8075_v5 }
 0x606   :  { %9630 = vpow2.f32 %v8074_v24 }
 0x608   :  { %v8753_v35 = vpop.f32.mrb[38].mxu0 }
 0x609   :  { %v10901_v42 = vadd.f32 %v8753_v35, %v8061_v50  ;;  %v2342_v13 = vpop.f32.mrb[39].mxu0 }
 0x60a   :  { %v10903_v20 = vadd.f32 %v8061_v50, %v2342_v13 }
 0x60b   :  { %2421 = vrot.lane.b32.xlu1 %v10901_v42, %s9918_s27  ;;  %v8077_v22 = vmul.f32 -1.442695, %v10901_v42  ;;  %v9625_v47 = vpop.eup %9624 }
 0x60c   :  { %2419 = vrot.lane.b32.xlu0 %v10903_v20, %s9918_s27  ;;  %v8076_v61 = vmul.f32 -1.442695, %v10903_v20  ;;  %v9627_v2 = vpop.eup %9626  ;;  %v2378_v8 = vadd.f32 1.0, %v9625_v47 }
 0x60d   :  { %9632 = vpow2.f32 %v8077_v22  ;;  %v2377_v13 = vadd.f32 1.0, %v9627_v2 }
 0x60e   :  { %9634 = vpow2.f32 %v8076_v61 }
 0x60f   :  { %v9629_v35 = vpop.eup %9628  ;;  %9636 = vrcp.f32 %v2378_v8 }
 0x610   :  { %v9631_v0 = vpop.eup %9630  ;;  %v2380_v53 = vadd.f32 1.0, %v9629_v35  ;;  %9638 = vrcp.f32 %v2377_v13 }
 0x611   :  { %v2379_v6 = vadd.f32 1.0, %v9631_v0 }
 0x612   :  { %9640 = vrcp.f32 %v2380_v53 }
 0x613   :  { %9642 = vrcp.f32 %v2379_v6 }
 0x617   :  { %v9633_v59 = vpop.eup %9632 }
 0x618   :  { %v9635_v48 = vpop.eup %9634  ;;  %v2382_v7 = vadd.f32 1.0, %v9633_v59 }
 0x619   :  { %v2381_v28 = vadd.f32 1.0, %v9635_v48  ;;  %v10925_v41 = vpop.eup %9636 }
 0x61a   :  { %v10927_v24 = vpop.eup %9638  ;;  %9644 = vrcp.f32 %v2382_v7 }
 0x61b   :  { %9646 = vrcp.f32 %v2381_v28 }
 0x657   :  { %v2410_v39 = vpop.permute.xlu1 %2409 }
 0x658   :  { %v2432_v45 = vmul.f32 %v10915_v14, %v2410_v39  ;;  %v2408_v50 = vpop.permute.xlu0 %2407 }
 0x659   :  { %v2431_v57 = vmul.f32 %v10917_v60, %v2408_v50 }
 0x65a   :  { %2449 = vrot.lane.b32.xlu1 %v2432_v45, %s9919_s23 }
 0x65b   :  { %2447 = vrot.lane.b32.xlu0 %v2431_v57, %s9919_s23  ;;  %v10932_v57 = vpop.eup %9640 }
 0x65c   :  { %v10935_v61 = vpop.eup %9642 }
 0x65d   :  { %v10941_v35 = vpop.eup %9644 }
 0x65e   :  { %v10943_v0 = vpop.eup %9646 }
 0x671   :  { %v2414_v5 = vpop.permute.xlu1 %2413 }
 0x672   :  { %v2434_v39 = vmul.f32 %v10925_v41, %v2414_v5  ;;  %v2412_v45 = vpop.permute.xlu0 %2411 }
 0x673   :  { %v2433_v50 = vmul.f32 %v10927_v24, %v2412_v45 }
 0x674   :  { %2453 = vrot.lane.b32.xlu1 %v2434_v39, %s9919_s23 }
 0x675   :  { %v2418_v22 = vpop.permute.xlu1 %2417  ;;  %2451 = vrot.lane.b32.xlu0 %v2433_v50, %s9919_s23 }
 0x676   :  { %v2436_v47 = vmul.f32 %v10932_v57, %v2418_v22  ;;  %v2416_v2 = vpop.permute.xlu0 %2415 }
 0x677   :  { %v2435_v8 = vmul.f32 %v10935_v61, %v2416_v2 }
 0x678   :  { %2457 = vrot.lane.b32.xlu1 %v2436_v47, %s9919_s23 }
 0x679   :  { %2455 = vrot.lane.b32.xlu0 %v2435_v8, %s9919_s23 }
 0x67d   :  { %v2422_v13 = vpop.permute.xlu1 %2421 }
 0x67e   :  { %v2438_v53 = vmul.f32 %v10941_v35, %v2422_v13  ;;  %v2420_v6 = vpop.permute.xlu0 %2419 }
 0x67f   :  { %v2437_v59 = vmul.f32 %v10943_v0, %v2420_v6 }
 0x680   :  { %2461 = vrot.lane.b32.xlu1 %v2438_v53, %s9919_s23 }
 0x681   :  { %2459 = vrot.lane.b32.xlu0 %v2437_v59, %s9919_s23 }
 0x6cc   :  { %v2450_v48 = vpop.permute.xlu1 %2449 }
 0x6cd   :  { %v2472_v7 = vadd.f32 %v2450_v48, %v10877_v62  ;;  %v2448_v28 = vpop.permute.xlu0 %2447 }
 0x6ce   :  { %v2471_v5 = vadd.f32 %v2448_v28, %v10879_v63 }
 0x6cf   :  { %9648 = vtanh.f32 %v2472_v7 }
 0x6d0   :  { %9650 = vtanh.f32 %v2471_v5  ;;  %v2487_v5 = vsub.f32 1.0, %v10917_v60 }
 0x6d9   :  { %v9649_v39 = vpop.eup %9648 }
 0x6da   :  { %v9651_v45 = vpop.eup %9650  ;;  %2505 = vrot.lane.b32.xlu1 %v9649_v39, %s9917_s26  ;;  %v2536_v39 = vmul.f32 %v10915_v14, %v10835_v19  ;;  %v2489_v19 = vsub.f32 1.0, %v10927_v24 }
 0x6db   :  { %2503 = vrot.lane.b32.xlu0 %v9651_v45, %s9917_s26 }
 0x6e6   :  { %v2454_v50 = vpop.permute.xlu1 %2453 }
 0x6e7   :  { %v2474_v22 = vadd.f32 %v2454_v50, %v10885_v10  ;;  %v2452_v47 = vpop.permute.xlu0 %2451 }
 0x6e8   :  { %v2473_v2 = vadd.f32 %v2452_v47, %v10887_v30 }
 0x6e9   :  { %9652 = vtanh.f32 %v2474_v22  ;;  %v2535_v22 = vmul.f32 %v10917_v60, %v10830_v34 }
 0x6ea   :  { %9654 = vtanh.f32 %v2473_v2  ;;  %v2458_v62 = vpop.permute.xlu1 %2457 }
 0x6eb   :  { %v2476_v8 = vadd.f32 %v2458_v62, %v10893_v4  ;;  %v2456_v63 = vpop.permute.xlu0 %2455 }
 0x6ec   :  { %v2475_v13 = vadd.f32 %v2456_v63, %v10895_v11 }
 0x6ed   :  { %9656 = vtanh.f32 %v2476_v8  ;;  %v2490_v8 = vsub.f32 1.0, %v10925_v41 }
 0x6ee   :  { %9658 = vtanh.f32 %v2475_v13  ;;  %v2537_v13 = vmul.f32 %v10927_v24, %v10844_v3  ;;  %v2539_v3 = vmul.f32 %v10935_v61, %v10851_v37  ;;  %v2542_v37 = vmul.f32 %v10941_v35, %v10869_v25 }
 0x6f2   :  { %v2462_v53 = vpop.permute.xlu1 %2461 }
 0x6f3   :  { %v9653_v6 = vpop.eup %9652  ;;  %v2478_v59 = vadd.f32 %v2462_v53, %v10901_v42  ;;  %v2460_v48 = vpop.permute.xlu0 %2459  ;;  %v2488_v42 = vsub.f32 1.0, %v10915_v14  ;;  %v2538_v14 = vmul.f32 %v10925_v41, %v10849_v32 }
 0x6f4   :  { %v9655_v7 = vpop.eup %9654  ;;  %v2477_v10 = vadd.f32 %v2460_v48, %v10903_v20  ;;  %2509 = vrot.lane.b32.xlu1 %v9653_v6, %s9917_s26 }
 0x6f5   :  { %9660 = vtanh.f32 %v2478_v59  ;;  %2507 = vrot.lane.b32.xlu0 %v9655_v7, %s9917_s26  ;;  %v2492_v59 = vsub.f32 1.0, %v10932_v57 }
 0x6f6   :  { %9662 = vtanh.f32 %v2477_v10  ;;  %v2491_v10 = vsub.f32 1.0, %v10935_v61 }
 0x6f7   :  { %v9657_v30 = vpop.eup %9656 }
 0x6f8   :  { %v9659_v4 = vpop.eup %9658  ;;  %2513 = vrot.lane.b32.xlu1 %v9657_v30, %s9917_s26  ;;  %v2540_v30 = vmul.f32 %v10932_v57, %v10858_v44  ;;  %v2494_v44 = vsub.f32 1.0, %v10941_v35 }
 0x6f9   :  { %2511 = vrot.lane.b32.xlu0 %v9659_v4, %s9917_s26 }
 0x6ff   :  { %v9661_v11 = vpop.eup %9660 }
 0x700   :  { %v9663_v28 = vpop.eup %9662  ;;  %2517 = vrot.lane.b32.xlu1 %v9661_v11, %s9917_s26 }
 0x701   :  { %2515 = vrot.lane.b32.xlu0 %v9663_v28, %s9917_s26  ;;  %v2493_v28 = vsub.f32 1.0, %v10943_v0 }
 0x74c   :  { %v2506_v20 = vpop.permute.xlu1 %2505 }
 0x74d   :  { %v2528_v45 = vmul.f32 %v2506_v20, %v2488_v42  ;;  %v2504_v50 = vpop.permute.xlu0 %2503  ;;  %v2541_v20 = vmul.f32 %v10943_v0, %v10864_v52 }
 0x74e   :  { %v2527_v47 = vmul.f32 %v2504_v50, %v2487_v5 }
 0x74f   :  { %v10971_v2 = vadd.f32 %v2536_v39, %v2528_v45 }
 0x750   :  { %v10973_v62 = vadd.f32 %v2535_v22, %v2527_v47 }
 0x751   :  { %2561 = vrot.lane.b32.xlu1 %v10971_v2, %s9917_s26 }
 0x752   :  { %2559 = vrot.lane.b32.xlu0 %v10973_v62, %s9917_s26 }
 0x766   :  { %v2510_v63 = vpop.permute.xlu1 %2509 }
 0x767   :  { %v2530_v34 = vmul.f32 %v2510_v63, %v2490_v8  ;;  %v2508_v60 = vpop.permute.xlu0 %2507 }
 0x768   :  { %v2529_v53 = vmul.f32 %v2508_v60, %v2489_v19 }
 0x769   :  { %v10985_v6 = vadd.f32 %v2538_v14, %v2530_v34 }
 0x76a   :  { %v10988_v48 = vadd.f32 %v2537_v13, %v2529_v53  ;;  %v2514_v7 = vpop.permute.xlu1 %2513 }
 0x76b   :  { %v2532_v4 = vmul.f32 %v2514_v7, %v2492_v59  ;;  %2565 = vrot.lane.b32.xlu1 %v10985_v6, %s9917_s26  ;;  %v2512_v32 = vpop.permute.xlu0 %2511 }
 0x76c   :  { %v2531_v41 = vmul.f32 %v2512_v32, %v2491_v10  ;;  %2563 = vrot.lane.b32.xlu0 %v10988_v48, %s9917_s26 }
 0x76d   :  { %v10999_v24 = vadd.f32 %v2540_v30, %v2532_v4 }
 0x76e   :  { %v11001_v11 = vadd.f32 %v2539_v3, %v2531_v41 }
 0x76f   :  { %2569 = vrot.lane.b32.xlu1 %v10999_v24, %s9917_s26 }
 0x770   :  { %2567 = vrot.lane.b32.xlu0 %v11001_v11, %s9917_s26 }
 0x772   :  { %v2518_v57 = vpop.permute.xlu1 %2517 }
 0x773   :  { %v2534_v61 = vmul.f32 %v2518_v57, %v2494_v44  ;;  %v2516_v42 = vpop.permute.xlu0 %2515 }
 0x774   :  { %v2533_v5 = vmul.f32 %v2516_v42, %v2493_v28 }
 0x775   :  { %v11013_v39 = vadd.f32 %v2542_v37, %v2534_v61 }
 0x776   :  { %v11015_v45 = vadd.f32 %v2541_v20, %v2533_v5 }
 0x777   :  { %2573 = vrot.lane.b32.xlu1 %v11013_v39, %s9917_s26 }
 0x778   :  { %2571 = vrot.lane.b32.xlu0 %v11015_v45, %s9917_s26 }
 0x7c3   :  { %v2562_v50 = vpop.permute.xlu1 %2561 }
 0x7c4   :  { %v2560_v22 = vpop.permute.xlu0 %2559  ;;  %v2586_v25 = vsel %vm87_vm0, %v2562_v50, 0.0 }
 0x7c5   :  { %2587 = vadd.xlane.f32.xlu1 %v2586_v25  ;;  %v2583_v35 = vsel %vm87_vm0, %v2560_v22, 0.0 }
 0x7c6   :  { %2584 = vadd.xlane.f32.xlu0 %v2583_v35 }
 0x7dd   :  { %v2566_v52 = vpop.permute.xlu1 %2565 }
 0x7de   :  { %v2564_v0 = vpop.permute.xlu0 %2563  ;;  %v2592_v19 = vsel %vm87_vm0, %v2566_v52, 0.0 }
 0x7df   :  { %v2589_v47 = vsel %vm87_vm0, %v2564_v0, 0.0 }
 0x7e0   :  { %2590 = vadd.xlane.f32.xlu0 %v2589_v47 }
 0x7e1   :  { %v2570_v8 = vpop.permute.xlu1 %2569 }
 0x7e2   :  { %v2598_v63 = vsel %vm87_vm0, %v2570_v8, 0.0  ;;  %v2568_v14 = vpop.permute.xlu0 %2567 }
 0x7e3   :  { %2599 = vadd.xlane.f32.xlu1 %v2598_v63  ;;  %v2595_v34 = vsel %vm87_vm0, %v2568_v14, 0.0 }
 0x7e4   :  { %2593 = vadd.xlane.f32.xlu0 %v2592_v19 }
 0x7e8   :  { %2596 = vadd.xlane.f32.xlu0 %v2595_v34 }
 0x7e9   :  { %v2574_v60 = vpop.permute.xlu1 %2573 }
 0x7ea   :  { %v2572_v13 = vpop.permute.xlu0 %2571  ;;  %v2604_v53 = vsel %vm87_vm0, %v2574_v60, 0.0 }
 0x7eb   :  { %2605 = vadd.xlane.f32.xlu1 %v2604_v53  ;;  %v2601_v59 = vsel %vm87_vm0, %v2572_v13, 0.0 }
 0x7ec   :  { %2602 = vadd.xlane.f32.xlu0 %v2601_v59 }
 0x852   :  { %v2588_v7 = vpop.xlane.xlu1 %2587 }
 0x853   :  { %v2608_v10 = vmul.f32 0.03125, %v2588_v7  ;;  %v2585_v30 = vpop.xlane.xlu0 %2584 }
 0x854   :  { %v2607_v4 = vmul.f32 0.03125, %v2585_v30 }
 0x855   :  { %v11030_v32 = vsub.f32 %v10971_v2, %v2608_v10 }
 0x856   :  { %v11033_v3 = vsub.f32 %v10973_v62, %v2607_v4 }
 0x857   :  { %v2624_v41 = vmul.f32 %v11030_v32, %v11030_v32 }
 0x858   :  { %v2623_v44 = vmul.f32 %v11033_v3, %v11033_v3 }
 0x859   :  { %2641 = vrot.lane.b32.xlu1 %v2624_v41, %s9917_s26 }
 0x85a   :  { %2639 = vrot.lane.b32.xlu0 %v2623_v44, %s9917_s26 }
 0x86d   :  { %v2591_v57 = vpop.xlane.xlu0 %2590 }
 0x86e   :  { %v2609_v28 = vmul.f32 0.03125, %v2591_v57 }
 0x870   :  { %v11042_v37 = vsub.f32 %v10988_v48, %v2609_v28  ;;  %v2600_v61 = vpop.xlane.xlu1 %2599 }
 0x871   :  { %v2594_v42 = vpop.xlane.xlu0 %2593  ;;  %v2612_v5 = vmul.f32 0.03125, %v2600_v61 }
 0x872   :  { %v2625_v20 = vmul.f32 %v11042_v37, %v11042_v37  ;;  %v2610_v50 = vmul.f32 0.03125, %v2594_v42 }
 0x873   :  { %v11051_v35 = vsub.f32 %v10999_v24, %v2612_v5 }
 0x874   :  { %v11047_v22 = vsub.f32 %v10985_v6, %v2610_v50  ;;  %2643 = vrot.lane.b32.xlu1 %v2625_v20, %s9917_s26 }
 0x875   :  { %v2597_v25 = vpop.xlane.xlu0 %2596  ;;  %v2628_v14 = vmul.f32 %v11051_v35, %v11051_v35 }
 0x876   :  { %v2626_v52 = vmul.f32 %v11047_v22, %v11047_v22  ;;  %v2611_v0 = vmul.f32 0.03125, %v2597_v25 }
 0x878   :  { %v11056_v47 = vsub.f32 %v11001_v11, %v2611_v0  ;;  %v2606_v8 = vpop.xlane.xlu1 %2605  ;;  %2645 = vrot.lane.b32.xlu1 %v2626_v52, %s9917_s26 }
 0x879   :  { %v2614_v63 = vmul.f32 0.03125, %v2606_v8  ;;  %v2603_v19 = vpop.xlane.xlu0 %2602 }
 0x87a   :  { %v2627_v34 = vmul.f32 %v11056_v47, %v11056_v47  ;;  %v2613_v60 = vmul.f32 0.03125, %v2603_v19  ;;  %v8078_v19 = vld [vmem:[%s12408_s7 + $0x7] ss:$0 sm:$0xff] }
 0x87b   :  { %v11064_v13 = vsub.f32 %v11013_v39, %v2614_v63  ;;  %v8079_v63 = vld [vmem:[%s12408_s7 + $0x8] ss:$0 sm:$0xff] }
 0x87c   :  { %v11067_v53 = vsub.f32 %v11015_v45, %v2613_v60  ;;  %2649 = vrot.lane.b32.xlu1 %v2628_v14, %s9917_s26  ;;  %2647 = vrot.lane.b32.xlu0 %v2627_v34, %s9917_s26  ;;  %v2751_v14 = vld [vmem:[%s12414_s5] sm:$0xff]  ;;  %v2752_v34 = vld [vmem:[%s12414_s5 + $0x8] sm:$0xff] }
 0x87d   :  { %v2630_v59 = vmul.f32 %v11064_v13, %v11064_v13  ;;  %v11099_v60 = vpack.c.bf16 %v2752_v34, %v2751_v14 }
 0x87e   :  { %v2629_v7 = vmul.f32 %v11067_v53, %v11067_v53 }
 0x87f   :  { %9283 = vmatprep.subr.bf16.mxu1 %v11099_v60 }
 0x880   :  { %2653 = vrot.lane.b32.xlu1 %v2630_v59, %s9917_s26  ;;  %2651 = vrot.lane.b32.xlu0 %v2629_v7, %s9917_s26 }
 0x881   :  { %9285 = vmatpush3.bf16.msra.mxu1 %v11099_v60 }
 0x8cb   :  { %v2642_v10 = vpop.permute.xlu1 %2641 }
 0x8cc   :  { %v2640_v30 = vpop.permute.xlu0 %2639  ;;  %v2666_v4 = vsel %vm87_vm0, %v2642_v10, 0.0 }
 0x8cd   :  { %2667 = vadd.xlane.f32.xlu1 %v2666_v4  ;;  %v2663_v41 = vsel %vm87_vm0, %v2640_v30, 0.0 }
 0x8ce   :  { %2664 = vadd.xlane.f32.xlu0 %v2663_v41 }
 0x8e6   :  { %v2644_v44 = vpop.permute.xlu1 %2643 }
 0x8e7   :  { %v2669_v5 = vsel %vm87_vm0, %v2644_v44, 0.0 }
 0x8ea   :  { %v2646_v57 = vpop.permute.xlu1 %2645 }
 0x8eb   :  { %v2672_v28 = vsel %vm87_vm0, %v2646_v57, 0.0 }
 0x8ec   :  { %2673 = vadd.xlane.f32.xlu0 %v2672_v28 }
 0x8ee   :  { %v2650_v61 = vpop.permute.xlu1 %2649  ;;  %v2648_v42 = vpop.permute.xlu0 %2647 }
 0x8ef   :  { %v2678_v20 = vsel %vm87_vm0, %v2650_v61, 0.0  ;;  %v2675_v52 = vsel %vm87_vm0, %v2648_v42, 0.0 }
 0x8f0   :  { %2679 = vadd.xlane.f32.xlu1 %v2678_v20  ;;  %2670 = vadd.xlane.f32.xlu0 %v2669_v5 }
 0x8f2   :  { %v2654_v50 = vpop.permute.xlu1 %2653  ;;  %v2652_v0 = vpop.permute.xlu0 %2651 }
 0x8f3   :  { %v2684_v25 = vsel %vm87_vm0, %v2654_v50, 0.0  ;;  %v2681_v8 = vsel %vm87_vm0, %v2652_v0, 0.0  ;;  %v2754_v0 = vld [vmem:[%s12414_s5 + $0x18] sm:$0xff] }
 0x8f4   :  { %2685 = vadd.xlane.f32.xlu1 %v2684_v25  ;;  %2676 = vadd.xlane.f32.xlu0 %v2675_v52  ;;  %v2753_v52 = vld [vmem:[%s12414_s5 + $0x10] sm:$0xff] }
 0x8f8   :  { %2682 = vadd.xlane.f32.xlu0 %v2681_v8 }
 0x905   :  { %2740 = vrot.lane.b32.xlu1 %v8079_v63, %s9918_s27 }
 0x90e   :  { %2724 = vrot.lane.b32.xlu0 %v8078_v19, %s9918_s27  ;;  %v11109_v19 = vpack.c.bf16 %v2754_v0, %v2753_v52 }
 0x910   :  { %9287 = vmatprep.subr.bf16.mxu1 %v11109_v19 }
 0x911   :  { %9289 = vmatpush3.bf16.msra.mxu1 %v11109_v19 }
 0x95a   :  { %v2668_v7 = vpop.xlane.xlu1 %2667 }
 0x95b   :  { %v2665_v59 = vpop.xlane.xlu0 %2664  ;;  %v2688_v30 = vmul.f32 0.03125, %v2668_v7 }
 0x95c   :  { %v2687_v10 = vmul.f32 0.03125, %v2665_v59 }
 0x95d   :  { %v2696_v41 = vadd.f32 1e-05, %v2688_v30 }
 0x95e   :  { %v2695_v4 = vadd.f32 1e-05, %v2687_v10 }
 0x960   :  { %9664 = vrsqrt.f32 %v2695_v4 }
 0x961   :  { %9666 = vrsqrt.f32 %v2696_v41 }
 0x96a   :  { %v9665_v10 = vpop.eup %9664 }
 0x96b   :  { %v9667_v41 = vpop.eup %9666 }
 0x979   :  { %v2674_v44 = vpop.xlane.xlu0 %2673 }
 0x97a   :  { %v2690_v57 = vmul.f32 0.03125, %v2674_v44 }
 0x97c   :  { %v2698_v28 = vadd.f32 1e-05, %v2690_v57  ;;  %v2711_v57 = vmul.f32 %v9665_v10, %v11033_v3 }
 0x97d   :  { %v2680_v61 = vpop.xlane.xlu1 %2679  ;;  %v2671_v42 = vpop.xlane.xlu0 %2670 }
 0x97e   :  { %v2692_v20 = vmul.f32 0.03125, %v2680_v61  ;;  %v2689_v5 = vmul.f32 0.03125, %v2671_v42  ;;  %9668 = vrsqrt.f32 %v2698_v28 }
 0x980   :  { %v2700_v50 = vadd.f32 1e-05, %v2692_v20  ;;  %v2697_v25 = vadd.f32 1e-05, %v2689_v5  ;;  %v2712_v5 = vmul.f32 %v9667_v41, %v11030_v32 }
 0x981   :  { %v2686_v8 = vpop.xlane.xlu1 %2685  ;;  %v2677_v63 = vpop.xlane.xlu0 %2676 }
 0x982   :  { %9670 = vrsqrt.f32 %v2700_v50  ;;  %v2694_v14 = vmul.f32 0.03125, %v2686_v8  ;;  %v2691_v34 = vmul.f32 0.03125, %v2677_v63 }
 0x983   :  { %9672 = vrsqrt.f32 %v2697_v25 }
 0x984   :  { %v2702_v59 = vadd.f32 1e-05, %v2694_v14  ;;  %v2699_v7 = vadd.f32 1e-05, %v2691_v34 }
 0x985   :  { %v2683_v30 = vpop.xlane.xlu0 %2682  ;;  %v11116_v42 = vpop.permute.xlu1 %2740 }
 0x986   :  { %9674 = vrsqrt.f32 %v2702_v59  ;;  %v2693_v4 = vmul.f32 0.03125, %v2683_v30  ;;  %v2913_v30 = vld [vmem:[%s12415_s6 + $0x8] sm:$0xff] }
 0x987   :  { %9676 = vrsqrt.f32 %v2699_v7 }
 0x988   :  { %v2701_v44 = vadd.f32 1e-05, %v2693_v4  ;;  %v9669_v28 = vpop.eup %9668 }
 0x989   :  { %v11114_v61 = vpop.permute.xlu0 %2724  ;;  %v2714_v0 = vmul.f32 %v9669_v28, %v11047_v22 }
 0x98a   :  { %9678 = vrsqrt.f32 %v2701_v44  ;;  %v2727_v20 = vmul.f32 %v11114_v61, %v2711_v57  ;;  %v2728_v52 = vmul.f32 %v11114_v61, %v2712_v5 }
 0x98b   :  { %v2730_v59 = vmul.f32 %v11114_v61, %v2714_v0  ;;  %v2914_v0 = vld [vmem:[%s12415_s6 + $0x10] sm:$0xff] }
 0x98c   :  { %v9671_v50 = vpop.eup %9670  ;;  %v2743_v25 = vadd.f32 %v11116_v42, %v2727_v20  ;;  %v2744_v14 = vadd.f32 %v11116_v42, %v2728_v52 }
 0x98d   :  { %v9673_v8 = vpop.eup %9672  ;;  %v2716_v32 = vmul.f32 %v9671_v50, %v11051_v35  ;;  %v2746_v35 = vadd.f32 %v11116_v42, %v2730_v59 }
 0x98e   :  { %2767 = vrot.lane.b32.xlu1 %v2743_v25, %s9917_s26  ;;  %v2713_v3 = vmul.f32 %v9673_v8, %v11042_v37  ;;  %v2912_v37 = vld [vmem:[%s12415_s6] sm:$0xff]  ;;  %v2915_v8 = vld [vmem:[%s12415_s6 + $0x18] sm:$0xff] }
 0x98f   :  { %v11138_v4 = vpack.c.bf16 %v2913_v30, %v2912_v37  ;;  %v2732_v57 = vmul.f32 %v11114_v61, %v2716_v32 }
 0x990   :  { %v9675_v63 = vpop.eup %9674  ;;  %v2729_v34 = vmul.f32 %v11114_v61, %v2713_v3  ;;  %v11165_v3 = vpack.c.bf16 %v2915_v8, %v2914_v0 }
 0x991   :  { %v9677_v7 = vpop.eup %9676  ;;  %9291 = vmatprep.subr.bf16.mxu1 %v11138_v4  ;;  %v2748_v50 = vadd.f32 %v11116_v42, %v2732_v57 }
 0x992   :  { %2769 = vrot.lane.b32.xlu1 %v2744_v14, %s9917_s26  ;;  %v2745_v10 = vadd.f32 %v11116_v42, %v2729_v34  ;;  %v2715_v22 = vmul.f32 %v9677_v7, %v11056_v47  ;;  %v2718_v47 = vmul.f32 %v9675_v63, %v11064_v13 }
 0x994   :  { %v9679_v41 = vpop.eup %9678  ;;  %2771 = vrot.lane.b32.xlu0 %v2745_v10, %s9917_s26  ;;  %v2731_v44 = vmul.f32 %v11114_v61, %v2715_v22  ;;  %v2734_v25 = vmul.f32 %v11114_v61, %v2718_v47  ;;  %v8080_v22 = vld [vmem:[%s12408_s7 + $0x9] ss:$0 sm:$0xff] }
 0x995   :  { %v2717_v28 = vmul.f32 %v9679_v41, %v11067_v53 }
 0x996   :  { %2773 = vrot.lane.b32.xlu1 %v2746_v35, %s9917_s26  ;;  %v2747_v20 = vadd.f32 %v11116_v42, %v2731_v44  ;;  %v2750_v13 = vadd.f32 %v11116_v42, %v2734_v25 }
 0x997   :  { %v2733_v5 = vmul.f32 %v11114_v61, %v2717_v28 }
 0x998   :  { %2775 = vrot.lane.b32.xlu0 %v2747_v20, %s9917_s26 }
 0x999   :  { %v2749_v52 = vadd.f32 %v11116_v42, %v2733_v5 }
 0x99a   :  { %2777 = vrot.lane.b32.xlu1 %v2748_v50, %s9917_s26 }
 0x99c   :  { %2779 = vrot.lane.b32.xlu0 %v2749_v52, %s9917_s26 }
 0x99e   :  { %2781 = vrot.lane.b32.xlu1 %v2750_v13, %s9917_s26 }
 0xa00   :  { %v2768_v53 = vpop.permute.xlu1 %2767 }
 0xa01   :  { %8762 = vmatprep.mubr.msk.f32.mxu1 %vm87_vm0, %v2768_v53 }
 0xa04   :  { %v2770_v63 = vpop.permute.xlu1 %2769 }
 0xa05   :  { %8763 = vmatmul.mubr.msk.f32.vlgmr.msra.gmra.mrb[24].mxu1 %vm87_vm0, %v2770_v63 }
 0xa06   :  { %v2772_v14 = vpop.permute.xlu0 %2771  ;;  %9293 = vmatpush3.bf16.msra.mxu1 %v11138_v4 }
 0xa07   :  { %8765 = vmatprep.mubr.msk.f32.mxu1 %vm87_vm0, %v2772_v14  ;;  %9295 = vmatprep.subr.bf16.mxu1 %v11165_v3 }
 0xa08   :  { %v2774_v34 = vpop.permute.xlu1 %2773 }
 0xa09   :  { %8766 = vmatmul.mubr.msk.f32.gmra.mrb[26].mxu1 %vm87_vm0, %v2774_v34 }
 0xa0a   :  { %v2776_v59 = vpop.permute.xlu0 %2775  ;;  %9297 = vmatpush3.bf16.msra.mxu1 %v11165_v3 }
 0xa0b   :  { %8768 = vmatprep.mubr.msk.f32.mxu1 %vm87_vm0, %v2776_v59  ;;  %9306 = vmatprep.subr.bf16.mxu1 %v12419_v54 }
 0xa0c   :  { %v2778_v32 = vpop.permute.xlu1 %2777 }
 0xa0d   :  { %8769 = vmatmul.mubr.msk.f32.gmra.mrb[28].mxu1 %vm87_vm0, %v2778_v32 }
 0xa0e   :  { %v2780_v7 = vpop.permute.xlu0 %2779 }
 0xa0f   :  { %8771 = vmatprep.mubr.msk.f32.mxu1 %vm87_vm0, %v2780_v7 }
 0xa10   :  { %v2782_v10 = vpop.permute.xlu1 %2781 }
 0xa11   :  { %8772 = vmatmul.mubr.msk.f32.gmra.mrb[30].mxu1 %vm87_vm0, %v2782_v10 }
 0xad8   :  { %v8764_v37 = vpop.f32.mrb[24].mxu1 }
 0xad9   :  { %v2871_v30 = vadd.f32 %v8764_v37, %v8080_v22  ;;  %v2865_v41 = vpop.f32.mrb[25].mxu1  ;;  %v8089_v37 = vld [vmem:[%s12408_s7 + $0xa] ss:$0 sm:$0xff] }
 0xada   :  { %v2866_v35 = vadd.f32 %v8080_v22, %v2865_v41 }
 0xadb   :  { %v2905_v47 = vmax.f32 %v2871_v30, 0.0 }
 0xadc   :  { %v2904_v44 = vmax.f32 %v2866_v35, 0.0  ;;  %v8767_v57 = vpop.f32.mrb[26].mxu1 }
 0xadd   :  { %v2881_v28 = vadd.f32 %v8767_v57, %v8080_v22  ;;  %v2875_v20 = vpop.f32.mrb[27].mxu1 }
 0xade   :  { %v2876_v5 = vadd.f32 %v8080_v22, %v2875_v20  ;;  %8782 = vmatprep.mubr.msk.f32.mxu1 %vm87_vm0, %v2904_v44 }
 0xadf   :  { %8783 = vmatmul.mubr.msk.f32.vlgmr.msra.gmra.mrb[32].mxu1 %vm87_vm0, %v2905_v47  ;;  %v2907_v52 = vmax.f32 %v2881_v28, 0.0 }
 0xae0   :  { %v2906_v50 = vmax.f32 %v2876_v5, 0.0  ;;  %9309 = vmatpush3.bf16.xpose.msk.msra.mxu1 %vm10480_vm2, %v10488_v26  ;;  %v8770_v25 = vpop.f32.mrb[28].mxu1 }
 0xae1   :  { %v2891_v13 = vadd.f32 %v8770_v25, %v8080_v22  ;;  %v2885_v53 = vpop.f32.mrb[29].mxu1  ;;  %9314 = vmatprep.subr.bf16.mxu1 %v12419_v54 }
 0xae2   :  { %v2886_v0 = vadd.f32 %v8080_v22, %v2885_v53  ;;  %8785 = vmatprep.mubr.msk.f32.mxu1 %vm87_vm0, %v2906_v50 }
 0xae3   :  { %8786 = vmatmul.mubr.msk.f32.gmra.mrb[34].mxu1 %vm87_vm0, %v2907_v52  ;;  %v2909_v14 = vmax.f32 %v2891_v13, 0.0 }
 0xae4   :  { %v2908_v8 = vmax.f32 %v2886_v0, 0.0  ;;  %v8773_v63 = vpop.f32.mrb[30].mxu1 }
 0xae5   :  { %v2901_v34 = vadd.f32 %v8773_v63, %v8080_v22  ;;  %v2895_v59 = vpop.f32.mrb[31].mxu1 }
 0xae6   :  { %v2896_v32 = vadd.f32 %v8080_v22, %v2895_v59  ;;  %8788 = vmatprep.mubr.msk.f32.mxu1 %vm87_vm0, %v2908_v8 }
 0xae7   :  { %8789 = vmatmul.mubr.msk.f32.gmra.mrb[36].mxu1 %vm87_vm0, %v2909_v14  ;;  %v2911_v10 = vmax.f32 %v2901_v34, 0.0 }
 0xae8   :  { %v2910_v7 = vmax.f32 %v2896_v32, 0.0 }
 0xaea   :  { %8791 = vmatprep.mubr.msk.f32.mxu1 %vm87_vm0, %v2910_v7 }
 0xaeb   :  { %8792 = vmatmul.mubr.msk.f32.gmra.mrb[38].mxu1 %vm87_vm0, %v2911_v10 }
 0xaec   :  { %8818 = vmatprep.mubr.msk.f32.mxu1 %vm9915_vm1, %v12417_v55 }
 0xbb2   :  { %v8784_v30 = vpop.f32.mrb[32].mxu1 }
 0xbb3   :  { %v3016_v41 = vadd.f32 %v8784_v30, %v8089_v37  ;;  %v3010_v22 = vpop.f32.mrb[33].mxu1 }
 0xbb4   :  { %v3011_v35 = vadd.f32 %v8089_v37, %v3010_v22 }
 0xbb5   :  { %3059 = vrot.lane.b32.xlu1 %v3016_v41, %s9918_s27 }
 0xbb6   :  { %v8787_v44 = vpop.f32.mrb[34].mxu1  ;;  %3057 = vrot.lane.b32.xlu0 %v3011_v35, %s9918_s27 }
 0xbb7   :  { %v3026_v57 = vadd.f32 %v8787_v44, %v8089_v37  ;;  %v3020_v47 = vpop.f32.mrb[35].mxu1 }
 0xbb8   :  { %v3021_v28 = vadd.f32 %v8089_v37, %v3020_v47 }
 0xbb9   :  { %3063 = vrot.lane.b32.xlu1 %v3026_v57, %s9918_s27 }
 0xbba   :  { %v8790_v20 = vpop.f32.mrb[36].mxu1  ;;  %3061 = vrot.lane.b32.xlu0 %v3021_v28, %s9918_s27 }
 0xbbb   :  { %v3036_v5 = vadd.f32 %v8790_v20, %v8089_v37  ;;  %v3030_v50 = vpop.f32.mrb[37].mxu1 }
 0xbbc   :  { %v3031_v25 = vadd.f32 %v8089_v37, %v3030_v50 }
 0xbbd   :  { %3067 = vrot.lane.b32.xlu1 %v3036_v5, %s9918_s27 }
 0xbbe   :  { %3065 = vrot.lane.b32.xlu0 %v3031_v25, %s9918_s27  ;;  %v8793_v52 = vpop.f32.mrb[38].mxu1 }
 0xbbf   :  { %v3046_v13 = vadd.f32 %v8793_v52, %v8089_v37  ;;  %v3040_v53 = vpop.f32.mrb[39].mxu1 }
 0xbc0   :  { %v3041_v0 = vadd.f32 %v8089_v37, %v3040_v53 }
 0xbc1   :  { %3071 = vrot.lane.b32.xlu1 %v3046_v13, %s9918_s27 }
 0xbc2   :  { %3069 = vrot.lane.b32.xlu0 %v3041_v0, %s9918_s27 }
 0xc27   :  { %v3060_v8 = vpop.permute.xlu1 %3059 }
 0xc28   :  { %v11207_v63 = vadd.f32 %v3060_v8, %v10971_v2  ;;  %v3058_v14 = vpop.permute.xlu0 %3057 }
 0xc29   :  { %v11210_v34 = vadd.f32 %v3058_v14, %v10973_v62 }
 0xc2a   :  { %3099 = vrot.lane.b32.xlu1 %v11207_v63, %s9917_s26 }
 0xc2b   :  { %v3064_v59 = vpop.permute.xlu1 %3063  ;;  %3097 = vrot.lane.b32.xlu0 %v11210_v34, %s9917_s26 }
 0xc2c   :  { %v11217_v32 = vadd.f32 %v3064_v59, %v10985_v6  ;;  %v3062_v7 = vpop.permute.xlu0 %3061 }
 0xc2d   :  { %v11220_v10 = vadd.f32 %v3062_v7, %v10988_v48 }
 0xc2e   :  { %3103 = vrot.lane.b32.xlu1 %v11217_v32, %s9917_s26 }
 0xc2f   :  { %v3068_v2 = vpop.permute.xlu1 %3067  ;;  %3101 = vrot.lane.b32.xlu0 %v11220_v10, %s9917_s26 }
 0xc30   :  { %v11227_v62 = vadd.f32 %v3068_v2, %v10999_v24  ;;  %v3066_v37 = vpop.permute.xlu0 %3065 }
 0xc31   :  { %v11230_v30 = vadd.f32 %v3066_v37, %v11001_v11 }
 0xc32   :  { %3107 = vrot.lane.b32.xlu1 %v11227_v62, %s9917_s26 }
 0xc33   :  { %v3072_v6 = vpop.permute.xlu1 %3071  ;;  %3105 = vrot.lane.b32.xlu0 %v11230_v30, %s9917_s26 }
 0xc34   :  { %v11237_v48 = vadd.f32 %v3072_v6, %v11013_v39  ;;  %v3070_v41 = vpop.permute.xlu0 %3069 }
 0xc35   :  { %v11240_v22 = vadd.f32 %v3070_v41, %v11015_v45 }
 0xc36   :  { %3111 = vrot.lane.b32.xlu1 %v11237_v48, %s9917_s26 }
 0xc37   :  { %3109 = vrot.lane.b32.xlu0 %v11240_v22, %s9917_s26 }
 0xc9c   :  { %v3100_v24 = vpop.permute.xlu1 %3099 }
 0xc9d   :  { %v3098_v11 = vpop.permute.xlu0 %3097  ;;  %v3124_v35 = vsel %vm87_vm0, %v3100_v24, 0.0 }
 0xc9e   :  { %3125 = vadd.xlane.f32.xlu1 %v3124_v35  ;;  %v3121_v44 = vsel %vm87_vm0, %v3098_v11, 0.0 }
 0xc9f   :  { %3122 = vadd.xlane.f32.xlu0 %v3121_v44 }
 0xca0   :  { %v3104_v39 = vpop.permute.xlu1 %3103 }
 0xca1   :  { %v3102_v57 = vpop.permute.xlu0 %3101  ;;  %v3130_v5 = vsel %vm87_vm0, %v3104_v39, 0.0 }
 0xca2   :  { %v3127_v47 = vsel %vm87_vm0, %v3102_v57, 0.0 }
 0xca3   :  { %3128 = vadd.xlane.f32.xlu0 %v3127_v47 }
 0xca4   :  { %v3108_v45 = vpop.permute.xlu1 %3107 }
 0xca5   :  { %v3106_v28 = vpop.permute.xlu0 %3105  ;;  %v3136_v20 = vsel %vm87_vm0, %v3108_v45, 0.0 }
 0xca6   :  { %3137 = vadd.xlane.f32.xlu1 %v3136_v20  ;;  %v3133_v52 = vsel %vm87_vm0, %v3106_v28, 0.0 }
 0xca7   :  { %3131 = vadd.xlane.f32.xlu0 %v3130_v5 }
 0xca8   :  { %v3112_v50 = vpop.permute.xlu1 %3111 }
 0xca9   :  { %v3142_v25 = vsel %vm87_vm0, %v3112_v50, 0.0  ;;  %v3110_v13 = vpop.permute.xlu0 %3109 }
 0xcaa   :  { %3143 = vadd.xlane.f32.xlu1 %v3142_v25  ;;  %v3139_v53 = vsel %vm87_vm0, %v3110_v13, 0.0 }
 0xcab   :  { %3134 = vadd.xlane.f32.xlu0 %v3133_v52 }
 0xcaf   :  { %3140 = vadd.xlane.f32.xlu0 %v3139_v53 }
 0xd2b   :  { %v3126_v0 = vpop.xlane.xlu1 %3125 }
 0xd2c   :  { %v3146_v8 = vmul.f32 0.03125, %v3126_v0  ;;  %v3123_v14 = vpop.xlane.xlu0 %3122 }
 0xd2d   :  { %v3145_v59 = vmul.f32 0.03125, %v3123_v14 }
 0xd2e   :  { %v11255_v7 = vsub.f32 %v11207_v63, %v3146_v8 }
 0xd2f   :  { %v11258_v2 = vsub.f32 %v11210_v34, %v3145_v59 }
 0xd30   :  { %v3162_v37 = vmul.f32 %v11255_v7, %v11255_v7  ;;  %v3129_v6 = vpop.xlane.xlu0 %3128 }
 0xd31   :  { %v3161_v41 = vmul.f32 %v11258_v2, %v11258_v2  ;;  %v3147_v24 = vmul.f32 0.03125, %v3129_v6 }
 0xd32   :  { %3179 = vrot.lane.b32.xlu1 %v3162_v37, %s9917_s26 }
 0xd33   :  { %v11266_v11 = vsub.f32 %v11220_v10, %v3147_v24  ;;  %v3138_v35 = vpop.xlane.xlu1 %3137  ;;  %3177 = vrot.lane.b32.xlu0 %v3161_v41, %s9917_s26 }
 0xd34   :  { %v3132_v44 = vpop.xlane.xlu0 %3131  ;;  %v3150_v57 = vmul.f32 0.03125, %v3138_v35 }
 0xd35   :  { %v3163_v39 = vmul.f32 %v11266_v11, %v11266_v11  ;;  %v3148_v47 = vmul.f32 0.03125, %v3132_v44 }
 0xd36   :  { %v11276_v5 = vsub.f32 %v11227_v62, %v3150_v57 }
 0xd37   :  { %v11272_v45 = vsub.f32 %v11217_v32, %v3148_v47  ;;  %v3144_v28 = vpop.xlane.xlu1 %3143  ;;  %3181 = vrot.lane.b32.xlu1 %v3163_v39, %s9917_s26 }
 0xd38   :  { %v3135_v20 = vpop.xlane.xlu0 %3134  ;;  %v3152_v25 = vmul.f32 0.03125, %v3144_v28  ;;  %v3166_v0 = vmul.f32 %v11276_v5, %v11276_v5 }
 0xd39   :  { %v3164_v50 = vmul.f32 %v11272_v45, %v11272_v45  ;;  %v3149_v52 = vmul.f32 0.03125, %v3135_v20 }
 0xd3a   :  { %v11287_v8 = vsub.f32 %v11237_v48, %v3152_v25 }
 0xd3b   :  { %v11281_v13 = vsub.f32 %v11230_v30, %v3149_v52  ;;  %3183 = vrot.lane.b32.xlu1 %v3164_v50, %s9917_s26 }
 0xd3c   :  { %v3141_v53 = vpop.xlane.xlu0 %3140  ;;  %v3168_v6 = vmul.f32 %v11287_v8, %v11287_v8 }
 0xd3d   :  { %v3165_v14 = vmul.f32 %v11281_v13, %v11281_v13  ;;  %v3151_v59 = vmul.f32 0.03125, %v3141_v53 }
 0xd3f   :  { %v11292_v37 = vsub.f32 %v11240_v22, %v3151_v59  ;;  %3187 = vrot.lane.b32.xlu1 %v3166_v0, %s9917_s26  ;;  %3185 = vrot.lane.b32.xlu0 %v3165_v14, %s9917_s26 }
 0xd41   :  { %v3167_v41 = vmul.f32 %v11292_v37, %v11292_v37 }
 0xd43   :  { %3191 = vrot.lane.b32.xlu1 %v3168_v6, %s9917_s26  ;;  %3189 = vrot.lane.b32.xlu0 %v3167_v41, %s9917_s26  ;;  %v9904_v41 = vld [vmem:[%s12408_s7 + $0x6] ss:$0 sm:$0xff] }
 0xda4   :  { %v3180_v24 = vpop.permute.xlu1 %3179 }
 0xda5   :  { %v3178_v35 = vpop.permute.xlu0 %3177  ;;  %v3204_v44 = vsel %vm87_vm0, %v3180_v24, 0.0  ;;  %v9905_v24 = vld [vmem:[%s12408_s7 + $0x5] ss:$0 sm:$0xff] }
 0xda6   :  { %3205 = vadd.xlane.f32.xlu1 %v3204_v44  ;;  %v3201_v39 = vsel %vm87_vm0, %v3178_v35, 0.0 }
 0xda7   :  { %3202 = vadd.xlane.f32.xlu0 %v3201_v39 }
 0xda9   :  { %v3182_v57 = vpop.permute.xlu1 %3181 }
 0xdaa   :  { %v3207_v52 = vsel %vm87_vm0, %v3182_v57, 0.0 }
 0xdad   :  { %v3184_v47 = vpop.permute.xlu1 %3183 }
 0xdae   :  { %v3210_v28 = vsel %vm87_vm0, %v3184_v47, 0.0 }
 0xdaf   :  { %3211 = vadd.xlane.f32.xlu0 %v3210_v28 }
 0xdb1   :  { %v3188_v20 = vpop.permute.xlu1 %3187  ;;  %v3186_v50 = vpop.permute.xlu0 %3185 }
 0xdb2   :  { %v3216_v25 = vsel %vm87_vm0, %v3188_v20, 0.0  ;;  %v3213_v14 = vsel %vm87_vm0, %v3186_v50, 0.0 }
 0xdb3   :  { %3217 = vadd.xlane.f32.xlu1 %v3216_v25  ;;  %3208 = vadd.xlane.f32.xlu0 %v3207_v52 }
 0xdb5   :  { %v3192_v53 = vpop.permute.xlu1 %3191  ;;  %v3190_v59 = vpop.permute.xlu0 %3189 }
 0xdb6   :  { %v3222_v0 = vsel %vm87_vm0, %v3192_v53, 0.0  ;;  %v3219_v6 = vsel %vm87_vm0, %v3190_v59, 0.0 }
 0xdb7   :  { %3223 = vadd.xlane.f32.xlu1 %v3222_v0  ;;  %3214 = vadd.xlane.f32.xlu0 %v3213_v14 }
 0xdbb   :  { %3220 = vadd.xlane.f32.xlu0 %v3219_v6 }
 0xdc8   :  { %3270 = vrot.lane.b32.xlu1 %v9904_v41, %s9918_s27 }
 0xdd1   :  { %3258 = vrot.lane.b32.xlu0 %v9905_v24, %s9918_s27 }
 0xe33   :  { %v3206_v44 = vpop.xlane.xlu1 %3205 }
 0xe34   :  { %v3203_v35 = vpop.xlane.xlu0 %3202  ;;  %v3226_v57 = vmul.f32 0.03125, %v3206_v44 }
 0xe35   :  { %v3225_v39 = vmul.f32 0.03125, %v3203_v35 }
 0xe36   :  { %v3234_v28 = vadd.f32 1e-05, %v3226_v57 }
 0xe37   :  { %v3233_v47 = vadd.f32 1e-05, %v3225_v39 }
 0xe39   :  { %9680 = vrsqrt.f32 %v3233_v47 }
 0xe3a   :  { %9682 = vrsqrt.f32 %v3234_v28 }
 0xe3c   :  { %v3212_v20 = vpop.xlane.xlu0 %3211 }
 0xe3d   :  { %v3228_v50 = vmul.f32 0.03125, %v3212_v20 }
 0xe3f   :  { %v3236_v25 = vadd.f32 1e-05, %v3228_v50 }
 0xe40   :  { %v3218_v52 = vpop.xlane.xlu1 %3217  ;;  %v3209_v53 = vpop.xlane.xlu0 %3208 }
 0xe41   :  { %v3230_v0 = vmul.f32 0.03125, %v3218_v52  ;;  %v3227_v14 = vmul.f32 0.03125, %v3209_v53  ;;  %9684 = vrsqrt.f32 %v3236_v25 }
 0xe43   :  { %v3238_v59 = vadd.f32 1e-05, %v3230_v0  ;;  %v3235_v6 = vadd.f32 1e-05, %v3227_v14  ;;  %v9681_v57 = vpop.eup %9680 }
 0xe44   :  { %v3224_v41 = vpop.xlane.xlu1 %3223  ;;  %v3215_v24 = vpop.xlane.xlu0 %3214  ;;  %v3249_v52 = vmul.f32 %v9681_v57, %v11258_v2 }
 0xe45   :  { %9686 = vrsqrt.f32 %v3238_v59  ;;  %v3232_v55 = vmul.f32 0.03125, %v3224_v41  ;;  %v3229_v35 = vmul.f32 0.03125, %v3215_v24  ;;  %v9683_v28 = vpop.eup %9682 }
 0xe46   :  { %9688 = vrsqrt.f32 %v3235_v6 }
 0xe47   :  { %v3240_v44 = vadd.f32 1e-05, %v3232_v55  ;;  %v3237_v39 = vadd.f32 1e-05, %v3229_v35  ;;  %v3250_v55 = vmul.f32 %v9683_v28, %v11255_v7 }
 0xe48   :  { %v3221_v20 = vpop.xlane.xlu0 %3220  ;;  %v11321_v0 = vpop.permute.xlu1 %3270 }
 0xe49   :  { %9690 = vrsqrt.f32 %v3240_v44  ;;  %v3231_v47 = vmul.f32 0.03125, %v3221_v20 }
 0xe4a   :  { %9692 = vrsqrt.f32 %v3237_v39 }
 0xe4b   :  { %v3239_v50 = vadd.f32 1e-05, %v3231_v47  ;;  %v9685_v25 = vpop.eup %9684 }
 0xe4c   :  { %v11319_v53 = vpop.permute.xlu0 %3258  ;;  %v3252_v24 = vmul.f32 %v9685_v25, %v11272_v45 }
 0xe4d   :  { %9694 = vrsqrt.f32 %v3239_v50  ;;  %v3261_v14 = vmul.f32 %v11319_v53, %v3249_v52  ;;  %v3262_v41 = vmul.f32 %v11319_v53, %v3250_v55 }
 0xe4e   :  { %v3264_v20 = vmul.f32 %v11319_v53, %v3252_v24 }
 0xe4f   :  { %v9687_v59 = vpop.eup %9686  ;;  %v3273_v6 = vadd.f32 %v11321_v0, %v3261_v14  ;;  %v3274_v39 = vadd.f32 %v11321_v0, %v3262_v41 }
 0xe50   :  { %v9689_v35 = vpop.eup %9688  ;;  %v3254_v7 = vmul.f32 %v9687_v59, %v11276_v5 }
 0xe51   :  { %3289 = vrot.lane.b32.xlu1 %v3273_v6, %s9917_s26  ;;  %v3251_v2 = vmul.f32 %v9689_v35, %v11266_v11  ;;  %v3276_v11 = vadd.f32 %v11321_v0, %v3264_v20 }
 0xe52   :  { %v3266_v25 = vmul.f32 %v11319_v53, %v3254_v7  ;;  %v12431_v7 = vmov 0.0  }
 0xe53   :  { %v9691_v44 = vpop.eup %9690  ;;  %v3263_v57 = vmul.f32 %v11319_v53, %v3251_v2 }
 0xe54   :  { %v9693_v47 = vpop.eup %9692  ;;  %v3256_v14 = vmul.f32 %v9691_v44, %v11287_v8 }
 0xe55   :  { %3291 = vrot.lane.b32.xlu1 %v3274_v39, %s9917_s26  ;;  %v3275_v28 = vadd.f32 %v11321_v0, %v3263_v57  ;;  %v3253_v45 = vmul.f32 %v9693_v47, %v11281_v13  ;;  %v3278_v13 = vadd.f32 %v11321_v0, %v3266_v25 }
 0xe56   :  { %v3268_v6 = vmul.f32 %v11319_v53, %v3256_v14 }
 0xe57   :  { %v9695_v50 = vpop.eup %9694  ;;  %3293 = vrot.lane.b32.xlu0 %v3275_v28, %s9917_s26  ;;  %v3265_v52 = vmul.f32 %v11319_v53, %v3253_v45  ;;  %v9906_v28 = vld [vmem:[%s12408_s7 + $0x4] ss:$0 sm:$0xff] }
 0xe58   :  { %v3255_v5 = vmul.f32 %v9695_v50, %v11292_v37  ;;  %v3280_v8 = vadd.f32 %v11321_v0, %v3268_v6 }
 0xe59   :  { %3295 = vrot.lane.b32.xlu1 %v3276_v11, %s9917_s26  ;;  %v3277_v55 = vadd.f32 %v11321_v0, %v3265_v52 }
 0xe5a   :  { %v3267_v59 = vmul.f32 %v11319_v53, %v3255_v5 }
 0xe5b   :  { %3297 = vrot.lane.b32.xlu0 %v3277_v55, %s9917_s26 }
 0xe5c   :  { %v3279_v41 = vadd.f32 %v11321_v0, %v3267_v59 }
 0xe5d   :  { %3299 = vrot.lane.b32.xlu1 %v3278_v13, %s9917_s26 }
 0xe5f   :  { %3301 = vrot.lane.b32.xlu0 %v3279_v41, %s9917_s26 }
 0xe61   :  { %3303 = vrot.lane.b32.xlu1 %v3280_v8, %s9917_s26 }
 0xec3   :  { %v3290_v37 = vpop.permute.xlu1 %3289 }
 0xec4   :  { %8802 = vmatprep.mubr.msk.f32.mxu0 %vm87_vm0, %v3290_v37 }
 0xec7   :  { %v3292_v24 = vpop.permute.xlu1 %3291 }
 0xec8   :  { %8803 = vmatmul.mubr.msk.f32.vlgmr.msra.gmra.mrb[40].mxu0 %vm87_vm0, %v3292_v24 }
 0xec9   :  { %v3294_v35 = vpop.permute.xlu0 %3293  ;;  %9313 = vmatpush3.bf16.xpose.msk.msra.mxu0 %vm10480_vm2, %v10504_v21 }
 0xeca   :  { %8805 = vmatprep.mubr.msk.f32.mxu0 %vm87_vm0, %v3294_v35  ;;  %9318 = vmatprep.subr.bf16.mxu0 %v12419_v54 }
 0xecb   :  { %v3296_v2 = vpop.permute.xlu1 %3295 }
 0xecc   :  { %8806 = vmatmul.mubr.msk.f32.gmra.mrb[42].mxu0 %vm87_vm0, %v3296_v2 }
 0xecd   :  { %v3298_v44 = vpop.permute.xlu0 %3297 }
 0xece   :  { %8808 = vmatprep.mubr.msk.f32.mxu0 %vm87_vm0, %v3298_v44 }
 0xecf   :  { %v3300_v39 = vpop.permute.xlu1 %3299 }
 0xed0   :  { %8809 = vmatmul.mubr.msk.f32.gmra.mrb[44].mxu0 %vm87_vm0, %v3300_v39 }
 0xed1   :  { %v3302_v57 = vpop.permute.xlu0 %3301 }
 0xed2   :  { %8811 = vmatprep.mubr.msk.f32.mxu0 %vm87_vm0, %v3302_v57 }
 0xed3   :  { %v3304_v20 = vpop.permute.xlu1 %3303 }
 0xed4   :  { %8812 = vmatmul.mubr.msk.f32.gmra.mrb[46].mxu0 %vm87_vm0, %v3304_v20 }
 0xed5   :  { %8825 = vmatprep.mubr.msk.f32.mxu0 %vm9915_vm1, %v12431_v7 }
 0xf9b   :  { %v8804_v47 = vpop.f32.mrb[40].mxu0 }
 0xf9c   :  { %v3393_v45 = vadd.f32 %v9906_v28, %v8804_v47  ;;  %v3387_v50 = vpop.f32.mrb[41].mxu0 }
 0xf9d   :  { %v3388_v11 = vadd.f32 %v9906_v28, %v3387_v50 }
 0xf9e   :  { %8826 = vmatmul.mubr.msk.f32.vlgmr.msra.gmra.mrb[48].mxu0 %vm87_vm0, %v3393_v45 }
 0xf9f   :  { %9321 = vmatpush3.bf16.xpose.msk.msra.mxu0 %vm10480_vm2, %v10545_v1  ;;  %v8807_v52 = vpop.f32.mrb[42].mxu0  ;;  %8819 = vmatmul.mubr.msk.f32.vlgmr.msra.gmra.mrb[40].mxu1 %vm87_vm0, %v3388_v11 }
 0xfa0   :  { %9317 = vmatpush3.bf16.xpose.msk.msra.mxu1 %vm10480_vm2, %v10521_v58  ;;  %v3397_v25 = vpop.f32.mrb[43].mxu0  ;;  %8839 = vmatprep.mubr.msk.f32.mxu0 %vm9915_vm1, %v12431_v7  ;;  %v3403_v5 = vadd.f32 %v9906_v28, %v8807_v52 }
 0xfa1   :  { %8832 = vmatprep.mubr.msk.f32.mxu1 %vm9915_vm1, %v12431_v7  ;;  %9326 = vmatprep.subr.bf16.mxu0 %v12419_v54  ;;  %v3398_v59 = vadd.f32 %v9906_v28, %v3397_v25 }
 0xfa2   :  { %9322 = vmatprep.subr.bf16.mxu1 %v12419_v54 }
 0xfa3   :  { %v8810_v14 = vpop.f32.mrb[44].mxu0 }
 0xfa4   :  { %v3407_v55 = vpop.f32.mrb[45].mxu0  ;;  %v3413_v41 = vadd.f32 %v9906_v28, %v8810_v14 }
 0xfa5   :  { %v3408_v8 = vadd.f32 %v9906_v28, %v3407_v55 }
 0xfa6   :  { %8840 = vmatmul.mubr.msk.f32.vlgmr.msra.gmra.mrb[50].mxu0 %vm87_vm0, %v3403_v5 }
 0xfa7   :  { %8833 = vmatmul.mubr.msk.f32.vlgmr.msra.gmra.mrb[42].mxu1 %vm87_vm0, %v3398_v59  ;;  %9329 = vmatpush3.bf16.xpose.msk.msra.mxu0 %vm10480_vm2, %v10577_v23  ;;  %v8813_v13 = vpop.f32.mrb[46].mxu0 }
 0xfa8   :  { %9325 = vmatpush3.bf16.xpose.msk.msra.mxu1 %vm10480_vm2, %v10558_v29  ;;  %v3417_v6 = vpop.f32.mrb[47].mxu0  ;;  %8853 = vmatprep.mubr.msk.f32.mxu0 %vm9915_vm1, %v12431_v7  ;;  %v3423_v37 = vadd.f32 %v9906_v28, %v8813_v13 }
 0xfa9   :  { %8846 = vmatprep.mubr.msk.f32.mxu1 %vm9915_vm1, %v12431_v7  ;;  %9334 = vmatprep.subr.bf16.mxu0 %v12419_v54  ;;  %v3418_v24 = vadd.f32 %v9906_v28, %v3417_v6 }
 0xfaa   :  { %9330 = vmatprep.subr.bf16.mxu1 %v12419_v54 }
 0xfae   :  { %8854 = vmatmul.mubr.msk.f32.vlgmr.msra.gmra.mrb[52].mxu0 %vm87_vm0, %v3413_v41 }
 0xfaf   :  { %8847 = vmatmul.mubr.msk.f32.vlgmr.msra.gmra.mrb[44].mxu1 %vm87_vm0, %v3408_v8  ;;  %9337 = vmatpush3.bf16.xpose.msk.msra.mxu0 %vm10480_vm2, %v10617_v17 }
 0xfb0   :  { %9333 = vmatpush3.bf16.xpose.msk.msra.mxu1 %vm10480_vm2, %v10589_v33  ;;  %8867 = vmatprep.mubr.msk.f32.mxu0 %vm9915_vm1, %v12431_v7 }
 0xfb1   :  { %8860 = vmatprep.mubr.msk.f32.mxu1 %vm9915_vm1, %v12431_v7  ;;  %9344 = vmatprep.subr.bf16.mxu0 %v12419_v54 }
 0xfb2   :  { %9338 = vmatprep.subr.bf16.mxu1 %v12419_v54 }
 0xfb6   :  { %8868 = vmatmul.mubr.msk.f32.vlgmr.msra.gmra.mrb[54].mxu0 %vm87_vm0, %v3423_v37 }
 0xfb7   :  { %8861 = vmatmul.mubr.msk.f32.vlgmr.msra.gmra.mrb[46].mxu1 %vm87_vm0, %v3418_v24  ;;  %9346 = vmatpush3.bf16.msra.mxu0 %v10744_v31 }
 0xfb8   :  { %9340 = vmatpush3.bf16.msra.mxu1 %v10679_v9  ;;  %8874 = vmatprep.mubr.msk.f32.mxu1 %vm9915_vm1, %v12431_v7 }
 0xfb9   :  { %9341 = vmatprep.subr.bf16.mxu1 %v12419_v54  ;;  %8888 = vmatprep.mubr.msk.f32.mxu0 %vm9915_vm1, %v12431_v7 }
 0xfba   :  { %9350 = vmatprep.subr.bf16.mxu0 %v12419_v54 }
0x1071   :  { %v3568_v35 = vpop.f32.mrb[48].mxu0 }
0x1072   :  { %v3495_v2 = vpop.f32.mrb[40].mxu1  ;;  %v8827_v44 = vpop.f32.mrb[49].mxu0  ;;  %v4013_v39 = vsel %vm1446_vm3, %v3568_v35, -inf }
0x1073   :  { %v8820_v57 = vpop.f32.mrb[41].mxu1  ;;  %4014 = vmax.xlane.f32.xlu1 %v4013_v39  ;;  %v4010_v20 = vsel %vm1446_vm3, %v3495_v2, -inf }
0x1074   :  { %4011 = vmax.xlane.f32.xlu0 %v4010_v20 }
0x1079   :  { %v3714_v47 = vpop.f32.mrb[50].mxu0 }
0x107a   :  { %v3641_v28 = vpop.f32.mrb[42].mxu1  ;;  %v8841_v45 = vpop.f32.mrb[51].mxu0  ;;  %v4019_v52 = vsel %vm1446_vm3, %v3714_v47, -inf }
0x107b   :  { %v8834_v50 = vpop.f32.mrb[43].mxu1  ;;  %v4016_v11 = vsel %vm1446_vm3, %v3641_v28, -inf }
0x107c   :  { %4017 = vmax.xlane.f32.xlu0 %v4016_v11 }
0x1080   :  { %4020 = vmax.xlane.f32.xlu0 %v4019_v52 }
0x1081   :  { %v3860_v25 = vpop.f32.mrb[52].mxu0 }
0x1082   :  { %v3787_v14 = vpop.f32.mrb[44].mxu1  ;;  %v8855_v5 = vpop.f32.mrb[53].mxu0  ;;  %v4025_v55 = vsel %vm1446_vm3, %v3860_v25, -inf }
0x1083   :  { %v8848_v59 = vpop.f32.mrb[45].mxu1  ;;  %4026 = vmax.xlane.f32.xlu1 %v4025_v55  ;;  %v4022_v13 = vsel %vm1446_vm3, %v3787_v14, -inf }
0x1084   :  { %4023 = vmax.xlane.f32.xlu0 %v4022_v13 }
0x1089   :  { %v4006_v6 = vpop.f32.mrb[54].mxu0 }
0x108a   :  { %v3933_v41 = vpop.f32.mrb[46].mxu1  ;;  %v8869_v8 = vpop.f32.mrb[55].mxu0  ;;  %v4031_v37 = vsel %vm1446_vm3, %v4006_v6, -inf }
0x108b   :  { %4032 = vmax.xlane.f32.xlu1 %v4031_v37  ;;  %v8862_v24 = vpop.f32.mrb[47].mxu1  ;;  %v4028_v44 = vsel %vm1446_vm3, %v3933_v41, -inf }
0x108c   :  { %4029 = vmax.xlane.f32.xlu0 %v4028_v44 }
0x1100   :  { %v4015_v39 = vpop.xlane.xlu1 %4014 }
0x1101   :  { %v4035_v57 = vsub.f32 %v3568_v35, %v4015_v39  ;;  %v4012_v20 = vpop.xlane.xlu0 %4011 }
0x1102   :  { %v4034_v45 = vsub.f32 %v3495_v2, %v4012_v20 }
0x1103   :  { %v4044_v50 = vmul.f32 1.442695, %v4035_v57 }
0x1104   :  { %v4042_v11 = vmul.f32 1.442695, %v4034_v45 }
0x1105   :  { %9696 = vpow2.f32 %v4044_v50 }
0x1106   :  { %9698 = vpow2.f32 %v4042_v11 }
0x1109   :  { %v4018_v52 = vpop.xlane.xlu0 %4017 }
0x110a   :  { %v4036_v5 = vsub.f32 %v3641_v28, %v4018_v52 }
0x110c   :  { %v4046_v55 = vmul.f32 1.442695, %v4036_v5 }
0x110d   :  { %v4021_v59 = vpop.xlane.xlu0 %4020 }
0x110e   :  { %9700 = vpow2.f32 %v4046_v55  ;;  %v4037_v13 = vsub.f32 %v3714_v47, %v4021_v59 }
0x110f   :  { %v9697_v8 = vpop.eup %9696 }
0x1110   :  { %v9699_v37 = vpop.eup %9698  ;;  %v4048_v24 = vmul.f32 1.442695, %v4037_v13  ;;  %v4027_v54 = vpop.xlane.xlu1 %4026  ;;  %v4061_v44 = vsel %vm1446_vm3, %v9697_v8, 0.0 }
0x1111   :  { %v4039_v9 = vsub.f32 %v3860_v25, %v4027_v54  ;;  %v4024_v35 = vpop.xlane.xlu0 %4023  ;;  %4062 = vadd.xlane.f32.xlu1 %v4061_v44  ;;  %v4058_v2 = vsel %vm1446_vm3, %v9699_v37, 0.0 }
0x1112   :  { %9702 = vpow2.f32 %v4048_v24  ;;  %v4038_v39 = vsub.f32 %v3787_v14, %v4024_v35  ;;  %4059 = vadd.xlane.f32.xlu0 %v4058_v2 }
0x1113   :  { %v4052_v57 = vmul.f32 1.442695, %v4039_v9 }
0x1114   :  { %v4050_v28 = vmul.f32 1.442695, %v4038_v39 }
0x1115   :  { %9704 = vpow2.f32 %v4052_v57 }
0x1116   :  { %9706 = vpow2.f32 %v4050_v28 }
0x1118   :  { %v9701_v20 = vpop.eup %9700  ;;  %v4033_v47 = vpop.xlane.xlu1 %4032 }
0x1119   :  { %v4041_v45 = vsub.f32 %v4006_v6, %v4033_v47  ;;  %v4030_v50 = vpop.xlane.xlu0 %4029  ;;  %v4064_v11 = vsel %vm1446_vm3, %v9701_v20, 0.0 }
0x111a   :  { %v4040_v52 = vsub.f32 %v3933_v41, %v4030_v50  ;;  %4065 = vadd.xlane.f32.xlu0 %v4064_v11 }
0x111b   :  { %v4056_v54 = vmul.f32 1.442695, %v4041_v45 }
0x111c   :  { %v9703_v25 = vpop.eup %9702  ;;  %v4054_v5 = vmul.f32 1.442695, %v4040_v52  ;;  %v12432_v52 = vmov 0.0|0.0  }
0x111d   :  { %9708 = vpow2.f32 %v4056_v54  ;;  %v4067_v55 = vsel %vm1446_vm3, %v9703_v25, 0.0 }
0x111e   :  { %9710 = vpow2.f32 %v4054_v5  ;;  %4068 = vadd.xlane.f32.xlu1 %v4067_v55 }
0x111f   :  { %v9705_v9 = vpop.eup %9704 }
0x1120   :  { %v9707_v14 = vpop.eup %9706  ;;  %v4073_v59 = vsel %vm1446_vm3, %v9705_v9, 0.0 }
0x1121   :  { %v4070_v13 = vsel %vm1446_vm3, %v9707_v14, 0.0 }
0x1122   :  { %4074 = vadd.xlane.f32.xlu1 %v4073_v59  ;;  %4071 = vadd.xlane.f32.xlu0 %v4070_v13 }
0x1127   :  { %v9709_v6 = vpop.eup %9708 }
0x1128   :  { %v9711_v24 = vpop.eup %9710  ;;  %v4079_v41 = vsel %vm1446_vm3, %v9709_v6, 0.0 }
0x1129   :  { %4080 = vadd.xlane.f32.xlu1 %v4079_v41  ;;  %v4076_v44 = vsel %vm1446_vm3, %v9711_v24, 0.0 }
0x112a   :  { %4077 = vadd.xlane.f32.xlu0 %v4076_v44 }
0x119e   :  { %v4063_v35 = vpop.xlane.xlu1 %4062 }
0x119f   :  { %v4060_v2 = vpop.xlane.xlu0 %4059 }
0x11a0   :  { %9712 = vrcp.f32 %v4060_v2 }
0x11a1   :  { %9714 = vrcp.f32 %v4063_v35 }
0x11a7   :  { %v4066_v39 = vpop.xlane.xlu0 %4065 }
0x11a8   :  { %9716 = vrcp.f32 %v4066_v39 }
0x11aa   :  { %v9713_v57 = vpop.eup %9712 }
0x11ab   :  { %v4069_v28 = vpop.xlane.xlu1 %4068  ;;  %v4083_v47 = vmul.f32 %v9713_v57, %v9699_v37  ;;  %v9715_v45 = vpop.eup %9714 }
0x11ac   :  { %9718 = vrcp.f32 %v4069_v28  ;;  %v4085_v54 = vmul.f32 %v9715_v45, %v9697_v8 }
0x11ad   :  { %8875 = vmatmul.mubr.msk.f32.vlgmr.msra.gmra.mrb[48].mxu1 %vm1446_vm3, %v4083_v47 }
0x11ae   :  { %9343 = vmatpush3.bf16.msra.mxu1 %v10736_v51  ;;  %8881 = vmatprep.mubr.msk.f32.mxu1 %vm9915_vm1, %v12431_v7 }
0x11af   :  { %v4075_v50 = vpop.xlane.xlu1 %4074  ;;  %v4072_v11 = vpop.xlane.xlu0 %4071  ;;  %9347 = vmatprep.subr.bf16.mxu1 %v12432_v52 }
0x11b0   :  { %9720 = vrcp.f32 %v4075_v50 }
0x11b1   :  { %9722 = vrcp.f32 %v4072_v11  ;;  %8882 = vmatmul.mubr.msk.f32.vlgmr.msra.gmra.mrb[50].mxu1 %vm1446_vm3, %v4085_v54 }
0x11b2   :  { %v9717_v5 = vpop.eup %9716  ;;  %9349 = vmatpush3.bf16.msra.mxu1 %v10757_v36  ;;  %8895 = vmatprep.mubr.msk.f32.mxu1 %vm9915_vm1, %v12431_v7 }
0x11b3   :  { %v4087_v37 = vmul.f32 %v9717_v5, %v9701_v20  ;;  %9353 = vmatprep.subr.bf16.mxu1 %v12432_v52 }
0x11b5   :  { %8889 = vmatmul.mubr.msk.f32.vlgmr.msra.gmra.mrb[56].mxu0 %vm1446_vm3, %v4087_v37 }
0x11b6   :  { %v9719_v55 = vpop.eup %9718  ;;  %9352 = vmatpush3.bf16.msra.mxu0 %v10755_v27  ;;  %v4081_v59 = vpop.xlane.xlu1 %4080  ;;  %8902 = vmatprep.mubr.msk.f32.mxu0 %vm9915_vm1, %v12431_v7 }
0x11b7   :  { %9724 = vrcp.f32 %v4081_v59  ;;  %v4078_v8 = vpop.xlane.xlu0 %4077  ;;  %v4089_v13 = vmul.f32 %v9719_v55, %v9703_v25  ;;  %9356 = vmatprep.subr.bf16.mxu0 %v12432_v52 }
0x11b8   :  { %9726 = vrcp.f32 %v4078_v8 }
0x11b9   :  { %8896 = vmatmul.mubr.msk.f32.vlgmr.msra.gmra.mrb[52].mxu1 %vm1446_vm3, %v4089_v13 }
0x11ba   :  { %v9721_v20 = vpop.eup %9720  ;;  %9355 = vmatpush3.bf16.msra.mxu1 %v10765_v40  ;;  %8909 = vmatprep.mubr.msk.f32.mxu1 %vm9915_vm1, %v12431_v7 }
0x11bb   :  { %v9723_v41 = vpop.eup %9722  ;;  %9359 = vmatprep.subr.bf16.mxu1 %v12432_v52  ;;  %v4093_v44 = vmul.f32 %v9721_v20, %v9705_v9 }
0x11bc   :  { %v4091_v35 = vmul.f32 %v9723_v41, %v9707_v14 }
0x11bd   :  { %8910 = vmatmul.mubr.msk.f32.vlgmr.msra.gmra.mrb[54].mxu1 %vm1446_vm3, %v4093_v44 }
0x11be   :  { %8903 = vmatmul.mubr.msk.f32.vlgmr.msra.gmra.mrb[58].mxu0 %vm1446_vm3, %v4091_v35  ;;  %9361 = vmatpush3.bf16.msra.mxu1 %v10800_v56 }
0x11bf   :  { %9358 = vmatpush3.bf16.msra.mxu0 %v10784_v15  ;;  %8923 = vmatprep.mubr.msk.f32.mxu1 %vm9915_vm1, %v12431_v7 }
0x11c0   :  { %8916 = vmatprep.mubr.msk.f32.mxu0 %vm9915_vm1, %v12431_v7  ;;  %9363 = vmatprep.subr.bf16.mxu0 %v10782_v46 }
0x11c1   :  { %v9725_v25 = vpop.eup %9724  ;;  %9379 = vmatprep.subr.bf16.mxu1 %v11099_v60 }
0x11c2   :  { %v9727_v9 = vpop.eup %9726  ;;  %v4097_v14 = vmul.f32 %v9725_v25, %v9709_v6 }
0x11c3   :  { %v4095_v2 = vmul.f32 %v9727_v9, %v9711_v24 }
0x11c4   :  { %8924 = vmatmul.mubr.msk.f32.vlgmr.msra.gmra.mrb[56].mxu1 %vm1446_vm3, %v4097_v14 }
0x11c5   :  { %8917 = vmatmul.mubr.msk.f32.vlgmr.msra.gmra.mrb[60].mxu0 %vm1446_vm3, %v4095_v2  ;;  %9381 = vmatpush3.bf16.msra.mxu1 %v11099_v60  ;;  %v9907_v2 = vld [vmem:[%s12413_s9] ss:$0 sm:$0xff] }
0x11c6   :  { %9365 = vmatpush3.bf16.msra.mxu0 %v10782_v46  ;;  %9383 = vmatprep.subr.bf16.mxu1 %v11109_v19 }
0x11c7   :  { %9367 = vmatprep.subr.bf16.mxu0 %v10798_v38 }
0x11c9   :  { %9385 = vmatpush3.bf16.msra.mxu1 %v11109_v19 }
0x11ca   :  { %9369 = vmatpush3.bf16.msra.mxu0 %v10798_v38  ;;  %9387 = vmatprep.subr.bf16.mxu1 %v11138_v4 }
0x11cb   :  { %9371 = vmatprep.subr.bf16.mxu0 %v10815_v49 }
0x11ce   :  { %9373 = vmatpush3.bf16.msra.mxu0 %v10815_v49 }
0x11cf   :  { %9375 = vmatprep.subr.bf16.mxu0 %v10824_v16 }
0x11d2   :  { %9377 = vmatpush3.bf16.msra.mxu0 %v10824_v16 }
0x11d3   :  { %9395 = vmatprep.subr.bf16.mxu0 %v10329_v43 }
0x1280   :  { %v4167_v6 = vpop.f32.mrb[48].mxu1 }
0x1281   :  { %v4682_v24 = vsel %vm87_vm0, %v4167_v6, %v11210_v34  ;;  %v8876_v39 = vpop.f32.mrb[49].mxu1 }
0x1282   :  { %8942 = vmatprep.mubr.msk.f32.mxu0 %vm2221_vm4, %v4682_v24 }
0x1284   :  { %v4240_v57 = vpop.f32.mrb[50].mxu1 }
0x1285   :  { %v4683_v28 = vsel %vm87_vm0, %v4240_v57, %v11207_v63  ;;  %v8883_v47 = vpop.f32.mrb[51].mxu1 }
0x1286   :  { %8943 = vmatmul.mubr.msk.f32.vlgmr.msra.gmra.mrb[62].mxu0 %vm2221_vm4, %v4683_v28 }
0x1287   :  { %9397 = vmatpush3.bf16.msra.mxu0 %v10329_v43 }
0x1288   :  { %v4313_v45 = vpop.f32.mrb[56].mxu0  ;;  %9399 = vmatprep.subr.bf16.mxu0 %v10341_v12 }
0x1289   :  { %v4684_v50 = vsel %vm87_vm0, %v4313_v45, %v11220_v10  ;;  %v8890_v11 = vpop.f32.mrb[57].mxu0 }
0x128a   :  { %8945 = vmatprep.mubr.msk.f32.mxu0 %vm2221_vm4, %v4684_v50 }
0x128b   :  { %9401 = vmatpush3.bf16.msra.mxu0 %v10341_v12 }
0x128c   :  { %v4386_v54 = vpop.f32.mrb[52].mxu1  ;;  %9406 = vmatprep.subr.bf16.mxu0 %v12432_v52 }
0x128d   :  { %v4685_v5 = vsel %vm87_vm0, %v4386_v54, %v11217_v32  ;;  %v8897_v37 = vpop.f32.mrb[53].mxu1 }
0x128e   :  { %8946 = vmatmul.mubr.msk.f32.gmra.mrb[64].mxu0 %vm2221_vm4, %v4685_v5 }
0x1290   :  { %v4532_v43 = vpop.f32.mrb[54].mxu1 }
0x1291   :  { %v4459_v55 = vpop.f32.mrb[58].mxu0  ;;  %v4687_v59 = vsel %vm87_vm0, %v4532_v43, %v11227_v62  ;;  %v8911_v8 = vpop.f32.mrb[55].mxu1 }
0x1292   :  { %v4686_v13 = vsel %vm87_vm0, %v4459_v55, %v11230_v30  ;;  %v8904_v20 = vpop.f32.mrb[59].mxu0 }
0x1293   :  { %8948 = vmatprep.mubr.msk.f32.mxu0 %vm2221_vm4, %v4686_v13 }
0x1294   :  { %8949 = vmatmul.mubr.msk.f32.gmra.mrb[66].mxu0 %vm2221_vm4, %v4687_v59 }
0x1297   :  { %v4678_v12 = vpop.f32.mrb[56].mxu1 }
0x1298   :  { %v4605_v41 = vpop.f32.mrb[60].mxu0  ;;  %v8925_v44 = vpop.f32.mrb[57].mxu1  ;;  %v4689_v9 = vsel %vm87_vm0, %v4678_v12, %v11237_v48 }
0x1299   :  { %v4688_v35 = vsel %vm87_vm0, %v4605_v41, %v11240_v22  ;;  %v8918_v25 = vpop.f32.mrb[61].mxu0 }
0x129a   :  { %8951 = vmatprep.mubr.msk.f32.mxu0 %vm2221_vm4, %v4688_v35 }
0x129b   :  { %8952 = vmatmul.mubr.msk.f32.gmra.mrb[68].mxu0 %vm2221_vm4, %v4689_v9 }
0x1359   :  { %v8944_v14 = vpop.f32.mrb[62].mxu0 }
0x135a   :  { %v11514_v6 = vadd.f32 %v9907_v2, %v8944_v14  ;;  %v4780_v24 = vpop.f32.mrb[63].mxu0 }
0x135b   :  { %v11516_v39 = vadd.f32 %v9907_v2, %v4780_v24 }
0x135c   :  { %4877 = vrot.lane.b32.xlu1 %v11514_v6, %s9918_s27  ;;  %v8147_v8 = vmul.f32 -1.442695, %v11514_v6 }
0x135d   :  { %4875 = vrot.lane.b32.xlu0 %v11516_v39, %s9918_s27  ;;  %v8146_v13 = vmul.f32 -1.442695, %v11516_v39 }
0x135e   :  { %9728 = vpow2.f32 %v8147_v8 }
0x135f   :  { %9730 = vpow2.f32 %v8146_v13 }
0x1361   :  { %v8947_v57 = vpop.f32.mrb[64].mxu0 }
0x1362   :  { %v4790_v28 = vpop.f32.mrb[65].mxu0  ;;  %v11526_v45 = vadd.f32 %v9907_v2, %v8947_v57 }
0x1363   :  { %v11522_v47 = vadd.f32 %v9907_v2, %v4790_v28 }
0x1364   :  { %v8149_v41 = vmul.f32 -1.442695, %v11526_v45 }
0x1365   :  { %4879 = vrot.lane.b32.xlu1 %v11522_v47, %s9918_s27  ;;  %v8148_v20 = vmul.f32 -1.442695, %v11522_v47 }
0x1367   :  { %v8950_v50 = vpop.f32.mrb[66].mxu0  ;;  %9732 = vpow2.f32 %v8148_v20 }
0x1368   :  { %v4800_v11 = vpop.f32.mrb[67].mxu0  ;;  %v11532_v5 = vadd.f32 %v9907_v2, %v8950_v50  ;;  %v9729_v12 = vpop.eup %9728  ;;  %9734 = vpow2.f32 %v8149_v41 }
0x1369   :  { %v11528_v54 = vadd.f32 %v9907_v2, %v4800_v11  ;;  %4881 = vrot.lane.b32.xlu1 %v11526_v45, %s9918_s27  ;;  %v9731_v44 = vpop.eup %9730  ;;  %v4844_v25 = vadd.f32 1.0, %v9729_v12 }
0x136a   :  { %v8151_v9 = vmul.f32 -1.442695, %v11532_v5  ;;  %v4843_v14 = vadd.f32 1.0, %v9731_v44 }
0x136b   :  { %4883 = vrot.lane.b32.xlu0 %v11528_v54, %s9918_s27  ;;  %v8150_v35 = vmul.f32 -1.442695, %v11528_v54 }
0x136d   :  { %4885 = vrot.lane.b32.xlu1 %v11532_v5, %s9918_s27  ;;  %9736 = vpow2.f32 %v8150_v35 }
0x136e   :  { %v8953_v37 = vpop.f32.mrb[68].mxu0  ;;  %9738 = vrcp.f32 %v4844_v25 }
0x136f   :  { %v11538_v43 = vadd.f32 %v9907_v2, %v8953_v37  ;;  %v4810_v55 = vpop.f32.mrb[69].mxu0  ;;  %9740 = vpow2.f32 %v8151_v9 }
0x1370   :  { %v11540_v59 = vadd.f32 %v9907_v2, %v4810_v55  ;;  %9742 = vrcp.f32 %v4843_v14 }
0x1371   :  { %4889 = vrot.lane.b32.xlu1 %v11538_v43, %s9918_s27  ;;  %v8153_v2 = vmul.f32 -1.442695, %v11538_v43  ;;  %v9733_v57 = vpop.eup %9732 }
0x1372   :  { %4887 = vrot.lane.b32.xlu0 %v11540_v59, %s9918_s27  ;;  %v8152_v24 = vmul.f32 -1.442695, %v11540_v59  ;;  %v4845_v28 = vadd.f32 1.0, %v9733_v57  ;;  %v9735_v50 = vpop.eup %9734 }
0x1373   :  { %9744 = vpow2.f32 %v8153_v2  ;;  %v4846_v55 = vadd.f32 1.0, %v9735_v50 }
0x1374   :  { %9746 = vpow2.f32 %v8152_v24 }
0x1375   :  { %9748 = vrcp.f32 %v4845_v28 }
0x1376   :  { %9750 = vrcp.f32 %v4846_v55 }
0x1377   :  { %v9737_v11 = vpop.eup %9736 }
0x1378   :  { %v11554_v37 = vpop.eup %9738  ;;  %v4847_v12 = vadd.f32 1.0, %v9737_v11 }
0x1379   :  { %v9741_v8 = vpop.eup %9740 }
0x137a   :  { %v11556_v20 = vpop.eup %9742  ;;  %v4848_v25 = vadd.f32 1.0, %v9741_v8  ;;  %9752 = vrcp.f32 %v4847_v12 }
0x137c   :  { %9754 = vrcp.f32 %v4848_v25 }
0x137d   :  { %v9745_v9 = vpop.eup %9744 }
0x137e   :  { %v9747_v14 = vpop.eup %9746  ;;  %v4850_v2 = vadd.f32 1.0, %v9745_v9 }
0x137f   :  { %v4849_v24 = vadd.f32 1.0, %v9747_v14  ;;  %v11562_v57 = vpop.eup %9748 }
0x1380   :  { %9756 = vrcp.f32 %v4850_v2  ;;  %v11566_v11 = vpop.eup %9750 }
0x1381   :  { %9758 = vrcp.f32 %v4849_v24 }
0x13ce   :  { %v4878_v13 = vpop.permute.xlu1 %4877 }
0x13cf   :  { %v4900_v41 = vmul.f32 %v11554_v37, %v4878_v13  ;;  %v4876_v44 = vpop.permute.xlu0 %4875  ;;  %v11569_v13 = vpop.eup %9752 }
0x13d0   :  { %v4899_v35 = vmul.f32 %v11556_v20, %v4876_v44  ;;  %v11573_v44 = vpop.eup %9754 }
0x13d1   :  { %4917 = vrot.lane.b32.xlu1 %v4900_v41, %s9919_s23  ;;  %v11578_v9 = vpop.eup %9756 }
0x13d2   :  { %4915 = vrot.lane.b32.xlu0 %v4899_v35, %s9919_s23  ;;  %v11580_v2 = vpop.eup %9758 }
0x13d7   :  { %v4880_v28 = vpop.permute.xlu1 %4879 }
0x13d8   :  { %v4901_v50 = vmul.f32 %v11562_v57, %v4880_v28 }
0x13da   :  { %4919 = vrot.lane.b32.xlu0 %v4901_v50, %s9919_s23 }
0x13db   :  { %v4882_v55 = vpop.permute.xlu1 %4881 }
0x13dc   :  { %v4902_v8 = vmul.f32 %v11566_v11, %v4882_v55 }
0x13dd   :  { %v4884_v12 = vpop.permute.xlu0 %4883 }
0x13de   :  { %v4903_v41 = vmul.f32 %v11569_v13, %v4884_v12  ;;  %4921 = vrot.lane.b32.xlu1 %v4902_v8, %s9919_s23 }
0x13df   :  { %v4886_v35 = vpop.permute.xlu1 %4885 }
0x13e0   :  { %v4904_v25 = vmul.f32 %v11573_v44, %v4886_v35  ;;  %4923 = vrot.lane.b32.xlu0 %v4903_v41, %s9919_s23 }
0x13e2   :  { %4925 = vrot.lane.b32.xlu1 %v4904_v25, %s9919_s23 }
0x13e3   :  { %v4890_v14 = vpop.permute.xlu1 %4889 }
0x13e4   :  { %v4906_v24 = vmul.f32 %v11578_v9, %v4890_v14  ;;  %v4888_v28 = vpop.permute.xlu0 %4887 }
0x13e5   :  { %v4905_v50 = vmul.f32 %v11580_v2, %v4888_v28 }
0x13e6   :  { %4929 = vrot.lane.b32.xlu1 %v4906_v24, %s9919_s23 }
0x13e7   :  { %4927 = vrot.lane.b32.xlu0 %v4905_v50, %s9919_s23 }
0x1443   :  { %v4918_v55 = vpop.permute.xlu1 %4917 }
0x1444   :  { %v4940_v8 = vadd.f32 %v4918_v55, %v11514_v6  ;;  %v4916_v12 = vpop.permute.xlu0 %4915 }
0x1445   :  { %v4939_v41 = vadd.f32 %v4916_v12, %v11516_v39 }
0x1446   :  { %9760 = vtanh.f32 %v4940_v8 }
0x1447   :  { %9762 = vtanh.f32 %v4939_v41 }
0x144c   :  { %v4920_v35 = vpop.permute.xlu0 %4919 }
0x144d   :  { %v4941_v25 = vadd.f32 %v4920_v35, %v11522_v47  ;;  %v4955_v35 = vsub.f32 1.0, %v11556_v20 }
0x144f   :  { %9764 = vtanh.f32 %v4941_v25  ;;  %v5004_v25 = vmul.f32 %v11554_v37, %v11207_v63  ;;  %v5005_v63 = vmul.f32 %v11562_v57, %v11220_v10  ;;  %v5007_v10 = vmul.f32 %v11569_v13, %v11230_v30 }
0x1450   :  { %v9761_v14 = vpop.eup %9760  ;;  %v4922_v16 = vpop.permute.xlu1 %4921  ;;  %v4962_v30 = vsub.f32 1.0, %v11578_v9 }
0x1451   :  { %v9763_v49 = vpop.eup %9762  ;;  %v4942_v28 = vadd.f32 %v4922_v16, %v11526_v45  ;;  %4973 = vrot.lane.b32.xlu1 %v9761_v14, %s9917_s26 }
0x1452   :  { %v4924_v24 = vpop.permute.xlu0 %4923  ;;  %4971 = vrot.lane.b32.xlu0 %v9763_v49, %s9917_s26 }
0x1453   :  { %9766 = vtanh.f32 %v4942_v28  ;;  %v4943_v6 = vadd.f32 %v4924_v24, %v11528_v54  ;;  %v5003_v24 = vmul.f32 %v11556_v20, %v11210_v34  ;;  %v4958_v34 = vsub.f32 1.0, %v11566_v11 }
0x1454   :  { %v4926_v39 = vpop.permute.xlu1 %4925 }
0x1455   :  { %9768 = vtanh.f32 %v4943_v6  ;;  %v4944_v50 = vadd.f32 %v4926_v39, %v11532_v5 }
0x1457   :  { %9770 = vtanh.f32 %v4944_v50 }
0x1458   :  { %v4930_v47 = vpop.permute.xlu1 %4929 }
0x1459   :  { %v9765_v55 = vpop.eup %9764  ;;  %v4946_v8 = vadd.f32 %v4930_v47, %v11538_v43  ;;  %v4928_v12 = vpop.permute.xlu0 %4927  ;;  %v4956_v43 = vsub.f32 1.0, %v11554_v37  ;;  %v4957_v47 = vsub.f32 1.0, %v11562_v57 }
0x145a   :  { %v4945_v16 = vadd.f32 %v4928_v12, %v11540_v59  ;;  %4975 = vrot.lane.b32.xlu0 %v9765_v55, %s9917_s26  ;;  %v5006_v12 = vmul.f32 %v11566_v11, %v11217_v32  ;;  %v5008_v32 = vmul.f32 %v11573_v44, %v11227_v62 }
0x145b   :  { %9772 = vtanh.f32 %v4946_v8 }
0x145c   :  { %9774 = vtanh.f32 %v4945_v16 }
0x145d   :  { %v9767_v49 = vpop.eup %9766 }
0x145e   :  { %4977 = vrot.lane.b32.xlu1 %v9767_v49, %s9917_s26  ;;  %v4959_v49 = vsub.f32 1.0, %v11569_v13 }
0x145f   :  { %v9769_v45 = vpop.eup %9768 }
0x1460   :  { %4979 = vrot.lane.b32.xlu0 %v9769_v45, %s9917_s26 }
0x1461   :  { %v9771_v54 = vpop.eup %9770 }
0x1462   :  { %4981 = vrot.lane.b32.xlu1 %v9771_v54, %s9917_s26 }
0x1465   :  { %v9773_v5 = vpop.eup %9772 }
0x1466   :  { %v9775_v41 = vpop.eup %9774  ;;  %4985 = vrot.lane.b32.xlu1 %v9773_v5, %s9917_s26  ;;  %v4960_v5 = vsub.f32 1.0, %v11573_v44  ;;  %v5009_v44 = vmul.f32 %v11580_v2, %v11240_v22 }
0x1467   :  { %4983 = vrot.lane.b32.xlu0 %v9775_v41, %s9917_s26 }
0x14c3   :  { %v4974_v59 = vpop.permute.xlu1 %4973 }
0x14c4   :  { %v4996_v14 = vmul.f32 %v4974_v59, %v4956_v43  ;;  %v4972_v28 = vpop.permute.xlu0 %4971 }
0x14c5   :  { %v4995_v6 = vmul.f32 %v4972_v28, %v4955_v35  ;;  %v4961_v35 = vsub.f32 1.0, %v11580_v2 }
0x14c6   :  { %v11608_v39 = vadd.f32 %v5004_v25, %v4996_v14  ;;  %v5010_v25 = vmul.f32 %v11578_v9, %v11237_v48 }
0x14c7   :  { %v11610_v50 = vadd.f32 %v5003_v24, %v4995_v6 }
0x14c8   :  { %5029 = vrot.lane.b32.xlu1 %v11608_v39, %s9917_s26 }
0x14c9   :  { %5027 = vrot.lane.b32.xlu0 %v11610_v50, %s9917_s26 }
0x14cc   :  { %v4976_v55 = vpop.permute.xlu0 %4975 }
0x14cd   :  { %v4997_v37 = vmul.f32 %v4976_v55, %v4957_v47 }
0x14cf   :  { %v11619_v8 = vadd.f32 %v5005_v63, %v4997_v37 }
0x14d0   :  { %v4978_v20 = vpop.permute.xlu1 %4977 }
0x14d1   :  { %v4998_v16 = vmul.f32 %v4978_v20, %v4958_v34  ;;  %5031 = vrot.lane.b32.xlu0 %v11619_v8, %s9917_s26 }
0x14d2   :  { %v4980_v45 = vpop.permute.xlu0 %4979 }
0x14d3   :  { %v11627_v54 = vadd.f32 %v5006_v12, %v4998_v16  ;;  %v4999_v57 = vmul.f32 %v4980_v45, %v4959_v49 }
0x14d4   :  { %v4982_v41 = vpop.permute.xlu1 %4981 }
0x14d5   :  { %v11632_v43 = vadd.f32 %v5007_v10, %v4999_v57  ;;  %v5000_v11 = vmul.f32 %v4982_v41, %v4960_v5  ;;  %5033 = vrot.lane.b32.xlu1 %v11627_v54, %s9917_s26 }
0x14d7   :  { %v11638_v59 = vadd.f32 %v5008_v32, %v5000_v11  ;;  %5035 = vrot.lane.b32.xlu0 %v11632_v43, %s9917_s26 }
0x14d8   :  { %v4986_v13 = vpop.permute.xlu1 %4985 }
0x14d9   :  { %v5002_v14 = vmul.f32 %v4986_v13, %v4962_v30  ;;  %5037 = vrot.lane.b32.xlu1 %v11638_v59, %s9917_s26  ;;  %v4984_v62 = vpop.permute.xlu0 %4983 }
0x14da   :  { %v5001_v28 = vmul.f32 %v4984_v62, %v4961_v35 }
0x14db   :  { %v11650_v24 = vadd.f32 %v5010_v25, %v5002_v14 }
0x14dc   :  { %v11652_v6 = vadd.f32 %v5009_v44, %v5001_v28 }
0x14dd   :  { %5041 = vrot.lane.b32.xlu1 %v11650_v24, %s9917_s26 }
0x14de   :  { %5039 = vrot.lane.b32.xlu0 %v11652_v6, %s9917_s26 }
0x153a   :  { %v5030_v48 = vpop.permute.xlu1 %5029 }
0x153b   :  { %v5028_v9 = vpop.permute.xlu0 %5027  ;;  %v5054_v47 = vsel %vm87_vm0, %v5030_v48, 0.0 }
0x153c   :  { %5055 = vadd.xlane.f32.xlu1 %v5054_v47  ;;  %v5051_v55 = vsel %vm87_vm0, %v5028_v9, 0.0 }
0x153d   :  { %5052 = vadd.xlane.f32.xlu0 %v5051_v55 }
0x1543   :  { %v5032_v22 = vpop.permute.xlu0 %5031 }
0x1544   :  { %v5057_v2 = vsel %vm87_vm0, %v5032_v22, 0.0 }
0x1545   :  { %5058 = vadd.xlane.f32.xlu0 %v5057_v2 }
0x1547   :  { %v5034_v63 = vpop.permute.xlu1 %5033 }
0x1548   :  { %v5060_v37 = vsel %vm87_vm0, %v5034_v63, 0.0 }
0x1549   :  { %v5036_v34 = vpop.permute.xlu0 %5035  ;;  %5061 = vadd.xlane.f32.xlu0 %v5060_v37 }
0x154a   :  { %v5063_v16 = vsel %vm87_vm0, %v5036_v34, 0.0 }
0x154b   :  { %v5038_v20 = vpop.permute.xlu1 %5037 }
0x154c   :  { %v5066_v12 = vsel %vm87_vm0, %v5038_v20, 0.0 }
0x154d   :  { %5067 = vadd.xlane.f32.xlu1 %v5066_v12  ;;  %5064 = vadd.xlane.f32.xlu0 %v5063_v16 }
0x154f   :  { %v5042_v49 = vpop.permute.xlu1 %5041 }
0x1550   :  { %v5040_v45 = vpop.permute.xlu0 %5039  ;;  %v5072_v10 = vsel %vm87_vm0, %v5042_v49, 0.0 }
0x1551   :  { %5073 = vadd.xlane.f32.xlu1 %v5072_v10  ;;  %v5069_v57 = vsel %vm87_vm0, %v5040_v45, 0.0 }
0x1552   :  { %5070 = vadd.xlane.f32.xlu0 %v5069_v57 }
0x15c9   :  { %v5056_v5 = vpop.xlane.xlu1 %5055 }
0x15ca   :  { %v5076_v41 = vmul.f32 0.03125, %v5056_v5  ;;  %v5053_v32 = vpop.xlane.xlu0 %5052 }
0x15cb   :  { %v5075_v11 = vmul.f32 0.03125, %v5053_v32 }
0x15cc   :  { %v11667_v30 = vsub.f32 %v11608_v39, %v5076_v41 }
0x15cd   :  { %v11670_v13 = vsub.f32 %v11610_v50, %v5075_v11 }
0x15ce   :  { %v5092_v35 = vmul.f32 %v11667_v30, %v11667_v30 }
0x15cf   :  { %v5091_v25 = vmul.f32 %v11670_v13, %v11670_v13 }
0x15d0   :  { %5109 = vrot.lane.b32.xlu1 %v5092_v35, %s9917_s26 }
0x15d1   :  { %5107 = vrot.lane.b32.xlu0 %v5091_v25, %s9917_s26 }
0x15d2   :  { %v5059_v14 = vpop.xlane.xlu0 %5058 }
0x15d3   :  { %v5077_v62 = vmul.f32 0.03125, %v5059_v14 }
0x15d5   :  { %v11679_v44 = vsub.f32 %v11619_v8, %v5077_v62 }
0x15d6   :  { %v5062_v28 = vpop.xlane.xlu0 %5061 }
0x15d7   :  { %v5093_v48 = vmul.f32 %v11679_v44, %v11679_v44  ;;  %v5078_v9 = vmul.f32 0.03125, %v5062_v28 }
0x15d9   :  { %v11684_v47 = vsub.f32 %v11627_v54, %v5078_v9  ;;  %5111 = vrot.lane.b32.xlu1 %v5093_v48, %s9917_s26 }
0x15da   :  { %v5068_v55 = vpop.xlane.xlu1 %5067  ;;  %v5065_v22 = vpop.xlane.xlu0 %5064 }
0x15db   :  { %v5094_v2 = vmul.f32 %v11684_v47, %v11684_v47  ;;  %v5080_v63 = vmul.f32 0.03125, %v5068_v55  ;;  %v5079_v37 = vmul.f32 0.03125, %v5065_v22 }
0x15dd   :  { %v11690_v34 = vsub.f32 %v11638_v59, %v5080_v63  ;;  %v11693_v20 = vsub.f32 %v11632_v43, %v5079_v37  ;;  %5113 = vrot.lane.b32.xlu1 %v5094_v2, %s9917_s26 }
0x15de   :  { %v5074_v12 = vpop.xlane.xlu1 %5073 }
0x15df   :  { %v5096_v16 = vmul.f32 %v11690_v34, %v11690_v34  ;;  %v5095_v49 = vmul.f32 %v11693_v20, %v11693_v20  ;;  %v5082_v45 = vmul.f32 0.03125, %v5074_v12  ;;  %v5071_v10 = vpop.xlane.xlu0 %5070 }
0x15e0   :  { %v5081_v57 = vmul.f32 0.03125, %v5071_v10 }
0x15e1   :  { %v11701_v5 = vsub.f32 %v11650_v24, %v5082_v45  ;;  %5117 = vrot.lane.b32.xlu1 %v5096_v16, %s9917_s26  ;;  %5115 = vrot.lane.b32.xlu0 %v5095_v49, %s9917_s26 }
0x15e2   :  { %v11706_v41 = vsub.f32 %v11652_v6, %v5081_v57 }
0x15e3   :  { %v5098_v32 = vmul.f32 %v11701_v5, %v11701_v5 }
0x15e4   :  { %v5097_v11 = vmul.f32 %v11706_v41, %v11706_v41 }
0x15e5   :  { %5121 = vrot.lane.b32.xlu1 %v5098_v32, %s9917_s26 }
0x15e6   :  { %5119 = vrot.lane.b32.xlu0 %v5097_v11, %s9917_s26 }
0x1642   :  { %v5110_v35 = vpop.permute.xlu1 %5109 }
0x1643   :  { %v5108_v25 = vpop.permute.xlu0 %5107  ;;  %v5134_v14 = vsel %vm87_vm0, %v5110_v35, 0.0 }
0x1644   :  { %5135 = vadd.xlane.f32.xlu1 %v5134_v14  ;;  %v5131_v62 = vsel %vm87_vm0, %v5108_v25, 0.0 }
0x1645   :  { %5132 = vadd.xlane.f32.xlu0 %v5131_v62 }
0x164b   :  { %v5112_v28 = vpop.permute.xlu1 %5111 }
0x164c   :  { %v5137_v48 = vsel %vm87_vm0, %v5112_v28, 0.0 }
0x164d   :  { %5138 = vadd.xlane.f32.xlu0 %v5137_v48 }
0x164f   :  { %v5114_v9 = vpop.permute.xlu1 %5113 }
0x1650   :  { %v5140_v55 = vsel %vm87_vm0, %v5114_v9, 0.0 }
0x1651   :  { %5141 = vadd.xlane.f32.xlu0 %v5140_v55 }
0x1653   :  { %v5118_v22 = vpop.permute.xlu1 %5117  ;;  %v5116_v2 = vpop.permute.xlu0 %5115 }
0x1654   :  { %v5146_v63 = vsel %vm87_vm0, %v5118_v22, 0.0  ;;  %v5143_v37 = vsel %vm87_vm0, %v5116_v2, 0.0 }
0x1655   :  { %5147 = vadd.xlane.f32.xlu1 %v5146_v63  ;;  %5144 = vadd.xlane.f32.xlu0 %v5143_v37 }
0x1657   :  { %v5122_v12 = vpop.permute.xlu1 %5121 }
0x1658   :  { %v5120_v16 = vpop.permute.xlu0 %5119  ;;  %v5152_v49 = vsel %vm87_vm0, %v5122_v12, 0.0 }
0x1659   :  { %5153 = vadd.xlane.f32.xlu1 %v5152_v49  ;;  %v5149_v45 = vsel %vm87_vm0, %v5120_v16, 0.0 }
0x165a   :  { %5150 = vadd.xlane.f32.xlu0 %v5149_v45 }
0x16d1   :  { %v5136_v10 = vpop.xlane.xlu1 %5135 }
0x16d2   :  { %v5156_v57 = vmul.f32 0.03125, %v5136_v10  ;;  %v5133_v32 = vpop.xlane.xlu0 %5132 }
0x16d3   :  { %v5155_v11 = vmul.f32 0.03125, %v5133_v32 }
0x16d4   :  { %v5164_v35 = vadd.f32 1e-05, %v5156_v57 }
0x16d5   :  { %v5163_v25 = vadd.f32 1e-05, %v5155_v11 }
0x16d6   :  { %9776 = vrsqrt.f32 %v5164_v35 }
0x16d7   :  { %9778 = vrsqrt.f32 %v5163_v25 }
0x16da   :  { %v5139_v14 = vpop.xlane.xlu0 %5138 }
0x16db   :  { %v5157_v62 = vmul.f32 0.03125, %v5139_v14 }
0x16dd   :  { %v5165_v28 = vadd.f32 1e-05, %v5157_v62 }
0x16de   :  { %v5142_v48 = vpop.xlane.xlu0 %5141 }
0x16df   :  { %9780 = vrsqrt.f32 %v5165_v28  ;;  %v5158_v9 = vmul.f32 0.03125, %v5142_v48 }
0x16e0   :  { %v9777_v55 = vpop.eup %9776 }
0x16e1   :  { %v9779_v22 = vpop.eup %9778  ;;  %v5166_v2 = vadd.f32 1e-05, %v5158_v9  ;;  %v5180_v63 = vmul.f32 %v9777_v55, %v11667_v30 }
0x16e2   :  { %v5148_v37 = vpop.xlane.xlu1 %5147  ;;  %v5145_v12 = vpop.xlane.xlu0 %5144  ;;  %v5179_v16 = vmul.f32 %v9779_v22, %v11670_v13 }
0x16e3   :  { %9782 = vrsqrt.f32 %v5166_v2  ;;  %v5160_v49 = vmul.f32 0.03125, %v5148_v37  ;;  %v5159_v45 = vmul.f32 0.03125, %v5145_v12  ;;  %v5188_v10 = vmul.f32 %v5180_v63, %v11114_v61 }
0x16e4   :  { %v5187_v57 = vmul.f32 %v5179_v16, %v11114_v61 }
0x16e5   :  { %v5168_v32 = vadd.f32 1e-05, %v5160_v49  ;;  %v5167_v11 = vadd.f32 1e-05, %v5159_v45  ;;  %v5196_v35 = vadd.f32 %v5188_v10, %v11116_v42 }
0x16e6   :  { %v5154_v25 = vpop.xlane.xlu1 %5153  ;;  %v5195_v14 = vadd.f32 %v5187_v57, %v11116_v42 }
0x16e7   :  { %9784 = vrsqrt.f32 %v5168_v32  ;;  %v5162_v30 = vmul.f32 0.03125, %v5154_v25  ;;  %v5151_v62 = vpop.xlane.xlu0 %5150  ;;  %5213 = vrot.lane.b32.xlu1 %v5196_v35, %s9917_s26 }
0x16e8   :  { %9786 = vrsqrt.f32 %v5167_v11  ;;  %v5161_v13 = vmul.f32 0.03125, %v5151_v62  ;;  %5211 = vrot.lane.b32.xlu0 %v5195_v14, %s9917_s26 }
0x16e9   :  { %v9781_v28 = vpop.eup %9780  ;;  %v5170_v48 = vadd.f32 1e-05, %v5162_v30 }
0x16ea   :  { %v5169_v9 = vadd.f32 1e-05, %v5161_v13  ;;  %v5181_v55 = vmul.f32 %v9781_v28, %v11679_v44 }
0x16eb   :  { %9788 = vrsqrt.f32 %v5170_v48 }
0x16ec   :  { %9790 = vrsqrt.f32 %v5169_v9  ;;  %v5189_v22 = vmul.f32 %v5181_v55, %v11114_v61 }
0x16ed   :  { %v9783_v2 = vpop.eup %9782 }
0x16ee   :  { %v5197_v63 = vadd.f32 %v5189_v22, %v11116_v42  ;;  %v5182_v37 = vmul.f32 %v9783_v2, %v11684_v47 }
0x16f0   :  { %5215 = vrot.lane.b32.xlu1 %v5197_v63, %s9917_s26  ;;  %v5190_v12 = vmul.f32 %v5182_v37, %v11114_v61  ;;  %v9908_v37 = vld [vmem:[%s12408_s7 + $0x9] ss:$0 sm:$0xff] }
0x16f1   :  { %v9785_v16 = vpop.eup %9784 }
0x16f2   :  { %v9787_v49 = vpop.eup %9786  ;;  %v5198_v45 = vadd.f32 %v5190_v12, %v11116_v42  ;;  %v5184_v10 = vmul.f32 %v9785_v16, %v11690_v34 }
0x16f3   :  { %v5183_v44 = vmul.f32 %v9787_v49, %v11693_v20 }
0x16f4   :  { %5217 = vrot.lane.b32.xlu1 %v5198_v45, %s9917_s26  ;;  %v5192_v57 = vmul.f32 %v5184_v10, %v11114_v61 }
0x16f5   :  { %v9789_v32 = vpop.eup %9788  ;;  %v5191_v11 = vmul.f32 %v5183_v44, %v11114_v61 }
0x16f6   :  { %v9791_v47 = vpop.eup %9790  ;;  %v5200_v35 = vadd.f32 %v5192_v57, %v11116_v42  ;;  %v5186_v25 = vmul.f32 %v9789_v32, %v11701_v5 }
0x16f7   :  { %v5199_v14 = vadd.f32 %v5191_v11, %v11116_v42  ;;  %v5185_v30 = vmul.f32 %v9791_v47, %v11706_v41 }
0x16f8   :  { %5221 = vrot.lane.b32.xlu1 %v5200_v35, %s9917_s26  ;;  %v5194_v34 = vmul.f32 %v5186_v25, %v11114_v61 }
0x16f9   :  { %5219 = vrot.lane.b32.xlu0 %v5199_v14, %s9917_s26  ;;  %v5193_v20 = vmul.f32 %v5185_v30, %v11114_v61 }
0x16fa   :  { %v5202_v62 = vadd.f32 %v5194_v34, %v11116_v42 }
0x16fb   :  { %v5201_v13 = vadd.f32 %v5193_v20, %v11116_v42 }
0x16fc   :  { %5225 = vrot.lane.b32.xlu1 %v5202_v62, %s9917_s26 }
0x16fd   :  { %5223 = vrot.lane.b32.xlu0 %v5201_v13, %s9917_s26 }
0x1759   :  { %v5214_v28 = vpop.permute.xlu1 %5213 }
0x175a   :  { %v5212_v5 = vpop.permute.xlu0 %5211 }
0x175b   :  { %8962 = vmatprep.mubr.msk.f32.mxu1 %vm87_vm0, %v5212_v5 }
0x175c   :  { %8963 = vmatmul.mubr.msk.f32.vlgmr.msra.gmra.mrb[58].mxu1 %vm87_vm0, %v5214_v28 }
0x175d   :  { %9389 = vmatpush3.bf16.msra.mxu1 %v11138_v4 }
0x175e   :  { %9391 = vmatprep.subr.bf16.mxu1 %v11165_v3 }
0x1761   :  { %9393 = vmatpush3.bf16.msra.mxu1 %v11165_v3 }
0x1762   :  { %v5216_v41 = vpop.permute.xlu1 %5215  ;;  %9402 = vmatprep.subr.bf16.mxu1 %v12432_v52 }
0x1763   :  { %8965 = vmatprep.mubr.msk.f32.mxu1 %vm87_vm0, %v5216_v41 }
0x1766   :  { %v5218_v48 = vpop.permute.xlu1 %5217 }
0x1767   :  { %8966 = vmatmul.mubr.msk.f32.gmra.mrb[60].mxu1 %vm87_vm0, %v5218_v48 }
0x176a   :  { %v5222_v9 = vpop.permute.xlu1 %5221 }
0x176b   :  { %v5220_v55 = vpop.permute.xlu0 %5219 }
0x176c   :  { %8968 = vmatprep.mubr.msk.f32.mxu1 %vm87_vm0, %v5220_v55  ;;  %v9909_v55 = vld [vmem:[%s12408_s7 + $0xa] ss:$0 sm:$0xff] }
0x176d   :  { %8969 = vmatmul.mubr.msk.f32.gmra.mrb[62].mxu1 %vm87_vm0, %v5222_v9 }
0x176e   :  { %v5226_v2 = vpop.permute.xlu1 %5225 }
0x176f   :  { %v5224_v22 = vpop.permute.xlu0 %5223 }
0x1770   :  { %8971 = vmatprep.mubr.msk.f32.mxu1 %vm87_vm0, %v5224_v22 }
0x1771   :  { %8972 = vmatmul.mubr.msk.f32.gmra.mrb[64].mxu1 %vm87_vm0, %v5226_v2 }
0x182f   :  { %v8964_v63 = vpop.f32.mrb[58].mxu1 }
0x1830   :  { %v5315_v12 = vadd.f32 %v9908_v37, %v8964_v63  ;;  %v5309_v16 = vpop.f32.mrb[59].mxu1 }
0x1831   :  { %v5310_v49 = vadd.f32 %v9908_v37, %v5309_v16 }
0x1832   :  { %v5349_v10 = vmax.f32 %v5315_v12, 0.0 }
0x1833   :  { %v5348_v45 = vmax.f32 %v5310_v49, 0.0 }
0x1835   :  { %8982 = vmatprep.mubr.msk.f32.mxu1 %vm87_vm0, %v5348_v45 }
0x1836   :  { %8983 = vmatmul.mubr.msk.f32.vlgmr.msra.gmra.mrb[66].mxu1 %vm87_vm0, %v5349_v10 }
0x1837   :  { %9405 = vmatpush3.bf16.xpose.msk.msra.mxu1 %vm10480_vm2, %v10488_v26 }
0x1838   :  { %9410 = vmatprep.subr.bf16.mxu1 %v12432_v52 }
0x183a   :  { %v8967_v44 = vpop.f32.mrb[60].mxu1 }
0x183b   :  { %v5325_v57 = vadd.f32 %v9908_v37, %v8967_v44  ;;  %v5319_v32 = vpop.f32.mrb[61].mxu1 }
0x183c   :  { %v5320_v11 = vadd.f32 %v9908_v37, %v5319_v32 }
0x183d   :  { %v5351_v35 = vmax.f32 %v5325_v57, 0.0 }
0x183e   :  { %v5350_v47 = vmax.f32 %v5320_v11, 0.0 }
0x1840   :  { %v8970_v25 = vpop.f32.mrb[62].mxu1  ;;  %8985 = vmatprep.mubr.msk.f32.mxu1 %vm87_vm0, %v5350_v47 }
0x1841   :  { %v5335_v14 = vadd.f32 %v9908_v37, %v8970_v25  ;;  %v5329_v30 = vpop.f32.mrb[63].mxu1  ;;  %8986 = vmatmul.mubr.msk.f32.gmra.mrb[68].mxu1 %vm87_vm0, %v5351_v35 }
0x1842   :  { %v5330_v34 = vadd.f32 %v9908_v37, %v5329_v30 }
0x1843   :  { %v5353_v13 = vmax.f32 %v5335_v14, 0.0 }
0x1844   :  { %v5352_v20 = vmax.f32 %v5330_v34, 0.0  ;;  %v8973_v62 = vpop.f32.mrb[64].mxu1 }
0x1845   :  { %v5345_v26 = vadd.f32 %v9908_v37, %v8973_v62  ;;  %v5339_v5 = vpop.f32.mrb[65].mxu1 }
0x1846   :  { %v5340_v28 = vadd.f32 %v9908_v37, %v5339_v5  ;;  %8988 = vmatprep.mubr.msk.f32.mxu1 %vm87_vm0, %v5352_v20 }
0x1847   :  { %8989 = vmatmul.mubr.msk.f32.gmra.mrb[70].mxu1 %vm87_vm0, %v5353_v13  ;;  %v5355_v48 = vmax.f32 %v5345_v26, 0.0 }
0x1848   :  { %v5354_v41 = vmax.f32 %v5340_v28, 0.0 }
0x184a   :  { %8991 = vmatprep.mubr.msk.f32.mxu1 %vm87_vm0, %v5354_v41 }
0x184b   :  { %8992 = vmatmul.mubr.msk.f32.gmra.mrb[72].mxu1 %vm87_vm0, %v5355_v48 }
0x184c   :  { %9018 = vmatprep.mubr.msk.f32.mxu1 %vm9915_vm1, %v12431_v7 }
0x1909   :  { %v8984_v9 = vpop.f32.mrb[66].mxu1 }
0x190a   :  { %v5452_v22 = vadd.f32 %v9909_v55, %v8984_v9  ;;  %v5446_v2 = vpop.f32.mrb[67].mxu1 }
0x190b   :  { %v5447_v63 = vadd.f32 %v9909_v55, %v5446_v2 }
0x190c   :  { %5495 = vrot.lane.b32.xlu1 %v5452_v22, %s9918_s27 }
0x190d   :  { %5493 = vrot.lane.b32.xlu0 %v5447_v63, %s9918_s27 }
0x1914   :  { %v8987_v37 = vpop.f32.mrb[68].mxu1 }
0x1915   :  { %v5462_v12 = vadd.f32 %v9909_v55, %v8987_v37  ;;  %v5456_v16 = vpop.f32.mrb[69].mxu1 }
0x1916   :  { %v5457_v49 = vadd.f32 %v9909_v55, %v5456_v16 }
0x1917   :  { %5499 = vrot.lane.b32.xlu1 %v5462_v12, %s9918_s27 }
0x1918   :  { %5497 = vrot.lane.b32.xlu0 %v5457_v49, %s9918_s27 }
0x191a   :  { %v8990_v45 = vpop.f32.mrb[70].mxu1 }
0x191b   :  { %v5472_v10 = vadd.f32 %v9909_v55, %v8990_v45  ;;  %v5466_v44 = vpop.f32.mrb[71].mxu1 }
0x191c   :  { %v5467_v57 = vadd.f32 %v9909_v55, %v5466_v44 }
0x191d   :  { %5503 = vrot.lane.b32.xlu1 %v5472_v10, %s9918_s27 }
0x191e   :  { %5501 = vrot.lane.b32.xlu0 %v5467_v57, %s9918_s27  ;;  %v8993_v32 = vpop.f32.mrb[72].mxu1 }
0x191f   :  { %v5482_v11 = vadd.f32 %v9909_v55, %v8993_v32  ;;  %v5476_v47 = vpop.f32.mrb[73].mxu1 }
0x1920   :  { %v5477_v35 = vadd.f32 %v9909_v55, %v5476_v47 }
0x1921   :  { %5507 = vrot.lane.b32.xlu1 %v5482_v11, %s9918_s27 }
0x1922   :  { %5505 = vrot.lane.b32.xlu0 %v5477_v35, %s9918_s27 }
0x197e   :  { %v5496_v25 = vpop.permute.xlu1 %5495 }
0x197f   :  { %v11795_v14 = vadd.f32 %v5496_v25, %v11608_v39  ;;  %v5494_v30 = vpop.permute.xlu0 %5493 }
0x1980   :  { %v11798_v34 = vadd.f32 %v5494_v30, %v11610_v50 }
0x1981   :  { %5535 = vrot.lane.b32.xlu1 %v11795_v14, %s9917_s26 }
0x1982   :  { %5533 = vrot.lane.b32.xlu0 %v11798_v34, %s9917_s26 }
0x1989   :  { %v5500_v20 = vpop.permute.xlu1 %5499 }
0x198a   :  { %v11805_v62 = vadd.f32 %v5500_v20, %v11627_v54  ;;  %v5498_v13 = vpop.permute.xlu0 %5497 }
0x198b   :  { %v11808_v26 = vadd.f32 %v5498_v13, %v11619_v8 }
0x198c   :  { %5539 = vrot.lane.b32.xlu1 %v11805_v62, %s9917_s26 }
0x198d   :  { %5537 = vrot.lane.b32.xlu0 %v11808_v26, %s9917_s26 }
0x198f   :  { %v5504_v39 = vpop.permute.xlu1 %5503 }
0x1990   :  { %v11815_v50 = vadd.f32 %v5504_v39, %v11638_v59  ;;  %v5502_v5 = vpop.permute.xlu0 %5501 }
0x1991   :  { %v11818_v28 = vadd.f32 %v5502_v5, %v11632_v43 }
0x1992   :  { %5543 = vrot.lane.b32.xlu1 %v11815_v50, %s9917_s26 }
0x1993   :  { %5541 = vrot.lane.b32.xlu0 %v11818_v28, %s9917_s26  ;;  %v5508_v8 = vpop.permute.xlu1 %5507 }
0x1994   :  { %v11825_v54 = vadd.f32 %v5508_v8, %v11650_v24  ;;  %v5506_v41 = vpop.permute.xlu0 %5505 }
0x1995   :  { %v11828_v48 = vadd.f32 %v5506_v41, %v11652_v6 }
0x1996   :  { %5547 = vrot.lane.b32.xlu1 %v11825_v54, %s9917_s26 }
0x1997   :  { %5545 = vrot.lane.b32.xlu0 %v11828_v48, %s9917_s26 }
0x19f3   :  { %v5536_v43 = vpop.permute.xlu1 %5535 }
0x19f4   :  { %v5534_v59 = vpop.permute.xlu0 %5533  ;;  %v5560_v9 = vsel %vm87_vm0, %v5536_v43, 0.0 }
0x19f5   :  { %5561 = vadd.xlane.f32.xlu1 %v5560_v9  ;;  %v5557_v55 = vsel %vm87_vm0, %v5534_v59, 0.0 }
0x19f6   :  { %5558 = vadd.xlane.f32.xlu0 %v5557_v55 }
0x19fe   :  { %v5540_v24 = vpop.permute.xlu1 %5539 }
0x19ff   :  { %v5538_v22 = vpop.permute.xlu0 %5537  ;;  %v5566_v63 = vsel %vm87_vm0, %v5540_v24, 0.0 }
0x1a00   :  { %v5563_v2 = vsel %vm87_vm0, %v5538_v22, 0.0 }
0x1a01   :  { %5564 = vadd.xlane.f32.xlu0 %v5563_v2 }
0x1a04   :  { %v5544_v6 = vpop.permute.xlu1 %5543 }
0x1a05   :  { %v5542_v37 = vpop.permute.xlu0 %5541  ;;  %v5572_v12 = vsel %vm87_vm0, %v5544_v6, 0.0  ;;  %5567 = vadd.xlane.f32.xlu0 %v5566_v63 }
0x1a06   :  { %5573 = vadd.xlane.f32.xlu1 %v5572_v12  ;;  %v5569_v49 = vsel %vm87_vm0, %v5542_v37, 0.0 }
0x1a08   :  { %v5548_v16 = vpop.permute.xlu1 %5547 }
0x1a09   :  { %5570 = vadd.xlane.f32.xlu0 %v5569_v49  ;;  %v5546_v45 = vpop.permute.xlu0 %5545  ;;  %v5578_v10 = vsel %vm87_vm0, %v5548_v16, 0.0 }
0x1a0a   :  { %5579 = vadd.xlane.f32.xlu1 %v5578_v10  ;;  %v5575_v44 = vsel %vm87_vm0, %v5546_v45, 0.0 }
0x1a0d   :  { %5576 = vadd.xlane.f32.xlu0 %v5575_v44 }
0x1a82   :  { %v5562_v57 = vpop.xlane.xlu1 %5561 }
0x1a83   :  { %v5582_v32 = vmul.f32 0.03125, %v5562_v57  ;;  %v5559_v11 = vpop.xlane.xlu0 %5558 }
0x1a84   :  { %v5581_v47 = vmul.f32 0.03125, %v5559_v11 }
0x1a85   :  { %v11843_v35 = vsub.f32 %v11795_v14, %v5582_v32 }
0x1a86   :  { %v11846_v25 = vsub.f32 %v11798_v34, %v5581_v47 }
0x1a87   :  { %v5598_v30 = vmul.f32 %v11843_v35, %v11843_v35 }
0x1a88   :  { %v5597_v20 = vmul.f32 %v11846_v25, %v11846_v25 }
0x1a89   :  { %5615 = vrot.lane.b32.xlu1 %v5598_v30, %s9917_s26 }
0x1a8a   :  { %5613 = vrot.lane.b32.xlu0 %v5597_v20, %s9917_s26 }
0x1a8e   :  { %v5565_v13 = vpop.xlane.xlu0 %5564 }
0x1a8f   :  { %v5583_v39 = vmul.f32 0.03125, %v5565_v13 }
0x1a91   :  { %v11855_v5 = vsub.f32 %v11808_v26, %v5583_v39 }
0x1a92   :  { %v5568_v8 = vpop.xlane.xlu0 %5567 }
0x1a93   :  { %v5599_v41 = vmul.f32 %v11855_v5, %v11855_v5  ;;  %v5574_v43 = vpop.xlane.xlu1 %5573  ;;  %v5584_v59 = vmul.f32 0.03125, %v5568_v8 }
0x1a94   :  { %v5586_v9 = vmul.f32 0.03125, %v5574_v43 }
0x1a95   :  { %v11860_v55 = vsub.f32 %v11805_v62, %v5584_v59  ;;  %5617 = vrot.lane.b32.xlu1 %v5599_v41, %s9917_s26 }
0x1a96   :  { %v5571_v24 = vpop.xlane.xlu0 %5570  ;;  %v11864_v22 = vsub.f32 %v11815_v50, %v5586_v9 }
0x1a97   :  { %v5600_v2 = vmul.f32 %v11860_v55, %v11860_v55  ;;  %v5585_v6 = vmul.f32 0.03125, %v5571_v24  ;;  %v5580_v63 = vpop.xlane.xlu1 %5579 }
0x1a98   :  { %v5588_v37 = vmul.f32 0.03125, %v5580_v63  ;;  %v5602_v49 = vmul.f32 %v11864_v22, %v11864_v22 }
0x1a99   :  { %v11869_v12 = vsub.f32 %v11818_v28, %v5585_v6  ;;  %5619 = vrot.lane.b32.xlu1 %v5600_v2, %s9917_s26 }
0x1a9a   :  { %v5577_v16 = vpop.xlane.xlu0 %5576  ;;  %v11877_v10 = vsub.f32 %v11825_v54, %v5588_v37 }
0x1a9b   :  { %v5601_v45 = vmul.f32 %v11869_v12, %v11869_v12  ;;  %v5587_v44 = vmul.f32 0.03125, %v5577_v16 }
0x1a9c   :  { %v5604_v32 = vmul.f32 %v11877_v10, %v11877_v10 }
0x1a9d   :  { %v11880_v57 = vsub.f32 %v11828_v48, %v5587_v44  ;;  %5623 = vrot.lane.b32.xlu1 %v5602_v49, %s9917_s26  ;;  %5621 = vrot.lane.b32.xlu0 %v5601_v45, %s9917_s26 }
0x1a9f   :  { %v5603_v11 = vmul.f32 %v11880_v57, %v11880_v57 }
0x1aa1   :  { %5627 = vrot.lane.b32.xlu1 %v5604_v32, %s9917_s26  ;;  %5625 = vrot.lane.b32.xlu0 %v5603_v11, %s9917_s26 }
0x1afb   :  { %v5616_v47 = vpop.permute.xlu1 %5615 }
0x1afc   :  { %v5614_v30 = vpop.permute.xlu0 %5613  ;;  %v5640_v20 = vsel %vm87_vm0, %v5616_v47, 0.0 }
0x1afd   :  { %5641 = vadd.xlane.f32.xlu1 %v5640_v20  ;;  %v5637_v13 = vsel %vm87_vm0, %v5614_v30, 0.0 }
0x1afe   :  { %5638 = vadd.xlane.f32.xlu0 %v5637_v13 }
0x1b07   :  { %v5618_v39 = vpop.permute.xlu1 %5617 }
0x1b08   :  { %v5643_v8 = vsel %vm87_vm0, %v5618_v39, 0.0 }
0x1b09   :  { %5644 = vadd.xlane.f32.xlu0 %v5643_v8 }
0x1b0b   :  { %v5620_v41 = vpop.permute.xlu1 %5619 }
0x1b0c   :  { %v5646_v43 = vsel %vm87_vm0, %v5620_v41, 0.0 }
0x1b0d   :  { %5647 = vadd.xlane.f32.xlu0 %v5646_v43 }
0x1b0f   :  { %v5624_v59 = vpop.permute.xlu1 %5623  ;;  %v5622_v9 = vpop.permute.xlu0 %5621 }
0x1b10   :  { %v5652_v24 = vsel %vm87_vm0, %v5624_v59, 0.0  ;;  %v5649_v2 = vsel %vm87_vm0, %v5622_v9, 0.0 }
0x1b11   :  { %5653 = vadd.xlane.f32.xlu1 %v5652_v24  ;;  %5650 = vadd.xlane.f32.xlu0 %v5649_v2 }
0x1b13   :  { %v5628_v6 = vpop.permute.xlu1 %5627  ;;  %v5626_v63 = vpop.permute.xlu0 %5625 }
0x1b14   :  { %v5658_v37 = vsel %vm87_vm0, %v5628_v6, 0.0  ;;  %v5655_v16 = vsel %vm87_vm0, %v5626_v63, 0.0 }
0x1b15   :  { %5659 = vadd.xlane.f32.xlu1 %v5658_v37  ;;  %5656 = vadd.xlane.f32.xlu0 %v5655_v16 }
0x1b8a   :  { %v5642_v49 = vpop.xlane.xlu1 %5641 }
0x1b8b   :  { %v5662_v45 = vmul.f32 0.03125, %v5642_v49  ;;  %v5639_v44 = vpop.xlane.xlu0 %5638 }
0x1b8c   :  { %v5661_v32 = vmul.f32 0.03125, %v5639_v44 }
0x1b8d   :  { %v5670_v11 = vadd.f32 1e-05, %v5662_v45 }
0x1b8e   :  { %v5669_v47 = vadd.f32 1e-05, %v5661_v32 }
0x1b8f   :  { %9792 = vrsqrt.f32 %v5670_v11 }
0x1b90   :  { %9794 = vrsqrt.f32 %v5669_v47 }
0x1b96   :  { %v5645_v30 = vpop.xlane.xlu0 %5644 }
0x1b97   :  { %v5663_v20 = vmul.f32 0.03125, %v5645_v30 }
0x1b99   :  { %v9793_v13 = vpop.eup %9792  ;;  %v5671_v39 = vadd.f32 1e-05, %v5663_v20 }
0x1b9a   :  { %v9795_v8 = vpop.eup %9794  ;;  %v5648_v41 = vpop.xlane.xlu0 %5647  ;;  %v5686_v43 = vmul.f32 %v9793_v13, %v11843_v35 }
0x1b9b   :  { %9796 = vrsqrt.f32 %v5671_v39  ;;  %v5664_v59 = vmul.f32 0.03125, %v5648_v41  ;;  %v5685_v9 = vmul.f32 %v9795_v8, %v11846_v25 }
0x1b9c   :  { %v5694_v24 = vmul.f32 %v5686_v43, %v11319_v53 }
0x1b9d   :  { %v5672_v2 = vadd.f32 1e-05, %v5664_v59  ;;  %v5693_v6 = vmul.f32 %v5685_v9, %v11319_v53 }
0x1b9e   :  { %v5654_v63 = vpop.xlane.xlu1 %5653  ;;  %v5651_v37 = vpop.xlane.xlu0 %5650  ;;  %v5702_v16 = vadd.f32 %v5694_v24, %v11321_v0 }
0x1b9f   :  { %9798 = vrsqrt.f32 %v5672_v2  ;;  %v5666_v49 = vmul.f32 0.03125, %v5654_v63  ;;  %v5665_v45 = vmul.f32 0.03125, %v5651_v37  ;;  %v5701_v44 = vadd.f32 %v5693_v6, %v11321_v0 }
0x1ba0   :  { %5719 = vrot.lane.b32.xlu1 %v5702_v16, %s9917_s26 }
0x1ba1   :  { %v5674_v35 = vadd.f32 1e-05, %v5666_v49  ;;  %v5673_v32 = vadd.f32 1e-05, %v5665_v45  ;;  %5717 = vrot.lane.b32.xlu0 %v5701_v44, %s9917_s26 }
0x1ba2   :  { %v5660_v25 = vpop.xlane.xlu1 %5659  ;;  %v5657_v11 = vpop.xlane.xlu0 %5656 }
0x1ba3   :  { %9800 = vrsqrt.f32 %v5674_v35  ;;  %v5668_v47 = vmul.f32 0.03125, %v5660_v25  ;;  %v5667_v30 = vmul.f32 0.03125, %v5657_v11 }
0x1ba4   :  { %9802 = vrsqrt.f32 %v5673_v32 }
0x1ba5   :  { %v9797_v20 = vpop.eup %9796  ;;  %v5676_v13 = vadd.f32 1e-05, %v5668_v47  ;;  %v5675_v39 = vadd.f32 1e-05, %v5667_v30 }
0x1ba6   :  { %v5687_v8 = vmul.f32 %v9797_v20, %v11855_v5 }
0x1ba7   :  { %9804 = vrsqrt.f32 %v5676_v13 }
0x1ba8   :  { %9806 = vrsqrt.f32 %v5675_v39  ;;  %v5695_v41 = vmul.f32 %v5687_v8, %v11319_v53  ;;  %v9910_v8 = vld [vmem:[%s12408_s7 + $0x4] ss:$0 sm:$0xff] }
0x1ba9   :  { %v9799_v43 = vpop.eup %9798 }
0x1baa   :  { %v5703_v59 = vadd.f32 %v5695_v41, %v11321_v0  ;;  %v5688_v9 = vmul.f32 %v9799_v43, %v11860_v55 }
0x1bac   :  { %5721 = vrot.lane.b32.xlu1 %v5703_v59, %s9917_s26  ;;  %v5696_v24 = vmul.f32 %v5688_v9, %v11319_v53 }
0x1bad   :  { %v9801_v2 = vpop.eup %9800 }
0x1bae   :  { %v9803_v6 = vpop.eup %9802  ;;  %v5704_v63 = vadd.f32 %v5696_v24, %v11321_v0  ;;  %v5690_v37 = vmul.f32 %v9801_v2, %v11864_v22 }
0x1baf   :  { %v5689_v5 = vmul.f32 %v9803_v6, %v11869_v12 }
0x1bb0   :  { %5723 = vrot.lane.b32.xlu1 %v5704_v63, %s9917_s26  ;;  %v5698_v16 = vmul.f32 %v5690_v37, %v11319_v53 }
0x1bb1   :  { %v9805_v49 = vpop.eup %9804  ;;  %v5697_v45 = vmul.f32 %v5689_v5, %v11319_v53 }
0x1bb2   :  { %v9807_v55 = vpop.eup %9806  ;;  %v5706_v44 = vadd.f32 %v5698_v16, %v11321_v0  ;;  %v5692_v35 = vmul.f32 %v9805_v49, %v11877_v10 }
0x1bb3   :  { %v5705_v32 = vadd.f32 %v5697_v45, %v11321_v0  ;;  %v5691_v25 = vmul.f32 %v9807_v55, %v11880_v57 }
0x1bb4   :  { %5727 = vrot.lane.b32.xlu1 %v5706_v44, %s9917_s26  ;;  %v5700_v22 = vmul.f32 %v5692_v35, %v11319_v53 }
0x1bb5   :  { %5725 = vrot.lane.b32.xlu0 %v5705_v32, %s9917_s26  ;;  %v5699_v12 = vmul.f32 %v5691_v25, %v11319_v53 }
0x1bb6   :  { %v5708_v11 = vadd.f32 %v5700_v22, %v11321_v0 }
0x1bb7   :  { %v5707_v47 = vadd.f32 %v5699_v12, %v11321_v0 }
0x1bb8   :  { %5731 = vrot.lane.b32.xlu1 %v5708_v11, %s9917_s26 }
0x1bb9   :  { %5729 = vrot.lane.b32.xlu0 %v5707_v47, %s9917_s26 }
0x1c12   :  { %v5720_v30 = vpop.permute.xlu1 %5719 }
0x1c13   :  { %v5718_v10 = vpop.permute.xlu0 %5717 }
0x1c14   :  { %9002 = vmatprep.mubr.msk.f32.mxu0 %vm87_vm0, %v5718_v10 }
0x1c15   :  { %9003 = vmatmul.mubr.msk.f32.vlgmr.msra.gmra.mrb[70].mxu0 %vm87_vm0, %v5720_v30 }
0x1c16   :  { %9409 = vmatpush3.bf16.xpose.msk.msra.mxu0 %vm10480_vm2, %v10504_v21 }
0x1c17   :  { %9414 = vmatprep.subr.bf16.mxu0 %v12432_v52 }
0x1c1e   :  { %v5722_v53 = vpop.permute.xlu1 %5721 }
0x1c1f   :  { %9005 = vmatprep.mubr.msk.f32.mxu0 %vm87_vm0, %v5722_v53 }
0x1c22   :  { %v5724_v0 = vpop.permute.xlu1 %5723 }
0x1c23   :  { %9006 = vmatmul.mubr.msk.f32.gmra.mrb[72].mxu0 %vm87_vm0, %v5724_v0 }
0x1c26   :  { %v5728_v57 = vpop.permute.xlu1 %5727 }
0x1c27   :  { %v5726_v20 = vpop.permute.xlu0 %5725 }
0x1c28   :  { %9008 = vmatprep.mubr.msk.f32.mxu0 %vm87_vm0, %v5726_v20 }
0x1c29   :  { %9009 = vmatmul.mubr.msk.f32.gmra.mrb[74].mxu0 %vm87_vm0, %v5728_v57 }
0x1c2a   :  { %v5732_v13 = vpop.permute.xlu1 %5731 }
0x1c2b   :  { %v5730_v39 = vpop.permute.xlu0 %5729 }
0x1c2c   :  { %9011 = vmatprep.mubr.msk.f32.mxu0 %vm87_vm0, %v5730_v39 }
0x1c2d   :  { %9012 = vmatmul.mubr.msk.f32.gmra.mrb[76].mxu0 %vm87_vm0, %v5732_v13 }
0x1c2e   :  { %9025 = vmatprep.mubr.msk.f32.mxu0 %vm9915_vm1, %v12431_v7 }
0x1ce8   :  { %v9004_v21 = vpop.f32.mrb[70].mxu0 }
0x1ce9   :  { %v5821_v41 = vadd.f32 %v9910_v8, %v9004_v21  ;;  %v5815_v43 = vpop.f32.mrb[71].mxu0 }
0x1cea   :  { %v5816_v59 = vadd.f32 %v9910_v8, %v5815_v43 }
0x1ceb   :  { %9026 = vmatmul.mubr.msk.f32.vlgmr.msra.gmra.mrb[78].mxu0 %vm87_vm0, %v5821_v41 }
0x1cec   :  { %9417 = vmatpush3.bf16.xpose.msk.msra.mxu0 %vm10480_vm2, %v10545_v1  ;;  %9019 = vmatmul.mubr.msk.f32.vlgmr.msra.gmra.mrb[74].mxu1 %vm87_vm0, %v5816_v59 }
0x1ced   :  { %9413 = vmatpush3.bf16.xpose.msk.msra.mxu1 %vm10480_vm2, %v10521_v58  ;;  %9039 = vmatprep.mubr.msk.f32.mxu0 %vm9915_vm1, %v12431_v7 }
0x1cee   :  { %9422 = vmatprep.subr.bf16.mxu0 %v12432_v52  ;;  %9032 = vmatprep.mubr.msk.f32.mxu1 %vm9915_vm1, %v12431_v7 }
0x1cef   :  { %9418 = vmatprep.subr.bf16.mxu1 %v12432_v52 }
0x1cf6   :  { %v9007_v9 = vpop.f32.mrb[72].mxu0 }
0x1cf7   :  { %v5831_v24 = vadd.f32 %v9910_v8, %v9007_v9  ;;  %v5825_v2 = vpop.f32.mrb[73].mxu0 }
0x1cf8   :  { %v5826_v1 = vadd.f32 %v9910_v8, %v5825_v2 }
0x1cf9   :  { %9040 = vmatmul.mubr.msk.f32.vlgmr.msra.gmra.mrb[80].mxu0 %vm87_vm0, %v5831_v24 }
0x1cfa   :  { %9425 = vmatpush3.bf16.xpose.msk.msra.mxu0 %vm10480_vm2, %v10577_v23  ;;  %9033 = vmatmul.mubr.msk.f32.vlgmr.msra.gmra.mrb[76].mxu1 %vm87_vm0, %v5826_v1 }
0x1cfb   :  { %9421 = vmatpush3.bf16.xpose.msk.msra.mxu1 %vm10480_vm2, %v10558_v29  ;;  %9053 = vmatprep.mubr.msk.f32.mxu0 %vm9915_vm1, %v12431_v7 }
0x1cfc   :  { %v9010_v58 = vpop.f32.mrb[74].mxu0  ;;  %9046 = vmatprep.mubr.msk.f32.mxu1 %vm9915_vm1, %v12431_v7  ;;  %9430 = vmatprep.subr.bf16.mxu0 %v12432_v52 }
0x1cfd   :  { %v5835_v6 = vpop.f32.mrb[75].mxu0  ;;  %9426 = vmatprep.subr.bf16.mxu1 %v12432_v52  ;;  %v5841_v63 = vadd.f32 %v9910_v8, %v9010_v58 }
0x1cfe   :  { %v5836_v23 = vadd.f32 %v9910_v8, %v5835_v6 }
0x1d00   :  { %v9013_v37 = vpop.f32.mrb[76].mxu0 }
0x1d01   :  { %v5845_v5 = vpop.f32.mrb[77].mxu0  ;;  %9054 = vmatmul.mubr.msk.f32.vlgmr.msra.gmra.mrb[82].mxu0 %vm87_vm0, %v5841_v63  ;;  %v5851_v29 = vadd.f32 %v9910_v8, %v9013_v37 }
0x1d02   :  { %9047 = vmatmul.mubr.msk.f32.vlgmr.msra.gmra.mrb[78].mxu1 %vm87_vm0, %v5836_v23  ;;  %9433 = vmatpush3.bf16.xpose.msk.msra.mxu0 %vm10480_vm2, %v10617_v17  ;;  %v5846_v16 = vadd.f32 %v9910_v8, %v5845_v5 }
0x1d03   :  { %9429 = vmatpush3.bf16.xpose.msk.msra.mxu1 %vm10480_vm2, %v10589_v33  ;;  %9067 = vmatprep.mubr.msk.f32.mxu0 %vm9915_vm1, %v12431_v7 }
0x1d04   :  { %9060 = vmatprep.mubr.msk.f32.mxu1 %vm9915_vm1, %v12431_v7  ;;  %9440 = vmatprep.subr.bf16.mxu0 %v12432_v52 }
0x1d05   :  { %9434 = vmatprep.subr.bf16.mxu1 %v12432_v52 }
0x1d09   :  { %9068 = vmatmul.mubr.msk.f32.vlgmr.msra.gmra.mrb[84].mxu0 %vm87_vm0, %v5851_v29 }
0x1d0a   :  { %9061 = vmatmul.mubr.msk.f32.vlgmr.msra.gmra.mrb[80].mxu1 %vm87_vm0, %v5846_v16  ;;  %9442 = vmatpush3.bf16.msra.mxu0 %v10744_v31 }
0x1d0b   :  { %9436 = vmatpush3.bf16.msra.mxu1 %v12433_v18  ;;  %9074 = vmatprep.mubr.msk.f32.mxu1 %vm9915_vm1, %v12431_v7 }
0x1d0c   :  { %9437 = vmatprep.subr.bf16.mxu1 %v12432_v52  ;;  %9088 = vmatprep.mubr.msk.f32.mxu0 %vm9915_vm1, %v12431_v7 }
0x1d0d   :  { %9446 = vmatprep.subr.bf16.mxu0 %v12432_v52 }
0x1dbe   :  { %v5996_v33 = vpop.f32.mrb[78].mxu0 }
0x1dbf   :  { %v5923_v17 = vpop.f32.mrb[74].mxu1  ;;  %v9027_v49 = vpop.f32.mrb[79].mxu0  ;;  %v6441_v45 = vsel %vm1446_vm3, %v5996_v33, -inf }
0x1dc0   :  { %v9020_v55 = vpop.f32.mrb[75].mxu1  ;;  %6442 = vmax.xlane.f32.xlu1 %v6441_v45  ;;  %v6438_v31 = vsel %vm1446_vm3, %v5923_v17, -inf }
0x1dc1   :  { %6439 = vmax.xlane.f32.xlu0 %v6438_v31 }
0x1dcc   :  { %v6142_v44 = vpop.f32.mrb[80].mxu0 }
0x1dcd   :  { %v6069_v35 = vpop.f32.mrb[76].mxu1  ;;  %v9041_v32 = vpop.f32.mrb[81].mxu0  ;;  %v6447_v25 = vsel %vm1446_vm3, %v6142_v44, -inf }
0x1dce   :  { %v9034_v22 = vpop.f32.mrb[77].mxu1  ;;  %6448 = vmax.xlane.f32.xlu0 %v6447_v25  ;;  %v6444_v12 = vsel %vm1446_vm3, %v6069_v35, -inf }
0x1dd2   :  { %6445 = vmax.xlane.f32.xlu0 %v6444_v12 }
0x1dd4   :  { %v6288_v11 = vpop.f32.mrb[82].mxu0 }
0x1dd5   :  { %v6215_v47 = vpop.f32.mrb[78].mxu1  ;;  %v9055_v10 = vpop.f32.mrb[83].mxu0  ;;  %v6453_v30 = vsel %vm1446_vm3, %v6288_v11, -inf }
0x1dd6   :  { %v9048_v53 = vpop.f32.mrb[79].mxu1  ;;  %6454 = vmax.xlane.f32.xlu1 %v6453_v30  ;;  %v6450_v0 = vsel %vm1446_vm3, %v6215_v47, -inf }
0x1dd7   :  { %6451 = vmax.xlane.f32.xlu0 %v6450_v0 }
0x1ddc   :  { %v6434_v57 = vpop.f32.mrb[84].mxu0 }
0x1ddd   :  { %v6361_v20 = vpop.f32.mrb[80].mxu1  ;;  %v9069_v13 = vpop.f32.mrb[85].mxu0  ;;  %v6459_v39 = vsel %vm1446_vm3, %v6434_v57, -inf }
0x1dde   :  { %6460 = vmax.xlane.f32.xlu1 %v6459_v39  ;;  %v9062_v21 = vpop.f32.mrb[81].mxu1  ;;  %v6456_v8 = vsel %vm1446_vm3, %v6361_v20, -inf }
0x1ddf   :  { %6457 = vmax.xlane.f32.xlu0 %v6456_v8 }
0x1e4d   :  { %v6443_v41 = vpop.xlane.xlu1 %6442 }
0x1e4e   :  { %v6463_v43 = vsub.f32 %v5996_v33, %v6443_v41  ;;  %v6440_v59 = vpop.xlane.xlu0 %6439 }
0x1e4f   :  { %v6462_v9 = vsub.f32 %v5923_v17, %v6440_v59 }
0x1e50   :  { %v6472_v24 = vmul.f32 1.442695, %v6463_v43 }
0x1e51   :  { %v6470_v2 = vmul.f32 1.442695, %v6462_v9 }
0x1e52   :  { %9808 = vpow2.f32 %v6472_v24 }
0x1e53   :  { %9810 = vpow2.f32 %v6470_v2 }
0x1e5b   :  { %v6449_v1 = vpop.xlane.xlu0 %6448 }
0x1e5c   :  { %v9809_v58 = vpop.eup %9808  ;;  %v6465_v6 = vsub.f32 %v6142_v44, %v6449_v1 }
0x1e5d   :  { %v9811_v63 = vpop.eup %9810  ;;  %v6489_v23 = vsel %vm1446_vm3, %v9809_v58, 0.0 }
0x1e5e   :  { %v6476_v37 = vmul.f32 1.442695, %v6465_v6  ;;  %6490 = vadd.xlane.f32.xlu1 %v6489_v23  ;;  %v6486_v5 = vsel %vm1446_vm3, %v9811_v63, 0.0 }
0x1e5f   :  { %v6446_v29 = vpop.xlane.xlu0 %6445  ;;  %6487 = vadd.xlane.f32.xlu0 %v6486_v5 }
0x1e60   :  { %9812 = vpow2.f32 %v6476_v37  ;;  %v6464_v16 = vsub.f32 %v6069_v35, %v6446_v29 }
0x1e62   :  { %v6474_v18 = vmul.f32 1.442695, %v6464_v16 }
0x1e63   :  { %v6455_v33 = vpop.xlane.xlu1 %6454 }
0x1e64   :  { %9814 = vpow2.f32 %v6474_v18  ;;  %v6467_v17 = vsub.f32 %v6288_v11, %v6455_v33  ;;  %v6452_v49 = vpop.xlane.xlu0 %6451 }
0x1e65   :  { %v6466_v45 = vsub.f32 %v6215_v47, %v6452_v49 }
0x1e66   :  { %v6480_v55 = vmul.f32 1.442695, %v6467_v17 }
0x1e67   :  { %v6478_v31 = vmul.f32 1.442695, %v6466_v45 }
0x1e68   :  { %9816 = vpow2.f32 %v6480_v55 }
0x1e69   :  { %9818 = vpow2.f32 %v6478_v31 }
0x1e6a   :  { %v9813_v44 = vpop.eup %9812 }
0x1e6b   :  { %v6461_v32 = vpop.xlane.xlu1 %6460  ;;  %v6495_v25 = vsel %vm1446_vm3, %v9813_v44, 0.0 }
0x1e6c   :  { %v6469_v22 = vsub.f32 %v6434_v57, %v6461_v32  ;;  %v6458_v12 = vpop.xlane.xlu0 %6457  ;;  %6496 = vadd.xlane.f32.xlu1 %v6495_v25 }
0x1e6d   :  { %v6468_v10 = vsub.f32 %v6361_v20, %v6458_v12 }
0x1e6e   :  { %v9815_v30 = vpop.eup %9814  ;;  %v6484_v35 = vmul.f32 1.442695, %v6469_v22 }
0x1e6f   :  { %v6482_v53 = vmul.f32 1.442695, %v6468_v10  ;;  %v6492_v0 = vsel %vm1446_vm3, %v9815_v30, 0.0 }
0x1e70   :  { %9820 = vpow2.f32 %v6484_v35  ;;  %6493 = vadd.xlane.f32.xlu0 %v6492_v0 }
0x1e71   :  { %9822 = vpow2.f32 %v6482_v53 }
0x1e72   :  { %v9817_v11 = vpop.eup %9816 }
0x1e73   :  { %v9819_v47 = vpop.eup %9818  ;;  %v6501_v13 = vsel %vm1446_vm3, %v9817_v11, 0.0 }
0x1e74   :  { %6502 = vadd.xlane.f32.xlu1 %v6501_v13  ;;  %v6498_v39 = vsel %vm1446_vm3, %v9819_v47, 0.0 }
0x1e75   :  { %6499 = vadd.xlane.f32.xlu0 %v6498_v39 }
0x1e7a   :  { %v9821_v57 = vpop.eup %9820 }
0x1e7b   :  { %v9823_v21 = vpop.eup %9822  ;;  %v6507_v20 = vsel %vm1446_vm3, %v9821_v57, 0.0 }
0x1e7c   :  { %6508 = vadd.xlane.f32.xlu1 %v6507_v20  ;;  %v6504_v8 = vsel %vm1446_vm3, %v9823_v21, 0.0 }
0x1e7d   :  { %6505 = vadd.xlane.f32.xlu0 %v6504_v8  ;;  %v9911_v8 = vld [vmem:[%s12413_s9] ss:$0 sm:$0xff] }
0x1eeb   :  { %v6491_v41 = vpop.xlane.xlu1 %6490 }
0x1eec   :  { %v6488_v43 = vpop.xlane.xlu0 %6487 }
0x1eed   :  { %9824 = vrcp.f32 %v6488_v43 }
0x1eee   :  { %9826 = vrcp.f32 %v6491_v41 }
0x1ef7   :  { %v9825_v59 = vpop.eup %9824 }
0x1ef8   :  { %v6511_v9 = vmul.f32 %v9825_v59, %v9811_v63  ;;  %v9827_v24 = vpop.eup %9826 }
0x1ef9   :  { %v6497_v2 = vpop.xlane.xlu1 %6496  ;;  %v6513_v1 = vmul.f32 %v9827_v24, %v9809_v58 }
0x1efa   :  { %9828 = vrcp.f32 %v6497_v2  ;;  %9075 = vmatmul.mubr.msk.f32.vlgmr.msra.gmra.mrb[82].mxu1 %vm1446_vm3, %v6511_v9 }
0x1efb   :  { %9439 = vmatpush3.bf16.msra.mxu1 %v10736_v51  ;;  %9081 = vmatprep.mubr.msk.f32.mxu1 %vm9915_vm1, %v12431_v7 }
0x1efc   :  { %9443 = vmatprep.subr.bf16.mxu1 %v12432_v52 }
0x1efd   :  { %v6494_v6 = vpop.xlane.xlu0 %6493 }
0x1efe   :  { %9830 = vrcp.f32 %v6494_v6  ;;  %9082 = vmatmul.mubr.msk.f32.vlgmr.msra.gmra.mrb[84].mxu1 %vm1446_vm3, %v6513_v1 }
0x1eff   :  { %9445 = vmatpush3.bf16.msra.mxu1 %v10757_v36  ;;  %9095 = vmatprep.mubr.msk.f32.mxu1 %vm9915_vm1, %v12431_v7 }
0x1f00   :  { %9449 = vmatprep.subr.bf16.mxu1 %v12432_v52 }
0x1f01   :  { %v6503_v63 = vpop.xlane.xlu1 %6502 }
0x1f02   :  { %9832 = vrcp.f32 %v6503_v63  ;;  %v6500_v51 = vpop.xlane.xlu0 %6499 }
0x1f03   :  { %9834 = vrcp.f32 %v6500_v51 }
0x1f04   :  { %v9829_v23 = vpop.eup %9828 }
0x1f05   :  { %v6517_v37 = vmul.f32 %v9829_v23, %v9813_v44 }
0x1f07   :  { %9096 = vmatmul.mubr.msk.f32.vlgmr.msra.gmra.mrb[86].mxu1 %vm1446_vm3, %v6517_v37 }
0x1f08   :  { %v9831_v58 = vpop.eup %9830  ;;  %9451 = vmatpush3.bf16.msra.mxu1 %v10765_v40  ;;  %9109 = vmatprep.mubr.msk.f32.mxu1 %vm9915_vm1, %v12431_v7 }
0x1f09   :  { %v6515_v36 = vmul.f32 %v9831_v58, %v9815_v30  ;;  %v6509_v5 = vpop.xlane.xlu1 %6508  ;;  %9455 = vmatprep.subr.bf16.mxu1 %v12432_v52 }
0x1f0a   :  { %9836 = vrcp.f32 %v6509_v5  ;;  %v6506_v29 = vpop.xlane.xlu0 %6505 }
0x1f0b   :  { %9838 = vrcp.f32 %v6506_v29  ;;  %9089 = vmatmul.mubr.msk.f32.vlgmr.msra.gmra.mrb[86].mxu0 %vm1446_vm3, %v6515_v36 }
0x1f0c   :  { %v9833_v16 = vpop.eup %9832  ;;  %9448 = vmatpush3.bf16.msra.mxu0 %v10755_v27  ;;  %9102 = vmatprep.mubr.msk.f32.mxu0 %vm9915_vm1, %v12431_v7 }
0x1f0d   :  { %v9835_v18 = vpop.eup %9834  ;;  %v6521_v40 = vmul.f32 %v9833_v16, %v9817_v11  ;;  %9452 = vmatprep.subr.bf16.mxu0 %v12432_v52 }
0x1f0e   :  { %v6519_v33 = vmul.f32 %v9835_v18, %v9819_v47 }
0x1f0f   :  { %9110 = vmatmul.mubr.msk.f32.vlgmr.msra.gmra.mrb[88].mxu1 %vm1446_vm3, %v6521_v40 }
0x1f10   :  { %9457 = vmatpush3.bf16.msra.mxu1 %v10800_v56  ;;  %9103 = vmatmul.mubr.msk.f32.vlgmr.msra.gmra.mrb[88].mxu0 %vm1446_vm3, %v6519_v33  ;;  %v12435_v56 = vld [vmem:[#allocation4_spill] sm:$0xff] }
0x1f11   :  { %9454 = vmatpush3.bf16.msra.mxu0 %v10784_v15  ;;  %9123 = vmatprep.mubr.msk.f32.mxu1 %vm9915_vm1, %v12431_v7  ;;  %v12434_v15 = vld [vmem:[#allocation3_spill] sm:$0xff] }
0x1f12   :  { %9116 = vmatprep.mubr.msk.f32.mxu0 %vm9915_vm1, %v12431_v7  ;;  %9459 = vmatprep.subr.bf16.mxu0 %v10782_v46 }
0x1f13   :  { %9475 = vmatprep.subr.bf16.mxu1 %v11099_v60 }
0x1f14   :  { %v9837_v27 = vpop.eup %9836 }
0x1f15   :  { %v9839_v52 = vpop.eup %9838  ;;  %v6525_v17 = vmul.f32 %v9837_v27, %v9821_v57 }
0x1f16   :  { %v6523_v49 = vmul.f32 %v9839_v52, %v9823_v21 }
0x1f17   :  { %9124 = vmatmul.mubr.msk.f32.vlgmr.msra.gmra.mrb[90].mxu1 %vm1446_vm3, %v6525_v17 }
0x1f18   :  { %9117 = vmatmul.mubr.msk.f32.vlgmr.msra.gmra.mrb[90].mxu0 %vm1446_vm3, %v6523_v49  ;;  %9477 = vmatpush3.bf16.msra.mxu1 %v11099_v60 }
0x1f19   :  { %9461 = vmatpush3.bf16.msra.mxu0 %v10782_v46  ;;  %9479 = vmatprep.subr.bf16.mxu1 %v11109_v19 }
0x1f1a   :  { %9463 = vmatprep.subr.bf16.mxu0 %v10798_v38 }
0x1f1c   :  { %9481 = vmatpush3.bf16.msra.mxu1 %v11109_v19 }
0x1f1d   :  { %9465 = vmatpush3.bf16.msra.mxu0 %v10798_v38  ;;  %9483 = vmatprep.subr.bf16.mxu1 %v11138_v4 }
0x1f1e   :  { %9467 = vmatprep.subr.bf16.mxu0 %v12434_v15 }
0x1f21   :  { %9469 = vmatpush3.bf16.msra.mxu0 %v12434_v15 }
0x1f22   :  { %9471 = vmatprep.subr.bf16.mxu0 %v12435_v56 }
0x1f25   :  { %9473 = vmatpush3.bf16.msra.mxu0 %v12435_v56 }
0x1fcd   :  { %v6595_v60 = vpop.f32.mrb[82].mxu1 }
0x1fce   :  { %v7110_v46 = vsel %vm87_vm0, %v6595_v60, %v11798_v34  ;;  %v9076_v7 = vpop.f32.mrb[83].mxu1 }
0x1fcf   :  { %9142 = vmatprep.mubr.msk.f32.mxu0 %vm2221_vm4, %v7110_v46 }
0x1fd1   :  { %v6668_v19 = vpop.f32.mrb[84].mxu1 }
0x1fd2   :  { %v7111_v38 = vsel %vm87_vm0, %v6668_v19, %v11795_v14  ;;  %v9083_v45 = vpop.f32.mrb[85].mxu1 }
0x1fd3   :  { %9143 = vmatmul.mubr.msk.f32.vlgmr.msra.gmra.mrb[92].mxu0 %vm2221_vm4, %v7111_v38 }
0x1fda   :  { %v6814_v55 = vpop.f32.mrb[86].mxu1 }
0x1fdb   :  { %v9097_v31 = vpop.f32.mrb[87].mxu1  ;;  %v7113_v22 = vsel %vm87_vm0, %v6814_v55, %v11805_v62 }
0x1fde   :  { %v6741_v44 = vpop.f32.mrb[86].mxu0 }
0x1fdf   :  { %v7112_v32 = vsel %vm87_vm0, %v6741_v44, %v11808_v26  ;;  %v9090_v25 = vpop.f32.mrb[87].mxu0 }
0x1fe0   :  { %9145 = vmatprep.mubr.msk.f32.mxu0 %vm2221_vm4, %v7112_v32 }
0x1fe1   :  { %9146 = vmatmul.mubr.msk.f32.gmra.mrb[94].mxu0 %vm2221_vm4, %v7113_v22 }
0x1fe2   :  { %v6960_v12 = vpop.f32.mrb[88].mxu1 }
0x1fe3   :  { %v6887_v10 = vpop.f32.mrb[88].mxu0  ;;  %v9111_v30 = vpop.f32.mrb[89].mxu1  ;;  %v7115_v0 = vsel %vm87_vm0, %v6960_v12, %v11815_v50 }
0x1fe4   :  { %v7114_v35 = vsel %vm87_vm0, %v6887_v10, %v11818_v28  ;;  %v9104_v53 = vpop.f32.mrb[89].mxu0 }
0x1fe5   :  { %9148 = vmatprep.mubr.msk.f32.mxu0 %vm2221_vm4, %v7114_v35 }
0x1fe6   :  { %9149 = vmatmul.mubr.msk.f32.gmra.mrb[96].mxu0 %vm2221_vm4, %v7115_v0 }
0x1fea   :  { %v7106_v11 = vpop.f32.mrb[90].mxu1 }
0x1feb   :  { %v7033_v47 = vpop.f32.mrb[90].mxu0  ;;  %v9125_v13 = vpop.f32.mrb[91].mxu1  ;;  %v7117_v21 = vsel %vm87_vm0, %v7106_v11, %v11825_v54 }
0x1fec   :  { %v7116_v39 = vsel %vm87_vm0, %v7033_v47, %v11828_v48  ;;  %v9118_v57 = vpop.f32.mrb[91].mxu0 }
0x1fed   :  { %9151 = vmatprep.mubr.msk.f32.mxu0 %vm2221_vm4, %v7116_v39 }
0x1fee   :  { %9152 = vmatmul.mubr.msk.f32.gmra.mrb[98].mxu0 %vm2221_vm4, %v7117_v21 }
0x20a6   :  { %v9144_v20 = vpop.f32.mrb[92].mxu0 }
0x20a7   :  { %v12085_v41 = vadd.f32 %v9911_v8, %v9144_v20  ;;  %v7208_v43 = vpop.f32.mrb[93].mxu0 }
0x20a8   :  { %v12087_v59 = vadd.f32 %v9911_v8, %v7208_v43 }
0x20a9   :  { %7305 = vrot.lane.b32.xlu1 %v12085_v41, %s9918_s27  ;;  %v8219_v29 = vmul.f32 -1.442695, %v12085_v41 }
0x20aa   :  { %7303 = vrot.lane.b32.xlu0 %v12087_v59, %s9918_s27  ;;  %v8218_v16 = vmul.f32 -1.442695, %v12087_v59 }
0x20ab   :  { %9840 = vpow2.f32 %v8219_v29 }
0x20ac   :  { %9842 = vpow2.f32 %v8218_v16 }
0x20b4   :  { %v9147_v9 = vpop.f32.mrb[94].mxu0 }
0x20b5   :  { %v7218_v24 = vpop.f32.mrb[95].mxu0  ;;  %v12097_v6 = vadd.f32 %v9911_v8, %v9147_v9  ;;  %v9841_v18 = vpop.eup %9840 }
0x20b6   :  { %v12093_v2 = vadd.f32 %v9911_v8, %v7218_v24  ;;  %v9843_v40 = vpop.eup %9842  ;;  %v7272_v27 = vadd.f32 1.0, %v9841_v18 }
0x20b7   :  { %v7271_v52 = vadd.f32 1.0, %v9843_v40  ;;  %v8221_v17 = vmul.f32 -1.442695, %v12097_v6 }
0x20b8   :  { %7307 = vrot.lane.b32.xlu1 %v12093_v2, %s9918_s27  ;;  %v8220_v33 = vmul.f32 -1.442695, %v12093_v2 }
0x20b9   :  { %v9150_v1 = vpop.f32.mrb[96].mxu0 }
0x20ba   :  { %v7228_v63 = vpop.f32.mrb[97].mxu0  ;;  %v12105_v23 = vadd.f32 %v9911_v8, %v9150_v1  ;;  %9844 = vpow2.f32 %v8220_v33 }
0x20bb   :  { %v12099_v51 = vadd.f32 %v9911_v8, %v7228_v63  ;;  %9846 = vrcp.f32 %v7272_v27 }
0x20bc   :  { %7309 = vrot.lane.b32.xlu1 %v12097_v6, %s9918_s27  ;;  %9848 = vrcp.f32 %v7271_v52  ;;  %v8223_v15 = vmul.f32 -1.442695, %v12105_v23 }
0x20bd   :  { %7311 = vrot.lane.b32.xlu0 %v12099_v51, %s9918_s27  ;;  %v8222_v49 = vmul.f32 -1.442695, %v12099_v51  ;;  %9850 = vpow2.f32 %v8221_v17 }
0x20bf   :  { %9852 = vpow2.f32 %v8222_v49 }
0x20c0   :  { %7313 = vrot.lane.b32.xlu1 %v12105_v23, %s9918_s27  ;;  %9854 = vpow2.f32 %v8223_v15 }
0x20c1   :  { %v9153_v37 = vpop.f32.mrb[98].mxu0 }
0x20c2   :  { %v12109_v58 = vadd.f32 %v9911_v8, %v9153_v37  ;;  %v7238_v36 = vpop.f32.mrb[99].mxu0 }
0x20c3   :  { %v12111_v5 = vadd.f32 %v9911_v8, %v7238_v36 }
0x20c4   :  { %7317 = vrot.lane.b32.xlu1 %v12109_v58, %s9918_s27  ;;  %v8225_v56 = vmul.f32 -1.442695, %v12109_v58  ;;  %v9845_v46 = vpop.eup %9844 }
0x20c5   :  { %7315 = vrot.lane.b32.xlu0 %v12111_v5, %s9918_s27  ;;  %v8224_v60 = vmul.f32 -1.442695, %v12111_v5  ;;  %v12125_v7 = vpop.eup %9846  ;;  %v7273_v45 = vadd.f32 1.0, %v9845_v46 }
0x20c6   :  { %9856 = vpow2.f32 %v8225_v56  ;;  %v12127_v38 = vpop.eup %9848 }
0x20c7   :  { %9858 = vpow2.f32 %v8224_v60  ;;  %v9851_v44 = vpop.eup %9850 }
0x20c8   :  { %v7274_v22 = vadd.f32 1.0, %v9851_v44  ;;  %9860 = vrcp.f32 %v7273_v45 }
0x20c9   :  { %v9853_v25 = vpop.eup %9852 }
0x20ca   :  { %v9855_v12 = vpop.eup %9854  ;;  %v7275_v10 = vadd.f32 1.0, %v9853_v25  ;;  %9862 = vrcp.f32 %v7274_v22 }
0x20cb   :  { %v7276_v30 = vadd.f32 1.0, %v9855_v12 }
0x20cc   :  { %9864 = vrcp.f32 %v7275_v10  ;;  %v7383_v10 = vsub.f32 1.0, %v12127_v38 }
0x20cd   :  { %9866 = vrcp.f32 %v7276_v30  ;;  %v7432_v30 = vmul.f32 %v12125_v7, %v11795_v14 }
0x20d0   :  { %v9857_v35 = vpop.eup %9856 }
0x20d1   :  { %v9859_v53 = vpop.eup %9858  ;;  %v7278_v0 = vadd.f32 1.0, %v9857_v35 }
0x20d2   :  { %v7277_v11 = vadd.f32 1.0, %v9859_v53  ;;  %v12133_v47 = vpop.eup %9860 }
0x20d3   :  { %9868 = vrcp.f32 %v7278_v0  ;;  %v7431_v0 = vmul.f32 %v12127_v38, %v11798_v34  ;;  %v7433_v14 = vmul.f32 %v12133_v47, %v11808_v26 }
0x20d4   :  { %9870 = vrcp.f32 %v7277_v11  ;;  %v12137_v57 = vpop.eup %9862 }
0x20d5   :  { %v7386_v34 = vsub.f32 1.0, %v12137_v57 }
0x20d6   :  { %v12139_v20 = vpop.eup %9864 }
0x20d7   :  { %v12144_v24 = vpop.eup %9866 }
0x20dd   :  { %v12149_v37 = vpop.eup %9868 }
0x20de   :  { %v12151_v29 = vpop.eup %9870 }
0x211b   :  { %v7306_v19 = vpop.permute.xlu1 %7305 }
0x211c   :  { %v7328_v55 = vmul.f32 %v12125_v7, %v7306_v19  ;;  %v7304_v31 = vpop.permute.xlu0 %7303 }
0x211d   :  { %v7327_v32 = vmul.f32 %v12127_v38, %v7304_v31 }
0x211e   :  { %7345 = vrot.lane.b32.xlu1 %v7328_v55, %s9919_s23 }
0x211f   :  { %7343 = vrot.lane.b32.xlu0 %v7327_v32, %s9919_s23 }
0x212a   :  { %v7308_v13 = vpop.permute.xlu1 %7307 }
0x212b   :  { %v7329_v39 = vmul.f32 %v12133_v47, %v7308_v13 }
0x212d   :  { %7347 = vrot.lane.b32.xlu0 %v7329_v39, %s9919_s23 }
0x212e   :  { %v7310_v21 = vpop.permute.xlu1 %7309 }
0x212f   :  { %v7330_v8 = vmul.f32 %v12137_v57, %v7310_v21  ;;  %v7312_v43 = vpop.permute.xlu0 %7311  ;;  %v7385_v21 = vsub.f32 1.0, %v12133_v47 }
0x2130   :  { %v7331_v9 = vmul.f32 %v12139_v20, %v7312_v43 }
0x2131   :  { %7349 = vrot.lane.b32.xlu1 %v7330_v8, %s9919_s23 }
0x2132   :  { %7351 = vrot.lane.b32.xlu0 %v7331_v9, %s9919_s23  ;;  %v7314_v1 = vpop.permute.xlu1 %7313  ;;  %v7387_v9 = vsub.f32 1.0, %v12139_v20 }
0x2133   :  { %v7332_v63 = vmul.f32 %v12144_v24, %v7314_v1  ;;  %v7434_v1 = vmul.f32 %v12137_v57, %v11805_v62 }
0x2135   :  { %7353 = vrot.lane.b32.xlu1 %v7332_v63, %s9919_s23 }
0x2136   :  { %v7318_v36 = vpop.permute.xlu1 %7317 }
0x2137   :  { %v7334_v16 = vmul.f32 %v12149_v37, %v7318_v36  ;;  %v7316_v18 = vpop.permute.xlu0 %7315 }
0x2138   :  { %v7333_v40 = vmul.f32 %v12151_v29, %v7316_v18  ;;  %v7388_v18 = vsub.f32 1.0, %v12144_v24 }
0x2139   :  { %7357 = vrot.lane.b32.xlu1 %v7334_v16, %s9919_s23  ;;  %v7435_v16 = vmul.f32 %v12139_v20, %v11818_v28  ;;  %v7390_v28 = vsub.f32 1.0, %v12149_v37 }
0x213a   :  { %7355 = vrot.lane.b32.xlu0 %v7333_v40, %s9919_s23 }
0x2190   :  { %v7346_v33 = vpop.permute.xlu1 %7345 }
0x2191   :  { %v7368_v27 = vadd.f32 %v7346_v33, %v12085_v41  ;;  %v7344_v52 = vpop.permute.xlu0 %7343 }
0x2192   :  { %v7367_v17 = vadd.f32 %v7344_v52, %v12087_v59  ;;  %v7389_v52 = vsub.f32 1.0, %v12151_v29 }
0x2193   :  { %9872 = vtanh.f32 %v7368_v27  ;;  %v7436_v27 = vmul.f32 %v12144_v24, %v11815_v50  ;;  %v7437_v50 = vmul.f32 %v12151_v29, %v11828_v48 }
0x2194   :  { %9874 = vtanh.f32 %v7367_v17  ;;  %v7438_v17 = vmul.f32 %v12149_v37, %v11825_v54 }
0x219d   :  { %v9873_v49 = vpop.eup %9872 }
0x219e   :  { %v9875_v15 = vpop.eup %9874  ;;  %7401 = vrot.lane.b32.xlu1 %v9873_v49, %s9917_s26 }
0x219f   :  { %v7348_v56 = vpop.permute.xlu0 %7347  ;;  %7399 = vrot.lane.b32.xlu0 %v9875_v15, %s9917_s26 }
0x21a0   :  { %v7369_v60 = vadd.f32 %v7348_v56, %v12093_v2 }
0x21a2   :  { %9876 = vtanh.f32 %v7369_v60 }
0x21a3   :  { %v7350_v46 = vpop.permute.xlu1 %7349 }
0x21a4   :  { %v7370_v19 = vadd.f32 %v7350_v46, %v12097_v6  ;;  %v7352_v45 = vpop.permute.xlu0 %7351 }
0x21a5   :  { %v7371_v41 = vadd.f32 %v7352_v45, %v12099_v51 }
0x21a6   :  { %9878 = vtanh.f32 %v7370_v19 }
0x21a7   :  { %9880 = vtanh.f32 %v7371_v41  ;;  %v7354_v59 = vpop.permute.xlu1 %7353 }
0x21a8   :  { %v7372_v55 = vadd.f32 %v7354_v59, %v12105_v23 }
0x21aa   :  { %9882 = vtanh.f32 %v7372_v55 }
0x21ab   :  { %v7358_v31 = vpop.permute.xlu1 %7357 }
0x21ac   :  { %v9877_v44 = vpop.eup %9876  ;;  %v7374_v32 = vadd.f32 %v7358_v31, %v12109_v58  ;;  %v7356_v25 = vpop.permute.xlu0 %7355  ;;  %v7384_v58 = vsub.f32 1.0, %v12125_v7 }
0x21ad   :  { %v7373_v2 = vadd.f32 %v7356_v25, %v12111_v5  ;;  %7403 = vrot.lane.b32.xlu0 %v9877_v44, %s9917_s26 }
0x21ae   :  { %9884 = vtanh.f32 %v7374_v32 }
0x21af   :  { %9886 = vtanh.f32 %v7373_v2 }
0x21b0   :  { %v9879_v6 = vpop.eup %9878 }
0x21b1   :  { %v9881_v22 = vpop.eup %9880  ;;  %7405 = vrot.lane.b32.xlu1 %v9879_v6, %s9917_s26 }
0x21b2   :  { %7407 = vrot.lane.b32.xlu0 %v9881_v22, %s9917_s26 }
0x21b4   :  { %v9883_v51 = vpop.eup %9882 }
0x21b5   :  { %7409 = vrot.lane.b32.xlu1 %v9883_v51, %s9917_s26 }
0x21b8   :  { %v9885_v23 = vpop.eup %9884 }
0x21b9   :  { %v9887_v12 = vpop.eup %9886  ;;  %7413 = vrot.lane.b32.xlu1 %v9885_v23, %s9917_s26 }
0x21ba   :  { %7411 = vrot.lane.b32.xlu0 %v9887_v12, %s9917_s26 }
0x2210   :  { %v7402_v5 = vpop.permute.xlu1 %7401 }
0x2211   :  { %v7424_v35 = vmul.f32 %v7402_v5, %v7384_v58  ;;  %v7400_v53 = vpop.permute.xlu0 %7399 }
0x2212   :  { %v7423_v11 = vmul.f32 %v7400_v53, %v7383_v10 }
0x2213   :  { %v12179_v13 = vadd.f32 %v7432_v30, %v7424_v35 }
0x2214   :  { %v12181_v39 = vadd.f32 %v7431_v0, %v7423_v11 }
0x2215   :  { %7457 = vrot.lane.b32.xlu1 %v12179_v13, %s9917_s26 }
0x2216   :  { %7455 = vrot.lane.b32.xlu0 %v12181_v39, %s9917_s26 }
0x221f   :  { %v7404_v8 = vpop.permute.xlu0 %7403 }
0x2220   :  { %v7425_v7 = vmul.f32 %v7404_v8, %v7385_v21 }
0x2222   :  { %v12190_v43 = vadd.f32 %v7433_v14, %v7425_v7 }
0x2223   :  { %v7406_v38 = vpop.permute.xlu1 %7405 }
0x2224   :  { %v7426_v63 = vmul.f32 %v7406_v38, %v7386_v34  ;;  %v7408_v36 = vpop.permute.xlu0 %7407  ;;  %7459 = vrot.lane.b32.xlu0 %v12190_v43, %s9917_s26 }
0x2225   :  { %v7427_v26 = vmul.f32 %v7408_v36, %v7387_v9 }
0x2226   :  { %v12200_v47 = vadd.f32 %v7434_v1, %v7426_v63 }
0x2227   :  { %v12203_v40 = vadd.f32 %v7435_v16, %v7427_v26  ;;  %v7410_v33 = vpop.permute.xlu1 %7409 }
0x2228   :  { %v7428_v62 = vmul.f32 %v7410_v33, %v7388_v18  ;;  %7461 = vrot.lane.b32.xlu1 %v12200_v47, %s9917_s26 }
0x2229   :  { %7463 = vrot.lane.b32.xlu0 %v12203_v40, %s9917_s26 }
0x222a   :  { %v12211_v57 = vadd.f32 %v7436_v27, %v7428_v62 }
0x222b   :  { %v7414_v20 = vpop.permute.xlu1 %7413 }
0x222c   :  { %v7430_v49 = vmul.f32 %v7414_v20, %v7390_v28  ;;  %v7412_v15 = vpop.permute.xlu0 %7411  ;;  %7465 = vrot.lane.b32.xlu1 %v12211_v57, %s9917_s26 }
0x222d   :  { %v7429_v24 = vmul.f32 %v7412_v15, %v7389_v52 }
0x222e   :  { %v12221_v56 = vadd.f32 %v7438_v17, %v7430_v49 }
0x222f   :  { %v12223_v60 = vadd.f32 %v7437_v50, %v7429_v24 }
0x2230   :  { %7469 = vrot.lane.b32.xlu1 %v12221_v56, %s9917_s26 }
0x2231   :  { %7467 = vrot.lane.b32.xlu0 %v12223_v60, %s9917_s26 }
0x2287   :  { %v7458_v54 = vpop.permute.xlu1 %7457 }
0x2288   :  { %v7482_v37 = vsel %vm87_vm0, %v7458_v54, 0.0  ;;  %v7456_v46 = vpop.permute.xlu0 %7455 }
0x2289   :  { %v7479_v19 = vsel %vm87_vm0, %v7456_v46, 0.0  ;;  %7483 = vadd.xlane.f32.xlu1 %v7482_v37 }
0x228a   :  { %7480 = vadd.xlane.f32.xlu0 %v7479_v19 }
0x2296   :  { %v7460_v48 = vpop.permute.xlu0 %7459 }
0x2297   :  { %v7485_v59 = vsel %vm87_vm0, %v7460_v48, 0.0 }
0x229a   :  { %v7462_v29 = vpop.permute.xlu1 %7461 }
0x229b   :  { %v7488_v45 = vsel %vm87_vm0, %v7462_v29, 0.0  ;;  %v7464_v31 = vpop.permute.xlu0 %7463 }
0x229c   :  { %7489 = vadd.xlane.f32.xlu0 %v7488_v45  ;;  %v7491_v32 = vsel %vm87_vm0, %v7464_v31, 0.0 }
0x229e   :  { %v7466_v41 = vpop.permute.xlu1 %7465 }
0x229f   :  { %v7494_v55 = vsel %vm87_vm0, %v7466_v41, 0.0 }
0x22a0   :  { %7495 = vadd.xlane.f32.xlu1 %v7494_v55  ;;  %7486 = vadd.xlane.f32.xlu0 %v7485_v59 }
0x22a2   :  { %v7470_v44 = vpop.permute.xlu1 %7469 }
0x22a3   :  { %v7500_v25 = vsel %vm87_vm0, %v7470_v44, 0.0  ;;  %v7468_v2 = vpop.permute.xlu0 %7467 }
0x22a4   :  { %7501 = vadd.xlane.f32.xlu1 %v7500_v25  ;;  %7492 = vadd.xlane.f32.xlu0 %v7491_v32  ;;  %v7497_v6 = vsel %vm87_vm0, %v7468_v2, 0.0 }
0x22a8   :  { %7498 = vadd.xlane.f32.xlu0 %v7497_v6 }
0x2316   :  { %v7484_v22 = vpop.xlane.xlu1 %7483 }
0x2317   :  { %v7504_v51 = vmul.f32 0.03125, %v7484_v22  ;;  %v7481_v23 = vpop.xlane.xlu0 %7480 }
0x2318   :  { %v7503_v12 = vmul.f32 0.03125, %v7481_v23 }
0x2319   :  { %v12238_v58 = vsub.f32 %v12179_v13, %v7504_v51 }
0x231a   :  { %v12241_v5 = vsub.f32 %v12181_v39, %v7503_v12 }
0x231b   :  { %v7520_v10 = vmul.f32 %v12238_v58, %v12238_v58 }
0x231c   :  { %v7519_v30 = vmul.f32 %v12241_v5, %v12241_v5 }
0x231d   :  { %7537 = vrot.lane.b32.xlu1 %v7520_v10, %s9917_s26 }
0x231e   :  { %7535 = vrot.lane.b32.xlu0 %v7519_v30, %s9917_s26 }
0x2329   :  { %v7490_v35 = vpop.xlane.xlu0 %7489 }
0x232a   :  { %v7506_v53 = vmul.f32 0.03125, %v7490_v35 }
0x232c   :  { %v12253_v14 = vsub.f32 %v12200_v47, %v7506_v53 }
0x232d   :  { %v7496_v0 = vpop.xlane.xlu1 %7495  ;;  %v7487_v11 = vpop.xlane.xlu0 %7486 }
0x232e   :  { %v7505_v21 = vmul.f32 0.03125, %v7487_v11  ;;  %v7508_v34 = vmul.f32 0.03125, %v7496_v0  ;;  %v7522_v36 = vmul.f32 %v12253_v14, %v12253_v14 }
0x2330   :  { %v12250_v8 = vsub.f32 %v12190_v43, %v7505_v21  ;;  %v12264_v26 = vsub.f32 %v12211_v57, %v7508_v34 }
0x2331   :  { %v7493_v7 = vpop.xlane.xlu0 %7492  ;;  %v7502_v1 = vpop.xlane.xlu1 %7501 }
0x2332   :  { %v7521_v38 = vmul.f32 %v12250_v8, %v12250_v8  ;;  %v7507_v9 = vmul.f32 0.03125, %v7493_v7  ;;  %v7510_v18 = vmul.f32 0.03125, %v7502_v1  ;;  %v7524_v28 = vmul.f32 %v12264_v26, %v12264_v26 }
0x2334   :  { %v12258_v63 = vsub.f32 %v12203_v40, %v7507_v9  ;;  %7539 = vrot.lane.b32.xlu1 %v7521_v38, %s9917_s26  ;;  %v12276_v20 = vsub.f32 %v12221_v56, %v7510_v18 }
0x2335   :  { %v7499_v16 = vpop.xlane.xlu0 %7498 }
0x2336   :  { %v7523_v33 = vmul.f32 %v12258_v63, %v12258_v63  ;;  %v7509_v27 = vmul.f32 0.03125, %v7499_v16  ;;  %v7526_v17 = vmul.f32 %v12276_v20, %v12276_v20 }
0x2338   :  { %v12269_v62 = vsub.f32 %v12223_v60, %v7509_v27  ;;  %7541 = vrot.lane.b32.xlu1 %v7522_v36, %s9917_s26  ;;  %7543 = vrot.lane.b32.xlu0 %v7523_v33, %s9917_s26 }
0x233a   :  { %v7525_v52 = vmul.f32 %v12269_v62, %v12269_v62 }
0x233c   :  { %7545 = vrot.lane.b32.xlu1 %v7524_v28, %s9917_s26  ;;  %7547 = vrot.lane.b32.xlu0 %v7525_v52, %s9917_s26 }
0x2340   :  { %7549 = vrot.lane.b32.xlu1 %v7526_v17, %s9917_s26 }
0x238f   :  { %v7538_v49 = vpop.permute.xlu1 %7537 }
0x2390   :  { %v7562_v15 = vsel %vm87_vm0, %v7538_v49, 0.0  ;;  %v7536_v50 = vpop.permute.xlu0 %7535 }
0x2391   :  { %v7559_v24 = vsel %vm87_vm0, %v7536_v50, 0.0  ;;  %7563 = vadd.xlane.f32.xlu1 %v7562_v15 }
0x2392   :  { %7560 = vadd.xlane.f32.xlu0 %v7559_v24 }
0x23a6   :  { %v7540_v54 = vpop.permute.xlu1 %7539 }
0x23a7   :  { %v7565_v29 = vsel %vm87_vm0, %v7540_v54, 0.0 }
0x23aa   :  { %v7542_v37 = vpop.permute.xlu1 %7541  ;;  %v7544_v19 = vpop.permute.xlu0 %7543 }
0x23ab   :  { %v7568_v46 = vsel %vm87_vm0, %v7542_v37, 0.0  ;;  %v7571_v59 = vsel %vm87_vm0, %v7544_v19, 0.0 }
0x23ac   :  { %7569 = vadd.xlane.f32.xlu0 %v7568_v46 }
0x23ae   :  { %v7546_v48 = vpop.permute.xlu1 %7545  ;;  %v7548_v31 = vpop.permute.xlu0 %7547 }
0x23af   :  { %v7574_v45 = vsel %vm87_vm0, %v7546_v48, 0.0  ;;  %v7577_v44 = vsel %vm87_vm0, %v7548_v31, 0.0 }
0x23b0   :  { %7575 = vadd.xlane.f32.xlu1 %v7574_v45  ;;  %7566 = vadd.xlane.f32.xlu0 %v7565_v29 }
0x23b2   :  { %v7550_v41 = vpop.permute.xlu1 %7549 }
0x23b3   :  { %v7580_v55 = vsel %vm87_vm0, %v7550_v41, 0.0 }
0x23b4   :  { %7581 = vadd.xlane.f32.xlu1 %v7580_v55  ;;  %7572 = vadd.xlane.f32.xlu0 %v7571_v59 }
0x23b8   :  { %7578 = vadd.xlane.f32.xlu0 %v7577_v44 }
0x241e   :  { %v7564_v32 = vpop.xlane.xlu1 %7563 }
0x241f   :  { %v7584_v25 = vmul.f32 0.03125, %v7564_v32  ;;  %v7561_v2 = vpop.xlane.xlu0 %7560 }
0x2420   :  { %v7583_v6 = vmul.f32 0.03125, %v7561_v2 }
0x2421   :  { %v7592_v22 = vadd.f32 1e-05, %v7584_v25 }
0x2422   :  { %v7591_v51 = vadd.f32 1e-05, %v7583_v6 }
0x2423   :  { %9888 = vrsqrt.f32 %v7592_v22 }
0x2424   :  { %9890 = vrsqrt.f32 %v7591_v51 }
0x242d   :  { %v9889_v23 = vpop.eup %9888 }
0x242e   :  { %v9891_v12 = vpop.eup %9890  ;;  %v7608_v10 = vmul.f32 %v9889_v23, %v12238_v58 }
0x242f   :  { %v7607_v30 = vmul.f32 %v9891_v12, %v12241_v5 }
0x2430   :  { %v7616_v35 = vmul.f32 %v7608_v10, %v11114_v61 }
0x2431   :  { %v7615_v53 = vmul.f32 %v7607_v30, %v11114_v61 }
0x2432   :  { %v7624_v0 = vadd.f32 %v7616_v35, %v11116_v42 }
0x2433   :  { %v7623_v11 = vadd.f32 %v7615_v53, %v11116_v42 }
0x2434   :  { %7641 = vrot.lane.b32.xlu1 %v7624_v0, %s9917_s26 }
0x2435   :  { %7639 = vrot.lane.b32.xlu0 %v7623_v11, %s9917_s26 }
0x2439   :  { %v7570_v21 = vpop.xlane.xlu0 %7569 }
0x243a   :  { %v7586_v7 = vmul.f32 0.03125, %v7570_v21 }
0x243c   :  { %v7594_v34 = vadd.f32 1e-05, %v7586_v7 }
0x243d   :  { %v7576_v38 = vpop.xlane.xlu1 %7575  ;;  %v7567_v9 = vpop.xlane.xlu0 %7566 }
0x243e   :  { %v7588_v58 = vmul.f32 0.03125, %v7576_v38  ;;  %v7585_v1 = vmul.f32 0.03125, %v7567_v9  ;;  %9892 = vrsqrt.f32 %v7594_v34 }
0x2440   :  { %v7593_v5 = vadd.f32 1e-05, %v7585_v1  ;;  %v7596_v36 = vadd.f32 1e-05, %v7588_v58 }
0x2441   :  { %v7582_v16 = vpop.xlane.xlu1 %7581  ;;  %v7573_v18 = vpop.xlane.xlu0 %7572 }
0x2442   :  { %v7590_v33 = vmul.f32 0.03125, %v7582_v16  ;;  %v7587_v27 = vmul.f32 0.03125, %v7573_v18  ;;  %9894 = vrsqrt.f32 %v7593_v5 }
0x2443   :  { %9896 = vrsqrt.f32 %v7596_v36 }
0x2444   :  { %v7595_v28 = vadd.f32 1e-05, %v7587_v27  ;;  %v7598_v52 = vadd.f32 1e-05, %v7590_v33 }
0x2445   :  { %v7579_v17 = vpop.xlane.xlu0 %7578 }
0x2446   :  { %v7589_v49 = vmul.f32 0.03125, %v7579_v17  ;;  %9898 = vrsqrt.f32 %v7595_v28 }
0x2447   :  { %9900 = vrsqrt.f32 %v7598_v52 }
0x2448   :  { %v7597_v15 = vadd.f32 1e-05, %v7589_v49  ;;  %v9893_v50 = vpop.eup %9892 }
0x2449   :  { %v7610_v37 = vmul.f32 %v9893_v50, %v12253_v14 }
0x244a   :  { %9902 = vrsqrt.f32 %v7597_v15 }
0x244b   :  { %v7618_v45 = vmul.f32 %v7610_v37, %v11114_v61 }
0x244c   :  { %v9895_v24 = vpop.eup %9894 }
0x244d   :  { %v7609_v54 = vmul.f32 %v9895_v24, %v12250_v8  ;;  %v9897_v46 = vpop.eup %9896  ;;  %v7626_v44 = vadd.f32 %v7618_v45, %v11116_v42 }
0x244e   :  { %v7612_v59 = vmul.f32 %v9897_v46, %v12264_v26 }
0x244f   :  { %v7617_v19 = vmul.f32 %v7609_v54, %v11114_v61  ;;  %v9913_v54 = vld [vmem:[%s12408_s7 + $0xa] ss:$0 sm:$0xff] }
0x2450   :  { %v9899_v48 = vpop.eup %9898  ;;  %v7620_v25 = vmul.f32 %v7612_v59, %v11114_v61 }
0x2451   :  { %v7625_v29 = vadd.f32 %v7617_v19, %v11116_v42  ;;  %v7611_v41 = vmul.f32 %v9899_v48, %v12258_v63  ;;  %v9901_v55 = vpop.eup %9900 }
0x2452   :  { %v7614_v2 = vmul.f32 %v9901_v55, %v12276_v20  ;;  %v7628_v6 = vadd.f32 %v7620_v25, %v11116_v42 }
0x2453   :  { %7643 = vrot.lane.b32.xlu1 %v7625_v29, %s9917_s26  ;;  %v7619_v8 = vmul.f32 %v7611_v41, %v11114_v61 }
0x2454   :  { %v9903_v31 = vpop.eup %9902 }
0x2455   :  { %v7613_v14 = vmul.f32 %v9903_v31, %v12269_v62  ;;  %v7627_v32 = vadd.f32 %v7619_v8, %v11116_v42  ;;  %v7622_v62 = vmul.f32 %v7614_v2, %v11114_v61 }
0x2457   :  { %v7621_v63 = vmul.f32 %v7613_v14, %v11114_v61  ;;  %7645 = vrot.lane.b32.xlu1 %v7626_v44, %s9917_s26  ;;  %7647 = vrot.lane.b32.xlu0 %v7627_v32, %s9917_s26  ;;  %v7630_v22 = vadd.f32 %v7622_v62, %v11116_v42 }
0x2459   :  { %v7629_v26 = vadd.f32 %v7621_v63, %v11116_v42 }
0x245b   :  { %7649 = vrot.lane.b32.xlu1 %v7628_v6, %s9917_s26  ;;  %7651 = vrot.lane.b32.xlu0 %v7629_v26, %s9917_s26 }
0x245f   :  { %7653 = vrot.lane.b32.xlu1 %v7630_v22, %s9917_s26 }
0x24a6   :  { %v7642_v51 = vpop.permute.xlu1 %7641 }
0x24a7   :  { %v7640_v20 = vpop.permute.xlu0 %7639 }
0x24a8   :  { %9162 = vmatprep.mubr.msk.f32.mxu1 %vm87_vm0, %v7640_v20 }
0x24a9   :  { %9163 = vmatmul.mubr.msk.f32.vlgmr.msra.gmra.mrb[92].mxu1 %vm87_vm0, %v7642_v51 }
0x24aa   :  { %9485 = vmatpush3.bf16.msra.mxu1 %v11138_v4 }
0x24ab   :  { %9487 = vmatprep.subr.bf16.mxu1 %v11165_v3 }
0x24ae   :  { %9489 = vmatpush3.bf16.msra.mxu1 %v11165_v3  ;;  %v9912_v3 = vld [vmem:[%s12408_s7 + $0x9] ss:$0 sm:$0xff] }
0x24c5   :  { %v7644_v61 = vpop.permute.xlu1 %7643 }
0x24c6   :  { %9165 = vmatprep.mubr.msk.f32.mxu1 %vm87_vm0, %v7644_v61 }
0x24c9   :  { %v7646_v23 = vpop.permute.xlu1 %7645  ;;  %v7648_v12 = vpop.permute.xlu0 %7647 }
0x24ca   :  { %9166 = vmatmul.mubr.msk.f32.gmra.mrb[94].mxu1 %vm87_vm0, %v7646_v23 }
0x24cb   :  { %9168 = vmatprep.mubr.msk.f32.mxu1 %vm87_vm0, %v7648_v12 }
0x24cd   :  { %v7650_v42 = vpop.permute.xlu1 %7649  ;;  %v7652_v10 = vpop.permute.xlu0 %7651 }
0x24ce   :  { %9169 = vmatmul.mubr.msk.f32.gmra.mrb[96].mxu1 %vm87_vm0, %v7650_v42 }
0x24cf   :  { %9171 = vmatprep.mubr.msk.f32.mxu1 %vm87_vm0, %v7652_v10 }
0x24d1   :  { %v7654_v4 = vpop.permute.xlu1 %7653 }
0x24d2   :  { %9172 = vmatmul.mubr.msk.f32.gmra.mrb[98].mxu1 %vm87_vm0, %v7654_v4 }
0x257c   :  { %v9164_v30 = vpop.f32.mrb[92].mxu1 }
0x257d   :  { %v7743_v35 = vadd.f32 %v9912_v3, %v9164_v30  ;;  %v7737_v53 = vpop.f32.mrb[93].mxu1 }
0x257e   :  { %v7738_v0 = vadd.f32 %v9912_v3, %v7737_v53 }
0x257f   :  { %v7777_v21 = vmax.f32 %v7743_v35, 0.0 }
0x2580   :  { %v7776_v11 = vmax.f32 %v7738_v0, 0.0 }
0x2582   :  { %9182 = vmatprep.mubr.msk.f32.mxu1 %vm87_vm0, %v7776_v11 }
0x2583   :  { %9183 = vmatmul.mubr.msk.f32.vlgmr.msra.gmra.mrb[100].mxu1 %vm87_vm0, %v7777_v21 }
0x259d   :  { %v9167_v7 = vpop.f32.mrb[94].mxu1 }
0x259e   :  { %v7753_v34 = vadd.f32 %v9912_v3, %v9167_v7  ;;  %v7747_v38 = vpop.f32.mrb[95].mxu1 }
0x259f   :  { %v7748_v9 = vadd.f32 %v9912_v3, %v7747_v38 }
0x25a0   :  { %v7779_v5 = vmax.f32 %v7753_v34, 0.0 }
0x25a1   :  { %v7778_v58 = vmax.f32 %v7748_v9, 0.0  ;;  %v9170_v1 = vpop.f32.mrb[96].mxu1 }
0x25a2   :  { %v7763_v36 = vadd.f32 %v9912_v3, %v9170_v1  ;;  %v7757_v16 = vpop.f32.mrb[97].mxu1 }
0x25a3   :  { %v7758_v18 = vadd.f32 %v9912_v3, %v7757_v16  ;;  %9185 = vmatprep.mubr.msk.f32.mxu1 %vm87_vm0, %v7778_v58 }
0x25a4   :  { %9186 = vmatmul.mubr.msk.f32.gmra.mrb[102].mxu1 %vm87_vm0, %v7779_v5  ;;  %v7781_v28 = vmax.f32 %v7763_v36, 0.0 }
0x25a5   :  { %v7780_v33 = vmax.f32 %v7758_v18, 0.0  ;;  %v9173_v27 = vpop.f32.mrb[98].mxu1 }
0x25a6   :  { %v7773_v52 = vadd.f32 %v9912_v3, %v9173_v27  ;;  %v7767_v17 = vpop.f32.mrb[99].mxu1 }
0x25a7   :  { %v7768_v49 = vadd.f32 %v9912_v3, %v7767_v17  ;;  %9188 = vmatprep.mubr.msk.f32.mxu1 %vm87_vm0, %v7780_v33 }
0x25a8   :  { %9189 = vmatmul.mubr.msk.f32.gmra.mrb[104].mxu1 %vm87_vm0, %v7781_v28  ;;  %v7783_v50 = vmax.f32 %v7773_v52, 0.0 }
0x25a9   :  { %v7782_v15 = vmax.f32 %v7768_v49, 0.0 }
0x25ab   :  { %9191 = vmatprep.mubr.msk.f32.mxu1 %vm87_vm0, %v7782_v15 }
0x25ac   :  { %9192 = vmatmul.mubr.msk.f32.gmra.mrb[106].mxu1 %vm87_vm0, %v7783_v50 }
0x2656   :  { %v9184_v24 = vpop.f32.mrb[100].mxu1 }
0x2657   :  { %v7880_v37 = vadd.f32 %v9913_v54, %v9184_v24  ;;  %v7874_v46 = vpop.f32.mrb[101].mxu1 }
0x2658   :  { %v7875_v19 = vadd.f32 %v9913_v54, %v7874_v46 }
0x2659   :  { %7923 = vrot.lane.b32.xlu1 %v7880_v37, %s9918_s27 }
0x265a   :  { %7921 = vrot.lane.b32.xlu0 %v7875_v19, %s9918_s27 }
0x2677   :  { %v9187_v48 = vpop.f32.mrb[102].mxu1 }
0x2678   :  { %v7890_v29 = vadd.f32 %v9913_v54, %v9187_v48  ;;  %v7884_v45 = vpop.f32.mrb[103].mxu1 }
0x2679   :  { %v7885_v41 = vadd.f32 %v9913_v54, %v7884_v45 }
0x267a   :  { %7927 = vrot.lane.b32.xlu1 %v7890_v29, %s9918_s27 }
0x267b   :  { %v9190_v59 = vpop.f32.mrb[104].mxu1  ;;  %7925 = vrot.lane.b32.xlu0 %v7885_v41, %s9918_s27 }
0x267c   :  { %v7900_v55 = vadd.f32 %v9913_v54, %v9190_v59  ;;  %v7894_v31 = vpop.f32.mrb[105].mxu1 }
0x267d   :  { %v7895_v8 = vadd.f32 %v9913_v54, %v7894_v31 }
0x267e   :  { %7931 = vrot.lane.b32.xlu1 %v7900_v55, %s9918_s27 }
0x267f   :  { %7929 = vrot.lane.b32.xlu0 %v7895_v8, %s9918_s27  ;;  %v9193_v14 = vpop.f32.mrb[106].mxu1 }
0x2680   :  { %v7910_v44 = vadd.f32 %v9913_v54, %v9193_v14  ;;  %v7904_v32 = vpop.f32.mrb[107].mxu1 }
0x2681   :  { %v7905_v25 = vadd.f32 %v9913_v54, %v7904_v32 }
0x2682   :  { %7935 = vrot.lane.b32.xlu1 %v7910_v44, %s9918_s27 }
0x2683   :  { %7933 = vrot.lane.b32.xlu0 %v7905_v25, %s9918_s27 }
0x26cb   :  { %v7924_v2 = vpop.permute.xlu1 %7923 }
0x26cc   :  { %v7946_v63 = vadd.f32 %v7924_v2, %v12179_v13  ;;  %v7922_v26 = vpop.permute.xlu0 %7921 }
0x26cd   :  { %v7945_v6 = vadd.f32 %v7922_v26, %v12181_v39 }
0x26ce   :  { %7963 = vrot.lane.b32.xlu1 %v7946_v63, %s9917_s26 }
0x26cf   :  { %7961 = vrot.lane.b32.xlu0 %v7945_v6, %s9917_s26 }
0x26ec   :  { %v7928_v62 = vpop.permute.xlu1 %7927 }
0x26ed   :  { %v7948_v22 = vadd.f32 %v7928_v62, %v12200_v47  ;;  %v7926_v20 = vpop.permute.xlu0 %7925 }
0x26ee   :  { %v7947_v51 = vadd.f32 %v7926_v20, %v12190_v43 }
0x26ef   :  { %7967 = vrot.lane.b32.xlu1 %v7948_v22, %s9917_s26 }
0x26f0   :  { %v7932_v61 = vpop.permute.xlu1 %7931  ;;  %7965 = vrot.lane.b32.xlu0 %v7947_v51, %s9917_s26 }
0x26f1   :  { %v7950_v13 = vadd.f32 %v7932_v61, %v12211_v57  ;;  %v7930_v23 = vpop.permute.xlu0 %7929 }
0x26f2   :  { %v7949_v39 = vadd.f32 %v7930_v23, %v12203_v40 }
0x26f3   :  { %7971 = vrot.lane.b32.xlu1 %v7950_v13, %s9917_s26 }
0x26f4   :  { %v7936_v12 = vpop.permute.xlu1 %7935  ;;  %7969 = vrot.lane.b32.xlu0 %v7949_v39, %s9917_s26 }
0x26f5   :  { %v7952_v47 = vadd.f32 %v7936_v12, %v12221_v56  ;;  %v7934_v42 = vpop.permute.xlu0 %7933 }
0x26f6   :  { %v7951_v43 = vadd.f32 %v7934_v42, %v12223_v60 }
0x26f7   :  { %7975 = vrot.lane.b32.xlu1 %v7952_v47, %s9917_s26 }
0x26f8   :  { %7973 = vrot.lane.b32.xlu0 %v7951_v43, %s9917_s26 }
0x2740   :  { %v7964_v10 = vpop.permute.xlu1 %7963 }
0x2741   :  { %7986 = vst.msk [vmem:[%s12416_s10 + $0x8] sm:$0xff] %vm87_vm0, %v7964_v10  ;;  %v7962_v40 = vpop.permute.xlu0 %7961 }
0x2742   :  { %7985 = vst.msk [vmem:[%s12416_s10] sm:$0xff] %vm87_vm0, %v7962_v40 }
0x2761   :  { %v7968_v57 = vpop.permute.xlu1 %7967 }
0x2762   :  { %7988 = vst.msk [vmem:[%s12416_s10 + $0x18] sm:$0xff] %vm87_vm0, %v7968_v57  ;;  %v7966_v56 = vpop.permute.xlu0 %7965 }
0x2763   :  { %7987 = vst.msk [vmem:[%s12416_s10 + $0x10] sm:$0xff] %vm87_vm0, %v7966_v56 }
0x2765   :  { %v7972_v60 = vpop.permute.xlu1 %7971 }
0x2766   :  { %7990 = vst.msk [vmem:[%s12416_s10 + $0x28] sm:$0xff] %vm87_vm0, %v7972_v60  ;;  %v7970_v4 = vpop.permute.xlu0 %7969 }
0x2767   :  { %7989 = vst.msk [vmem:[%s12416_s10 + $0x20] sm:$0xff] %vm87_vm0, %v7970_v4 }
0x2769   :  { %v7976_v30 = vpop.permute.xlu1 %7975 }
0x276a   :  { %7992 = vst.msk [vmem:[%s12416_s10 + $0x38] sm:$0xff] %vm87_vm0, %v7976_v30  ;;  %v7974_v3 = vpop.permute.xlu0 %7973 }
0x276b   :  { %7991 = vst.msk [vmem:[%s12416_s10 + $0x30] sm:$0xff] %vm87_vm0, %v7974_v3 }

</bundles_post_ra>
